<compile_context>
chip_gen: v6e
topology: v6e:2x2x1
jax: 0.10.0
libtpu: 0.0.40
codegen_flags: <defaults>
</compile_context>

<pallas_src>
import functools
import math

import jax
import jax.numpy as jnp
from jax.experimental import pallas as pl
from jax.experimental.pallas import tpu as pltpu


NODE_TYPES = ("poi_node", "road_node", "region_node")
EDGE_TYPES = (
    ("poi_node", "to", "poi_node"),
    ("road_node", "to", "road_node"),
    ("region_node", "to", "region_node"),
    ("poi_node", "to", "region_node"),
    ("road_node", "to", "region_node"),
    ("region_node", "to", "poi_node"),
    ("region_node", "to", "road_node"),
)
# Edge types grouped by source node type.  The ordering here is shared by the
# host-side weight packing and the kernel's lane-offset bookkeeping.
SRC_EDGES = {
    nt: tuple(i for i, (s, _, _) in enumerate(EDGE_TYPES) if s == nt)
    for nt in NODE_TYPES
}


def edge_key(et):
    return "__".join(et)


_VMEM = pl.BlockSpec(memory_space=pltpu.MemorySpace.VMEM)
_SMEM = pl.BlockSpec(memory_space=pltpu.MemorySpace.SMEM)


# ----------------------------- fused kernel --------------------------------

def _hgt_fused_kernel(ranges, heads, num_layers, *refs):
    """Entire HGT forward: input proj+relu -> num_layers HGTConv -> output proj."""
    ne = len(EDGE_TYPES)
    (x_ref, w_in_ref, b_in_ref, proj_w_ref, proj_b_ref,
     aw_ref, ab_ref) = refs[:7]
    mask_refs = refs[7:7 + ne]
    w_out_ref, b_out_ref, alpha_ref, o_ref = refs[7 + ne:]

    hidden = x_ref.shape[1]
    D = hidden // heads
    bf16 = jnp.bfloat16

    # Per-head lane masks (head h owns lanes [h*D, (h+1)*D)), built once.
    lane = jax.lax.broadcasted_iota(jnp.int32, (1, hidden), 1)
    head_masks = [jnp.logical_and(lane >= h * D, lane < (h + 1) * D)
                  for h in range(heads)]

    # Edge masks are layer/head-invariant: load + compare exactly once.
    edge_cnt = [mask_refs[ei][...] for ei in range(ne)]      # f32 edge counts
    edge_valid = [c > 0 for c in edge_cnt]                   # bool

    # ---- per-node-type input projection + relu_ ---------------------------
    h = {}
    for ti, nt in enumerate(NODE_TYPES):
        off, npad, _ = ranges[nt]
        xi = x_ref[off:off + npad, :].astype(bf16)
        y = jnp.dot(xi, w_in_ref[ti], preferred_element_type=jnp.float32)
        h[nt] = jnp.maximum(y + b_in_ref[ti], 0.0)

    # ---- HGT conv layers ---------------------------------------------------
    for l in range(num_layers):
        # One wide matmul per node type emits q | kk(e0) vv(e0) | kk(e1) vv(e1) ...
        # a_rel/m_rel (head-folded, block-diagonal) and p_rel/sqrt(D) were
        # folded into these weights host-side, so no relation matmuls remain.
        q, kk, vv = {}, {}, {}
        for ti, nt in enumerate(NODE_TYPES):
            p = jnp.dot(h[nt].astype(bf16), proj_w_ref[l, ti],
                        preferred_element_type=jnp.float32) + proj_b_ref[l, ti]
            q[nt] = p[:, :hidden].astype(bf16)
            for j, ei in enumerate(SRC_EDGES[nt]):
                o1 = hidden + 2 * j * hidden
                kk[ei] = p[:, o1:o1 + hidden].astype(bf16)
                vv[ei] = p[:, o1 + hidden:o1 + 2 * hidden].astype(bf16)

        # Per-head masked queries, hoisted out of the edge-type loop
        # (each dst type serves 2-3 edge types).
        q_h = {nt: [jnp.where(head_masks[hh], q[nt], bf16(0))
                    for hh in range(heads)]
               for nt in NODE_TYPES}

        agg = {nt: jnp.zeros((ranges[nt][1], hidden), jnp.float32)
               for nt in NODE_TYPES}

        for ei, (src, _, dst) in enumerate(EDGE_TYPES):
            k_e, v_e = kk[ei], vv[ei]
            cnt, valid = edge_cnt[ei], edge_valid[ei]
            for hh in range(heads):
                # scores_h = q_h . kk_h (masked q zeroes the other head's lanes)
                scores = jax.lax.dot_general(
                    q_h[dst][hh], k_e, (((1,), (1,)), ((), ())),
                    preferred_element_type=jnp.float32)        # [P_dst, P_src]
                scores = jnp.where(valid, scores, jnp.float32(-1e30))
                m = jnp.max(scores, axis=-1, keepdims=True)
                # count-valued mask: duplicate (src,dst) edges contribute
                # `count` times (matches PyG scatter softmax) and rows with no
                # incoming edge (incl. padded rows) get exactly-zero attention.
                p_ = jnp.exp(scores - m) * cnt
                denom = jnp.sum(p_, axis=-1, keepdims=True)
                inv = pl.reciprocal(jnp.maximum(denom, jnp.float32(1e-20)),
                                    approx=True)
                attn = (p_ * inv).astype(bf16)
                # v masked to head hh's lanes -> other head's output cols are 0,
                # so summing both heads into agg yields the head-concat result.
                v_h = jnp.where(head_masks[hh], v_e, bf16(0))
                agg[dst] = agg[dst] + jnp.dot(
                    attn, v_h, preferred_element_type=jnp.float32)

        c0 = jnp.float32(0.7978845608028654)                   # sqrt(2/pi)
        for ti, nt in enumerate(NODE_TYPES):
            a = agg[nt]
            # TODO(synk): tanh-approx GELU instead of PyG's default exact erf
            # GELU (keeps the transcendental on the EUP).
            g = 0.5 * a * (1.0 + jnp.tanh(c0 * (a + 0.044715 * (a * a * a))))
            o = jnp.dot(g.astype(bf16), aw_ref[l, ti],
                        preferred_element_type=jnp.float32) + ab_ref[l, ti]
            alpha = alpha_ref[l * len(NODE_TYPES) + ti]        # sigmoid(skip)
            o = alpha * o + (1.0 - alpha) * h[nt]
            h[nt] = jnp.maximum(o, 0.0)                        # self.activation

    # ---- shared output projection -----------------------------------------
    w_out = w_out_ref[...]
    b_out = b_out_ref[...]
    for ti, nt in enumerate(NODE_TYPES):
        off, npad, _ = ranges[nt]
        o_ref[off:off + npad, :] = jnp.dot(
            h[nt].astype(bf16), w_out,
            preferred_element_type=jnp.float32) + b_out


def hgt_forward(packed, x_all, masks, *, ranges, heads, num_layers):
    n_total = x_all.shape[0]
    out_c = packed["w_out"].shape[1]
    kern = functools.partial(_hgt_fused_kernel, ranges, heads, num_layers)
    out = pl.pallas_call(
        kern,
        out_shape=jax.ShapeDtypeStruct((n_total, out_c), jnp.float32),
        in_specs=[_VMEM] * (9 + len(EDGE_TYPES)) + [_SMEM],
        out_specs=_VMEM,
        compiler_params=pltpu.CompilerParams(
            vmem_limit_bytes=32 * 1024 * 1024),
    )(x_all, packed["w_in"], packed["b_in"], packed["proj_w"],
      packed["proj_b"], packed["a_w"], packed["a_b"], *masks,
      packed["w_out"], packed["b_out"], packed["alpha"])
    res = []
    for nt in NODE_TYPES:
        off, _, valid = ranges[nt]
        res.append(out[off:off + valid])
    return tuple(res)


# ----------------------------- parameters ----------------------------------

def init_linear_params(key, in_c, out_c):
    k1, k2 = jax.random.split(key)
    lim = 1.0 / math.sqrt(in_c)
    return {
        "w": jax.random.uniform(k1, (in_c, out_c), jnp.float32, -lim, lim),
        "b": jax.random.uniform(k2, (out_c,), jnp.float32, -lim, lim),
    }


def init_hgt_params(key, hidden, out_c, heads, num_layers):
    D = hidden // heads
    keys = jax.random.split(key, 4 + num_layers)
    params = {
        "lin_dict": {
            nt: init_linear_params(jax.random.fold_in(keys[0], i), hidden, hidden)
            for i, nt in enumerate(NODE_TYPES)
        },
        "lin": init_linear_params(keys[1], hidden, out_c),
        "convs": [],
    }
    for layer in range(num_layers):
        kl = keys[4 + layer]
        conv = {"k_lin": {}, "q_lin": {}, "v_lin": {}, "a_lin": {}, "skip": {},
                "a_rel": {}, "m_rel": {}, "p_rel": {}}
        for i, nt in enumerate(NODE_TYPES):
            for j, name in enumerate(("k_lin", "q_lin", "v_lin", "a_lin")):
                conv[name][nt] = init_linear_params(
                    jax.random.fold_in(kl, 10 * i + j), hidden, hidden)
            conv["skip"][nt] = jnp.float32(1.0)     # PyG default: skip init = 1
        for i, et in enumerate(EDGE_TYPES):
            ek = edge_key(et)
            k1, k2 = jax.random.split(jax.random.fold_in(kl, 100 + i))
            glorot = math.sqrt(6.0 / (D + D))
            conv["a_rel"][ek] = jax.random.uniform(k1, (heads, D, D), jnp.float32,
                                                   -glorot, glorot)
            conv["m_rel"][ek] = jax.random.uniform(k2, (heads, D, D), jnp.float32,
                                                   -glorot, glorot)
            conv["p_rel"][ek] = jnp.ones((heads,), jnp.float32)
        params["convs"].append(conv)
    return params


def _fold_heads(rel, hidden):
    """[H, D, D] -> block-diagonal [hidden, hidden] (head h in block (h, h))."""
    H, D, _ = rel.shape
    out = jnp.zeros((hidden, hidden), rel.dtype)
    for h in range(H):
        out = out.at[h * D:(h + 1) * D, h * D:(h + 1) * D].set(rel[h])
    return out


def pack_params(params, heads):
    """Host-side packing: fold heads + p_rel/sqrt(D) into block-diag relation
    matrices, fold those into the k/v projection weights, lane-pack
    q|kk|vv per node type, stack per-layer weights, cast matmul weights bf16."""
    hidden = params["lin"]["w"].shape[0]
    D = hidden // heads
    max_et = max(len(v) for v in SRC_EDGES.values())
    wmax = hidden * (1 + 2 * max_et)

    packed = {
        "w_in": jnp.stack([params["lin_dict"][nt]["w"]
                           for nt in NODE_TYPES]).astype(jnp.bfloat16),
        "b_in": jnp.stack([params["lin_dict"][nt]["b"][None, :]
                           for nt in NODE_TYPES]),
        "w_out": params["lin"]["w"].astype(jnp.bfloat16),
        "b_out": params["lin"]["b"][None, :],
    }

    proj_w, proj_b, a_w, a_b, alpha = [], [], [], [], []
    for conv in params["convs"]:
        a_fold, m_fold = {}, {}
        for et in EDGE_TYPES:
            ek = edge_key(et)
            scale = (conv["p_rel"][ek] / jnp.float32(math.sqrt(D)))[:, None, None]
            a_fold[ek] = _fold_heads(conv["a_rel"][ek] * scale, hidden)
            m_fold[ek] = _fold_heads(conv["m_rel"][ek], hidden)
        pw_l, pb_l = [], []
        for nt in NODE_TYPES:
            cols_w = [conv["q_lin"][nt]["w"]]
            cols_b = [conv["q_lin"][nt]["b"]]
            for ei in SRC_EDGES[nt]:
                ek = edge_key(EDGE_TYPES[ei])
                # kk = x @ (W_k @ a_fold) + b_k @ a_fold   (same for vv / m_fold)
                cols_w.append(conv["k_lin"][nt]["w"] @ a_fold[ek])
                cols_b.append(conv["k_lin"][nt]["b"] @ a_fold[ek])
                cols_w.append(conv["v_lin"][nt]["w"] @ m_fold[ek])
                cols_b.append(conv["v_lin"][nt]["b"] @ m_fold[ek])
            w = jnp.concatenate(cols_w, axis=1)
            b = jnp.concatenate(cols_b, axis=0)
            pw_l.append(jnp.pad(w, ((0, 0), (0, wmax - w.shape[1]))))
            pb_l.append(jnp.pad(b, ((0, wmax - b.shape[0]),))[None, :])
        proj_w.append(jnp.stack(pw_l))
        proj_b.append(jnp.stack(pb_l))
        a_w.append(jnp.stack([conv["a_lin"][nt]["w"] for nt in NODE_TYPES]))
        a_b.append(jnp.stack([conv["a_lin"][nt]["b"][None, :]
                              for nt in NODE_TYPES]))
        alpha.append(jax.nn.sigmoid(jnp.stack([conv["skip"][nt]
                                               for nt in NODE_TYPES])))

    packed["proj_w"] = jnp.stack(proj_w).astype(jnp.bfloat16)   # [L, 3, H, Wmax]
    packed["proj_b"] = jnp.stack(proj_b)                        # [L, 3, 1, Wmax]
    packed["a_w"] = jnp.stack(a_w).astype(jnp.bfloat16)         # [L, 3, H, H]
    packed["a_b"] = jnp.stack(a_b)                              # [L, 3, 1, H]
    packed["alpha"] = jnp.concatenate(alpha)                    # [L*3] (SMEM)
    return packed


def build_ranges(n_nodes):
    """Per-node-type (row offset, padded rows (mult of 8), valid rows)."""
    ranges, off = {}, 0
    for nt in NODE_TYPES:
        p = ((n_nodes[nt] + 7) // 8) * 8
        ranges[nt] = (off, p, n_nodes[nt])
        off += p
    return ranges, off


# ----------------------------- main -----------------------------------------

if __name__ == "__main__":
    key = jax.random.PRNGKey(0)
    hidden, out_c, heads, num_layers = 32, 16, 2, 2
    n_nodes = {"poi_node": 16, "road_node": 12, "region_node": 8}
    ranges, n_total = build_ranges(n_nodes)

    kx, kp, ke = jax.random.split(key, 3)

    # node features, padded per type to a multiple of 8 rows and concatenated
    x_parts = []
    for i, nt in enumerate(NODE_TYPES):
        xi = jax.random.normal(jax.random.fold_in(kx, i),
                               (n_nodes[nt], hidden), jnp.float32)
        _, npad, nv = ranges[nt]
        x_parts.append(jnp.pad(xi, ((0, npad - nv), (0, 0))))
    x_all = jnp.concatenate(x_parts, axis=0)                 # [40, 32]

    # edge_index_dict ([2, E]: row 0 = src ids, row 1 = dst ids) per edge type,
    # densified into padded [P_dst, P_src] COUNT masks (duplicates accumulate,
    # matching PyG's scatter softmax over the raw edge list).
    masks = []
    for i, et in enumerate(EDGE_TYPES):
        src, _, dst = et
        ns, nd = n_nodes[src], n_nodes[dst]
        _, ps, _ = ranges[src]
        _, pd, _ = ranges[dst]
        n_edges = 3 * max(ns, nd)
        k1, k2 = jax.random.split(jax.random.fold_in(ke, i))
        s = jax.random.randint(k1, (n_edges,), 0, ns)
        d = jax.random.randint(k2, (n_edges,), 0, nd)
        masks.append(jnp.zeros((pd, ps), jnp.float32).at[d, s].add(1.0))
    masks = tuple(masks)

    params = init_hgt_params(kp, hidden, out_c, heads, num_layers)
    packed = pack_params(params, heads)

    fwd = jax.jit(functools.partial(hgt_forward, ranges=ranges, heads=heads,
                                    num_layers=num_layers))
    outs = fwd(packed, x_all, masks)
    jax.block_until_ready(outs)
    print("KERNEL_OK")
</pallas_src>

<mosaic_0001>
module attributes {stable_mosaic.version = 11 : i64} {
  func.func @_hgt_fused_kernel(%arg0: memref<40x32xf32, #tpu.memory_space<vmem>>, %arg1: memref<3x32x32xbf16, #tpu.memory_space<vmem>>, %arg2: memref<3x1x32xf32, #tpu.memory_space<vmem>>, %arg3: memref<2x3x32x224xbf16, #tpu.memory_space<vmem>>, %arg4: memref<2x3x1x224xf32, #tpu.memory_space<vmem>>, %arg5: memref<2x3x32x32xbf16, #tpu.memory_space<vmem>>, %arg6: memref<2x3x1x32xf32, #tpu.memory_space<vmem>>, %arg7: memref<16x16xf32, #tpu.memory_space<vmem>>, %arg8: memref<16x16xf32, #tpu.memory_space<vmem>>, %arg9: memref<8x8xf32, #tpu.memory_space<vmem>>, %arg10: memref<8x16xf32, #tpu.memory_space<vmem>>, %arg11: memref<8x16xf32, #tpu.memory_space<vmem>>, %arg12: memref<16x8xf32, #tpu.memory_space<vmem>>, %arg13: memref<16x8xf32, #tpu.memory_space<vmem>>, %arg14: memref<32x16xbf16, #tpu.memory_space<vmem>>, %arg15: memref<1x16xf32, #tpu.memory_space<vmem>>, %arg16: memref<6xf32, #tpu.memory_space<smem>>, %arg17: memref<40x16xf32, #tpu.memory_space<vmem>>) attributes {dimension_semantics = [], scalar_prefetch = 0 : i64, scratch_operands = 0 : i64, tpu.core_type = #tpu.core_type<tc>} {
    %0 = tpu.iota {dimensions = array<i32: 1>} : vector<1x32xi32>
    %c0_i32 = arith.constant 0 : i32
    %1 = vector.broadcast %c0_i32 : i32 to vector<1x32xi32>
    %2 = arith.cmpi sge, %0, %1 : vector<1x32xi32>
    %c16_i32 = arith.constant 16 : i32
    %3 = vector.broadcast %c16_i32 : i32 to vector<1x32xi32>
    %4 = arith.cmpi slt, %0, %3 : vector<1x32xi32>
    %5 = arith.andi %2, %4 : vector<1x32xi1>
    %c16_i32_0 = arith.constant 16 : i32
    %6 = vector.broadcast %c16_i32_0 : i32 to vector<1x32xi32>
    %7 = arith.cmpi sge, %0, %6 : vector<1x32xi32>
    %c32_i32 = arith.constant 32 : i32
    %8 = vector.broadcast %c32_i32 : i32 to vector<1x32xi32>
    %9 = arith.cmpi slt, %0, %8 : vector<1x32xi32>
    %10 = arith.andi %7, %9 : vector<1x32xi1>
    %c0 = arith.constant 0 : index
    %c0_1 = arith.constant 0 : index
    %11 = vector.load %arg7[%c0, %c0_1] : memref<16x16xf32, #tpu.memory_space<vmem>>, vector<16x16xf32>
    %c0_2 = arith.constant 0 : index
    %c0_3 = arith.constant 0 : index
    %12 = vector.load %arg8[%c0_2, %c0_3] : memref<16x16xf32, #tpu.memory_space<vmem>>, vector<16x16xf32>
    %c0_4 = arith.constant 0 : index
    %c0_5 = arith.constant 0 : index
    %13 = vector.load %arg9[%c0_4, %c0_5] : memref<8x8xf32, #tpu.memory_space<vmem>>, vector<8x8xf32>
    %c0_6 = arith.constant 0 : index
    %c0_7 = arith.constant 0 : index
    %14 = vector.load %arg10[%c0_6, %c0_7] : memref<8x16xf32, #tpu.memory_space<vmem>>, vector<8x16xf32>
    %c0_8 = arith.constant 0 : index
    %c0_9 = arith.constant 0 : index
    %15 = vector.load %arg11[%c0_8, %c0_9] : memref<8x16xf32, #tpu.memory_space<vmem>>, vector<8x16xf32>
    %c0_10 = arith.constant 0 : index
    %c0_11 = arith.constant 0 : index
    %16 = vector.load %arg12[%c0_10, %c0_11] : memref<16x8xf32, #tpu.memory_space<vmem>>, vector<16x8xf32>
    %c0_12 = arith.constant 0 : index
    %c0_13 = arith.constant 0 : index
    %17 = vector.load %arg13[%c0_12, %c0_13] : memref<16x8xf32, #tpu.memory_space<vmem>>, vector<16x8xf32>
    %cst = arith.constant 0.000000e+00 : f32
    %18 = vector.broadcast %cst : f32 to vector<16x16xf32>
    %19 = arith.cmpf ogt, %11, %18 : vector<16x16xf32>
    %cst_14 = arith.constant 0.000000e+00 : f32
    %20 = vector.broadcast %cst_14 : f32 to vector<16x16xf32>
    %21 = arith.cmpf ogt, %12, %20 : vector<16x16xf32>
    %cst_15 = arith.constant 0.000000e+00 : f32
    %22 = vector.broadcast %cst_15 : f32 to vector<8x8xf32>
    %23 = arith.cmpf ogt, %13, %22 : vector<8x8xf32>
    %cst_16 = arith.constant 0.000000e+00 : f32
    %24 = vector.broadcast %cst_16 : f32 to vector<8x16xf32>
    %25 = arith.cmpf ogt, %14, %24 : vector<8x16xf32>
    %cst_17 = arith.constant 0.000000e+00 : f32
    %26 = vector.broadcast %cst_17 : f32 to vector<8x16xf32>
    %27 = arith.cmpf ogt, %15, %26 : vector<8x16xf32>
    %cst_18 = arith.constant 0.000000e+00 : f32
    %28 = vector.broadcast %cst_18 : f32 to vector<16x8xf32>
    %29 = arith.cmpf ogt, %16, %28 : vector<16x8xf32>
    %cst_19 = arith.constant 0.000000e+00 : f32
    %30 = vector.broadcast %cst_19 : f32 to vector<16x8xf32>
    %31 = arith.cmpf ogt, %17, %30 : vector<16x8xf32>
    %c0_20 = arith.constant 0 : index
    %c0_21 = arith.constant 0 : index
    %32 = vector.load %arg0[%c0_20, %c0_21] : memref<40x32xf32, #tpu.memory_space<vmem>>, vector<16x32xf32>
    %33 = arith.truncf %32 : vector<16x32xf32> to vector<16x32xbf16>
    %c0_22 = arith.constant 0 : index
    %c0_23 = arith.constant 0 : index
    %c0_24 = arith.constant 0 : index
    %34 = vector.load %arg1[%c0_22, %c0_23, %c0_24] : memref<3x32x32xbf16, #tpu.memory_space<vmem>>, vector<1x32x32xbf16>
    %35 = vector.shape_cast %34 : vector<1x32x32xbf16> to vector<32x32xbf16>
    %cst_25 = arith.constant dense<0.000000e+00> : vector<16x32xf32>
    %36 = tpu.matmul %33, %35, %cst_25 {dimension_numbers = #tpu.dot_dimension_numbers<[1], [0], [0], [1], [0, 0, 1, 1], [], []>} : vector<16x32xbf16>, vector<32x32xbf16>, vector<16x32xf32> -> vector<16x32xf32>
    %c0_26 = arith.constant 0 : index
    %c0_27 = arith.constant 0 : index
    %c0_28 = arith.constant 0 : index
    %37 = vector.load %arg2[%c0_26, %c0_27, %c0_28] : memref<3x1x32xf32, #tpu.memory_space<vmem>>, vector<1x1x32xf32>
    %38 = vector.shape_cast %37 : vector<1x1x32xf32> to vector<1x32xf32>
    %39 = vector.broadcast %38 : vector<1x32xf32> to vector<16x32xf32>
    %40 = arith.addf %36, %39 : vector<16x32xf32>
    %cst_29 = arith.constant 0.000000e+00 : f32
    %41 = vector.broadcast %cst_29 : f32 to vector<16x32xf32>
    %42 = arith.maximumf %40, %41 : vector<16x32xf32>
    %c16 = arith.constant 16 : index
    %c0_30 = arith.constant 0 : index
    %43 = vector.load %arg0[%c16, %c0_30] : memref<40x32xf32, #tpu.memory_space<vmem>>, vector<16x32xf32>
    %44 = arith.truncf %43 : vector<16x32xf32> to vector<16x32xbf16>
    %c1 = arith.constant 1 : index
    %c0_31 = arith.constant 0 : index
    %c0_32 = arith.constant 0 : index
    %45 = vector.load %arg1[%c1, %c0_31, %c0_32] : memref<3x32x32xbf16, #tpu.memory_space<vmem>>, vector<1x32x32xbf16>
    %46 = vector.shape_cast %45 : vector<1x32x32xbf16> to vector<32x32xbf16>
    %cst_33 = arith.constant dense<0.000000e+00> : vector<16x32xf32>
    %47 = tpu.matmul %44, %46, %cst_33 {dimension_numbers = #tpu.dot_dimension_numbers<[1], [0], [0], [1], [0, 0, 1, 1], [], []>} : vector<16x32xbf16>, vector<32x32xbf16>, vector<16x32xf32> -> vector<16x32xf32>
    %c1_34 = arith.constant 1 : index
    %c0_35 = arith.constant 0 : index
    %c0_36 = arith.constant 0 : index
    %48 = vector.load %arg2[%c1_34, %c0_35, %c0_36] : memref<3x1x32xf32, #tpu.memory_space<vmem>>, vector<1x1x32xf32>
    %49 = vector.shape_cast %48 : vector<1x1x32xf32> to vector<1x32xf32>
    %50 = vector.broadcast %49 : vector<1x32xf32> to vector<16x32xf32>
    %51 = arith.addf %47, %50 : vector<16x32xf32>
    %cst_37 = arith.constant 0.000000e+00 : f32
    %52 = vector.broadcast %cst_37 : f32 to vector<16x32xf32>
    %53 = arith.maximumf %51, %52 : vector<16x32xf32>
    %c32 = arith.constant 32 : index
    %c0_38 = arith.constant 0 : index
    %54 = vector.load %arg0[%c32, %c0_38] : memref<40x32xf32, #tpu.memory_space<vmem>>, vector<8x32xf32>
    %55 = arith.truncf %54 : vector<8x32xf32> to vector<8x32xbf16>
    %c2 = arith.constant 2 : index
    %c0_39 = arith.constant 0 : index
    %c0_40 = arith.constant 0 : index
    %56 = vector.load %arg1[%c2, %c0_39, %c0_40] : memref<3x32x32xbf16, #tpu.memory_space<vmem>>, vector<1x32x32xbf16>
    %57 = vector.shape_cast %56 : vector<1x32x32xbf16> to vector<32x32xbf16>
    %cst_41 = arith.constant dense<0.000000e+00> : vector<8x32xf32>
    %58 = tpu.matmul %55, %57, %cst_41 {dimension_numbers = #tpu.dot_dimension_numbers<[1], [0], [0], [1], [0, 0, 1, 1], [], []>} : vector<8x32xbf16>, vector<32x32xbf16>, vector<8x32xf32> -> vector<8x32xf32>
    %c2_42 = arith.constant 2 : index
    %c0_43 = arith.constant 0 : index
    %c0_44 = arith.constant 0 : index
    %59 = vector.load %arg2[%c2_42, %c0_43, %c0_44] : memref<3x1x32xf32, #tpu.memory_space<vmem>>, vector<1x1x32xf32>
    %60 = vector.shape_cast %59 : vector<1x1x32xf32> to vector<1x32xf32>
    %61 = vector.broadcast %60 : vector<1x32xf32> to vector<8x32xf32>
    %62 = arith.addf %58, %61 : vector<8x32xf32>
    %cst_45 = arith.constant 0.000000e+00 : f32
    %63 = vector.broadcast %cst_45 : f32 to vector<8x32xf32>
    %64 = arith.maximumf %62, %63 : vector<8x32xf32>
    %65 = arith.truncf %42 : vector<16x32xf32> to vector<16x32xbf16>
    %c0_46 = arith.constant 0 : index
    %c0_47 = arith.constant 0 : index
    %c0_48 = arith.constant 0 : index
    %c0_49 = arith.constant 0 : index
    %66 = vector.load %arg3[%c0_46, %c0_47, %c0_48, %c0_49] : memref<2x3x32x224xbf16, #tpu.memory_space<vmem>>, vector<1x1x32x224xbf16>
    %67 = vector.shape_cast %66 : vector<1x1x32x224xbf16> to vector<32x224xbf16>
    %cst_50 = arith.constant dense<0.000000e+00> : vector<16x224xf32>
    %68 = tpu.matmul %65, %67, %cst_50 {dimension_numbers = #tpu.dot_dimension_numbers<[1], [0], [0], [1], [0, 0, 1, 1], [], []>} : vector<16x32xbf16>, vector<32x224xbf16>, vector<16x224xf32> -> vector<16x224xf32>
    %c0_51 = arith.constant 0 : index
    %c0_52 = arith.constant 0 : index
    %c0_53 = arith.constant 0 : index
    %c0_54 = arith.constant 0 : index
    %69 = vector.load %arg4[%c0_51, %c0_52, %c0_53, %c0_54] : memref<2x3x1x224xf32, #tpu.memory_space<vmem>>, vector<1x1x1x224xf32>
    %70 = vector.shape_cast %69 : vector<1x1x1x224xf32> to vector<1x224xf32>
    %71 = vector.broadcast %70 : vector<1x224xf32> to vector<16x224xf32>
    %72 = arith.addf %68, %71 : vector<16x224xf32>
    %73 = vector.extract_strided_slice %72 {offsets = [0, 0], sizes = [16, 32], strides = [1, 1]} : vector<16x224xf32> to vector<16x32xf32>
    %74 = arith.truncf %73 : vector<16x32xf32> to vector<16x32xbf16>
    %75 = vector.extract_strided_slice %72 {offsets = [0, 32], sizes = [16, 32], strides = [1, 1]} : vector<16x224xf32> to vector<16x32xf32>
    %76 = arith.truncf %75 : vector<16x32xf32> to vector<16x32xbf16>
    %77 = vector.extract_strided_slice %72 {offsets = [0, 64], sizes = [16, 32], strides = [1, 1]} : vector<16x224xf32> to vector<16x32xf32>
    %78 = arith.truncf %77 : vector<16x32xf32> to vector<16x32xbf16>
    %79 = vector.extract_strided_slice %72 {offsets = [0, 96], sizes = [16, 32], strides = [1, 1]} : vector<16x224xf32> to vector<16x32xf32>
    %80 = arith.truncf %79 : vector<16x32xf32> to vector<16x32xbf16>
    %81 = vector.extract_strided_slice %72 {offsets = [0, 128], sizes = [16, 32], strides = [1, 1]} : vector<16x224xf32> to vector<16x32xf32>
    %82 = arith.truncf %81 : vector<16x32xf32> to vector<16x32xbf16>
    %83 = arith.truncf %53 : vector<16x32xf32> to vector<16x32xbf16>
    %c0_55 = arith.constant 0 : index
    %c1_56 = arith.constant 1 : index
    %c0_57 = arith.constant 0 : index
    %c0_58 = arith.constant 0 : index
    %84 = vector.load %arg3[%c0_55, %c1_56, %c0_57, %c0_58] : memref<2x3x32x224xbf16, #tpu.memory_space<vmem>>, vector<1x1x32x224xbf16>
    %85 = vector.shape_cast %84 : vector<1x1x32x224xbf16> to vector<32x224xbf16>
    %cst_59 = arith.constant dense<0.000000e+00> : vector<16x224xf32>
    %86 = tpu.matmul %83, %85, %cst_59 {dimension_numbers = #tpu.dot_dimension_numbers<[1], [0], [0], [1], [0, 0, 1, 1], [], []>} : vector<16x32xbf16>, vector<32x224xbf16>, vector<16x224xf32> -> vector<16x224xf32>
    %c0_60 = arith.constant 0 : index
    %c1_61 = arith.constant 1 : index
    %c0_62 = arith.constant 0 : index
    %c0_63 = arith.constant 0 : index
    %87 = vector.load %arg4[%c0_60, %c1_61, %c0_62, %c0_63] : memref<2x3x1x224xf32, #tpu.memory_space<vmem>>, vector<1x1x1x224xf32>
    %88 = vector.shape_cast %87 : vector<1x1x1x224xf32> to vector<1x224xf32>
    %89 = vector.broadcast %88 : vector<1x224xf32> to vector<16x224xf32>
    %90 = arith.addf %86, %89 : vector<16x224xf32>
    %91 = vector.extract_strided_slice %90 {offsets = [0, 0], sizes = [16, 32], strides = [1, 1]} : vector<16x224xf32> to vector<16x32xf32>
    %92 = arith.truncf %91 : vector<16x32xf32> to vector<16x32xbf16>
    %93 = vector.extract_strided_slice %90 {offsets = [0, 32], sizes = [16, 32], strides = [1, 1]} : vector<16x224xf32> to vector<16x32xf32>
    %94 = arith.truncf %93 : vector<16x32xf32> to vector<16x32xbf16>
    %95 = vector.extract_strided_slice %90 {offsets = [0, 64], sizes = [16, 32], strides = [1, 1]} : vector<16x224xf32> to vector<16x32xf32>
    %96 = arith.truncf %95 : vector<16x32xf32> to vector<16x32xbf16>
    %97 = vector.extract_strided_slice %90 {offsets = [0, 96], sizes = [16, 32], strides = [1, 1]} : vector<16x224xf32> to vector<16x32xf32>
    %98 = arith.truncf %97 : vector<16x32xf32> to vector<16x32xbf16>
    %99 = vector.extract_strided_slice %90 {offsets = [0, 128], sizes = [16, 32], strides = [1, 1]} : vector<16x224xf32> to vector<16x32xf32>
    %100 = arith.truncf %99 : vector<16x32xf32> to vector<16x32xbf16>
    %101 = arith.truncf %64 : vector<8x32xf32> to vector<8x32xbf16>
    %c0_64 = arith.constant 0 : index
    %c2_65 = arith.constant 2 : index
    %c0_66 = arith.constant 0 : index
    %c0_67 = arith.constant 0 : index
    %102 = vector.load %arg3[%c0_64, %c2_65, %c0_66, %c0_67] : memref<2x3x32x224xbf16, #tpu.memory_space<vmem>>, vector<1x1x32x224xbf16>
    %103 = vector.shape_cast %102 : vector<1x1x32x224xbf16> to vector<32x224xbf16>
    %cst_68 = arith.constant dense<0.000000e+00> : vector<8x224xf32>
    %104 = tpu.matmul %101, %103, %cst_68 {dimension_numbers = #tpu.dot_dimension_numbers<[1], [0], [0], [1], [0, 0, 1, 1], [], []>} : vector<8x32xbf16>, vector<32x224xbf16>, vector<8x224xf32> -> vector<8x224xf32>
    %c0_69 = arith.constant 0 : index
    %c2_70 = arith.constant 2 : index
    %c0_71 = arith.constant 0 : index
    %c0_72 = arith.constant 0 : index
    %105 = vector.load %arg4[%c0_69, %c2_70, %c0_71, %c0_72] : memref<2x3x1x224xf32, #tpu.memory_space<vmem>>, vector<1x1x1x224xf32>
    %106 = vector.shape_cast %105 : vector<1x1x1x224xf32> to vector<1x224xf32>
    %107 = vector.broadcast %106 : vector<1x224xf32> to vector<8x224xf32>
    %108 = arith.addf %104, %107 : vector<8x224xf32>
    %109 = vector.extract_strided_slice %108 {offsets = [0, 0], sizes = [8, 32], strides = [1, 1]} : vector<8x224xf32> to vector<8x32xf32>
    %110 = arith.truncf %109 : vector<8x32xf32> to vector<8x32xbf16>
    %111 = vector.extract_strided_slice %108 {offsets = [0, 32], sizes = [8, 32], strides = [1, 1]} : vector<8x224xf32> to vector<8x32xf32>
    %112 = arith.truncf %111 : vector<8x32xf32> to vector<8x32xbf16>
    %113 = vector.extract_strided_slice %108 {offsets = [0, 64], sizes = [8, 32], strides = [1, 1]} : vector<8x224xf32> to vector<8x32xf32>
    %114 = arith.truncf %113 : vector<8x32xf32> to vector<8x32xbf16>
    %115 = vector.extract_strided_slice %108 {offsets = [0, 96], sizes = [8, 32], strides = [1, 1]} : vector<8x224xf32> to vector<8x32xf32>
    %116 = arith.truncf %115 : vector<8x32xf32> to vector<8x32xbf16>
    %117 = vector.extract_strided_slice %108 {offsets = [0, 128], sizes = [8, 32], strides = [1, 1]} : vector<8x224xf32> to vector<8x32xf32>
    %118 = arith.truncf %117 : vector<8x32xf32> to vector<8x32xbf16>
    %119 = vector.extract_strided_slice %108 {offsets = [0, 160], sizes = [8, 32], strides = [1, 1]} : vector<8x224xf32> to vector<8x32xf32>
    %120 = arith.truncf %119 : vector<8x32xf32> to vector<8x32xbf16>
    %121 = vector.extract_strided_slice %108 {offsets = [0, 192], sizes = [8, 32], strides = [1, 1]} : vector<8x224xf32> to vector<8x32xf32>
    %122 = arith.truncf %121 : vector<8x32xf32> to vector<8x32xbf16>
    %cst_73 = arith.constant 0.000000e+00 : bf16
    %123 = vector.shape_cast %5 : vector<1x32xi1> to vector<1x32xi1>
    %124 = vector.broadcast %123 : vector<1x32xi1> to vector<16x32xi1>
    %125 = vector.broadcast %cst_73 : bf16 to vector<16x32xbf16>
    %126 = arith.select %124, %74, %125 : vector<16x32xi1>, vector<16x32xbf16>
    %cst_74 = arith.constant 0.000000e+00 : bf16
    %127 = vector.shape_cast %10 : vector<1x32xi1> to vector<1x32xi1>
    %128 = vector.broadcast %127 : vector<1x32xi1> to vector<16x32xi1>
    %129 = vector.broadcast %cst_74 : bf16 to vector<16x32xbf16>
    %130 = arith.select %128, %74, %129 : vector<16x32xi1>, vector<16x32xbf16>
    %cst_75 = arith.constant 0.000000e+00 : bf16
    %131 = vector.shape_cast %5 : vector<1x32xi1> to vector<1x32xi1>
    %132 = vector.broadcast %131 : vector<1x32xi1> to vector<16x32xi1>
    %133 = vector.broadcast %cst_75 : bf16 to vector<16x32xbf16>
    %134 = arith.select %132, %92, %133 : vector<16x32xi1>, vector<16x32xbf16>
    %cst_76 = arith.constant 0.000000e+00 : bf16
    %135 = vector.shape_cast %10 : vector<1x32xi1> to vector<1x32xi1>
    %136 = vector.broadcast %135 : vector<1x32xi1> to vector<16x32xi1>
    %137 = vector.broadcast %cst_76 : bf16 to vector<16x32xbf16>
    %138 = arith.select %136, %92, %137 : vector<16x32xi1>, vector<16x32xbf16>
    %cst_77 = arith.constant 0.000000e+00 : bf16
    %139 = vector.shape_cast %5 : vector<1x32xi1> to vector<1x32xi1>
    %140 = vector.broadcast %139 : vector<1x32xi1> to vector<8x32xi1>
    %141 = vector.broadcast %cst_77 : bf16 to vector<8x32xbf16>
    %142 = arith.select %140, %110, %141 : vector<8x32xi1>, vector<8x32xbf16>
    %cst_78 = arith.constant 0.000000e+00 : bf16
    %143 = vector.shape_cast %10 : vector<1x32xi1> to vector<1x32xi1>
    %144 = vector.broadcast %143 : vector<1x32xi1> to vector<8x32xi1>
    %145 = vector.broadcast %cst_78 : bf16 to vector<8x32xbf16>
    %146 = arith.select %144, %110, %145 : vector<8x32xi1>, vector<8x32xbf16>
    %cst_79 = arith.constant 0.000000e+00 : f32
    %147 = vector.broadcast %cst_79 : f32 to vector<16x32xf32>
    %cst_80 = arith.constant 0.000000e+00 : f32
    %148 = vector.broadcast %cst_80 : f32 to vector<16x32xf32>
    %cst_81 = arith.constant 0.000000e+00 : f32
    %149 = vector.broadcast %cst_81 : f32 to vector<8x32xf32>
    %cst_82 = arith.constant dense<0.000000e+00> : vector<16x16xf32>
    %150 = tpu.matmul %126, %76, %cst_82 {dimension_numbers = #tpu.dot_dimension_numbers<[1], [1], [0], [0], [0, 0, 1, 0], [], []>} : vector<16x32xbf16>, vector<16x32xbf16>, vector<16x16xf32> -> vector<16x16xf32>
    %cst_83 = arith.constant -1.000000e+30 : f32
    %151 = vector.broadcast %cst_83 : f32 to vector<16x16xf32>
    %152 = arith.select %19, %150, %151 : vector<16x16xi1>, vector<16x16xf32>
    %cst_84 = arith.constant dense<0xFF800000> : vector<16xf32>
    %153 = vector.multi_reduction <maximumf>, %152, %cst_84 [1] : vector<16x16xf32> to vector<16xf32>
    %154 = vector.shape_cast %153 : vector<16xf32> to vector<16x1xf32>
    %155 = vector.broadcast %154 : vector<16x1xf32> to vector<16x16xf32>
    %156 = arith.subf %152, %155 : vector<16x16xf32>
    %157 = math.exp %156 : vector<16x16xf32>
    %158 = arith.mulf %157, %11 : vector<16x16xf32>
    %cst_85 = arith.constant dense<0.000000e+00> : vector<16xf32>
    %159 = vector.multi_reduction <add>, %158, %cst_85 [1] : vector<16x16xf32> to vector<16xf32>
    %160 = vector.shape_cast %159 : vector<16xf32> to vector<16x1xf32>
    %cst_86 = arith.constant 9.99999968E-21 : f32
    %161 = vector.broadcast %cst_86 : f32 to vector<16x1xf32>
    %162 = arith.maximumf %160, %161 : vector<16x1xf32>
    %163 = tpu.reciprocal %162 {approx = true} : vector<16x1xf32> -> vector<16x1xf32>
    %164 = vector.broadcast %163 : vector<16x1xf32> to vector<16x16xf32>
    %165 = arith.mulf %158, %164 : vector<16x16xf32>
    %166 = arith.truncf %165 : vector<16x16xf32> to vector<16x16xbf16>
    %cst_87 = arith.constant 0.000000e+00 : bf16
    %167 = vector.shape_cast %5 : vector<1x32xi1> to vector<1x32xi1>
    %168 = vector.broadcast %167 : vector<1x32xi1> to vector<16x32xi1>
    %169 = vector.broadcast %cst_87 : bf16 to vector<16x32xbf16>
    %170 = arith.select %168, %78, %169 : vector<16x32xi1>, vector<16x32xbf16>
    %cst_88 = arith.constant dense<0.000000e+00> : vector<16x32xf32>
    %171 = tpu.matmul %166, %170, %cst_88 {dimension_numbers = #tpu.dot_dimension_numbers<[1], [0], [0], [1], [0, 0, 1, 1], [], []>} : vector<16x16xbf16>, vector<16x32xbf16>, vector<16x32xf32> -> vector<16x32xf32>
    %172 = arith.addf %147, %171 : vector<16x32xf32>
    %cst_89 = arith.constant dense<0.000000e+00> : vector<16x16xf32>
    %173 = tpu.matmul %130, %76, %cst_89 {dimension_numbers = #tpu.dot_dimension_numbers<[1], [1], [0], [0], [0, 0, 1, 0], [], []>} : vector<16x32xbf16>, vector<16x32xbf16>, vector<16x16xf32> -> vector<16x16xf32>
    %cst_90 = arith.constant -1.000000e+30 : f32
    %174 = vector.broadcast %cst_90 : f32 to vector<16x16xf32>
    %175 = arith.select %19, %173, %174 : vector<16x16xi1>, vector<16x16xf32>
    %cst_91 = arith.constant dense<0xFF800000> : vector<16xf32>
    %176 = vector.multi_reduction <maximumf>, %175, %cst_91 [1] : vector<16x16xf32> to vector<16xf32>
    %177 = vector.shape_cast %176 : vector<16xf32> to vector<16x1xf32>
    %178 = vector.broadcast %177 : vector<16x1xf32> to vector<16x16xf32>
    %179 = arith.subf %175, %178 : vector<16x16xf32>
    %180 = math.exp %179 : vector<16x16xf32>
    %181 = arith.mulf %180, %11 : vector<16x16xf32>
    %cst_92 = arith.constant dense<0.000000e+00> : vector<16xf32>
    %182 = vector.multi_reduction <add>, %181, %cst_92 [1] : vector<16x16xf32> to vector<16xf32>
    %183 = vector.shape_cast %182 : vector<16xf32> to vector<16x1xf32>
    %cst_93 = arith.constant 9.99999968E-21 : f32
    %184 = vector.broadcast %cst_93 : f32 to vector<16x1xf32>
    %185 = arith.maximumf %183, %184 : vector<16x1xf32>
    %186 = tpu.reciprocal %185 {approx = true} : vector<16x1xf32> -> vector<16x1xf32>
    %187 = vector.broadcast %186 : vector<16x1xf32> to vector<16x16xf32>
    %188 = arith.mulf %181, %187 : vector<16x16xf32>
    %189 = arith.truncf %188 : vector<16x16xf32> to vector<16x16xbf16>
    %cst_94 = arith.constant 0.000000e+00 : bf16
    %190 = vector.shape_cast %10 : vector<1x32xi1> to vector<1x32xi1>
    %191 = vector.broadcast %190 : vector<1x32xi1> to vector<16x32xi1>
    %192 = vector.broadcast %cst_94 : bf16 to vector<16x32xbf16>
    %193 = arith.select %191, %78, %192 : vector<16x32xi1>, vector<16x32xbf16>
    %cst_95 = arith.constant dense<0.000000e+00> : vector<16x32xf32>
    %194 = tpu.matmul %189, %193, %cst_95 {dimension_numbers = #tpu.dot_dimension_numbers<[1], [0], [0], [1], [0, 0, 1, 1], [], []>} : vector<16x16xbf16>, vector<16x32xbf16>, vector<16x32xf32> -> vector<16x32xf32>
    %195 = arith.addf %172, %194 : vector<16x32xf32>
    %cst_96 = arith.constant dense<0.000000e+00> : vector<16x16xf32>
    %196 = tpu.matmul %134, %94, %cst_96 {dimension_numbers = #tpu.dot_dimension_numbers<[1], [1], [0], [0], [0, 0, 1, 0], [], []>} : vector<16x32xbf16>, vector<16x32xbf16>, vector<16x16xf32> -> vector<16x16xf32>
    %cst_97 = arith.constant -1.000000e+30 : f32
    %197 = vector.broadcast %cst_97 : f32 to vector<16x16xf32>
    %198 = arith.select %21, %196, %197 : vector<16x16xi1>, vector<16x16xf32>
    %cst_98 = arith.constant dense<0xFF800000> : vector<16xf32>
    %199 = vector.multi_reduction <maximumf>, %198, %cst_98 [1] : vector<16x16xf32> to vector<16xf32>
    %200 = vector.shape_cast %199 : vector<16xf32> to vector<16x1xf32>
    %201 = vector.broadcast %200 : vector<16x1xf32> to vector<16x16xf32>
    %202 = arith.subf %198, %201 : vector<16x16xf32>
    %203 = math.exp %202 : vector<16x16xf32>
    %204 = arith.mulf %203, %12 : vector<16x16xf32>
    %cst_99 = arith.constant dense<0.000000e+00> : vector<16xf32>
    %205 = vector.multi_reduction <add>, %204, %cst_99 [1] : vector<16x16xf32> to vector<16xf32>
    %206 = vector.shape_cast %205 : vector<16xf32> to vector<16x1xf32>
    %cst_100 = arith.constant 9.99999968E-21 : f32
    %207 = vector.broadcast %cst_100 : f32 to vector<16x1xf32>
    %208 = arith.maximumf %206, %207 : vector<16x1xf32>
    %209 = tpu.reciprocal %208 {approx = true} : vector<16x1xf32> -> vector<16x1xf32>
    %210 = vector.broadcast %209 : vector<16x1xf32> to vector<16x16xf32>
    %211 = arith.mulf %204, %210 : vector<16x16xf32>
    %212 = arith.truncf %211 : vector<16x16xf32> to vector<16x16xbf16>
    %cst_101 = arith.constant 0.000000e+00 : bf16
    %213 = vector.shape_cast %5 : vector<1x32xi1> to vector<1x32xi1>
    %214 = vector.broadcast %213 : vector<1x32xi1> to vector<16x32xi1>
    %215 = vector.broadcast %cst_101 : bf16 to vector<16x32xbf16>
    %216 = arith.select %214, %96, %215 : vector<16x32xi1>, vector<16x32xbf16>
    %cst_102 = arith.constant dense<0.000000e+00> : vector<16x32xf32>
    %217 = tpu.matmul %212, %216, %cst_102 {dimension_numbers = #tpu.dot_dimension_numbers<[1], [0], [0], [1], [0, 0, 1, 1], [], []>} : vector<16x16xbf16>, vector<16x32xbf16>, vector<16x32xf32> -> vector<16x32xf32>
    %218 = arith.addf %148, %217 : vector<16x32xf32>
    %cst_103 = arith.constant dense<0.000000e+00> : vector<16x16xf32>
    %219 = tpu.matmul %138, %94, %cst_103 {dimension_numbers = #tpu.dot_dimension_numbers<[1], [1], [0], [0], [0, 0, 1, 0], [], []>} : vector<16x32xbf16>, vector<16x32xbf16>, vector<16x16xf32> -> vector<16x16xf32>
    %cst_104 = arith.constant -1.000000e+30 : f32
    %220 = vector.broadcast %cst_104 : f32 to vector<16x16xf32>
    %221 = arith.select %21, %219, %220 : vector<16x16xi1>, vector<16x16xf32>
    %cst_105 = arith.constant dense<0xFF800000> : vector<16xf32>
    %222 = vector.multi_reduction <maximumf>, %221, %cst_105 [1] : vector<16x16xf32> to vector<16xf32>
    %223 = vector.shape_cast %222 : vector<16xf32> to vector<16x1xf32>
    %224 = vector.broadcast %223 : vector<16x1xf32> to vector<16x16xf32>
    %225 = arith.subf %221, %224 : vector<16x16xf32>
    %226 = math.exp %225 : vector<16x16xf32>
    %227 = arith.mulf %226, %12 : vector<16x16xf32>
    %cst_106 = arith.constant dense<0.000000e+00> : vector<16xf32>
    %228 = vector.multi_reduction <add>, %227, %cst_106 [1] : vector<16x16xf32> to vector<16xf32>
    %229 = vector.shape_cast %228 : vector<16xf32> to vector<16x1xf32>
    %cst_107 = arith.constant 9.99999968E-21 : f32
    %230 = vector.broadcast %cst_107 : f32 to vector<16x1xf32>
    %231 = arith.maximumf %229, %230 : vector<16x1xf32>
    %232 = tpu.reciprocal %231 {approx = true} : vector<16x1xf32> -> vector<16x1xf32>
    %233 = vector.broadcast %232 : vector<16x1xf32> to vector<16x16xf32>
    %234 = arith.mulf %227, %233 : vector<16x16xf32>
    %235 = arith.truncf %234 : vector<16x16xf32> to vector<16x16xbf16>
    %cst_108 = arith.constant 0.000000e+00 : bf16
    %236 = vector.shape_cast %10 : vector<1x32xi1> to vector<1x32xi1>
    %237 = vector.broadcast %236 : vector<1x32xi1> to vector<16x32xi1>
    %238 = vector.broadcast %cst_108 : bf16 to vector<16x32xbf16>
    %239 = arith.select %237, %96, %238 : vector<16x32xi1>, vector<16x32xbf16>
    %cst_109 = arith.constant dense<0.000000e+00> : vector<16x32xf32>
    %240 = tpu.matmul %235, %239, %cst_109 {dimension_numbers = #tpu.dot_dimension_numbers<[1], [0], [0], [1], [0, 0, 1, 1], [], []>} : vector<16x16xbf16>, vector<16x32xbf16>, vector<16x32xf32> -> vector<16x32xf32>
    %241 = arith.addf %218, %240 : vector<16x32xf32>
    %cst_110 = arith.constant dense<0.000000e+00> : vector<8x8xf32>
    %242 = tpu.matmul %142, %112, %cst_110 {dimension_numbers = #tpu.dot_dimension_numbers<[1], [1], [0], [0], [0, 0, 1, 0], [], []>} : vector<8x32xbf16>, vector<8x32xbf16>, vector<8x8xf32> -> vector<8x8xf32>
    %cst_111 = arith.constant -1.000000e+30 : f32
    %243 = vector.broadcast %cst_111 : f32 to vector<8x8xf32>
    %244 = arith.select %23, %242, %243 : vector<8x8xi1>, vector<8x8xf32>
    %cst_112 = arith.constant dense<0xFF800000> : vector<8xf32>
    %245 = vector.multi_reduction <maximumf>, %244, %cst_112 [1] : vector<8x8xf32> to vector<8xf32>
    %246 = vector.shape_cast %245 : vector<8xf32> to vector<8x1xf32>
    %247 = vector.broadcast %246 : vector<8x1xf32> to vector<8x8xf32>
    %248 = arith.subf %244, %247 : vector<8x8xf32>
    %249 = math.exp %248 : vector<8x8xf32>
    %250 = arith.mulf %249, %13 : vector<8x8xf32>
    %cst_113 = arith.constant dense<0.000000e+00> : vector<8xf32>
    %251 = vector.multi_reduction <add>, %250, %cst_113 [1] : vector<8x8xf32> to vector<8xf32>
    %252 = vector.shape_cast %251 : vector<8xf32> to vector<8x1xf32>
    %cst_114 = arith.constant 9.99999968E-21 : f32
    %253 = vector.broadcast %cst_114 : f32 to vector<8x1xf32>
    %254 = arith.maximumf %252, %253 : vector<8x1xf32>
    %255 = tpu.reciprocal %254 {approx = true} : vector<8x1xf32> -> vector<8x1xf32>
    %256 = vector.broadcast %255 : vector<8x1xf32> to vector<8x8xf32>
    %257 = arith.mulf %250, %256 : vector<8x8xf32>
    %258 = arith.truncf %257 : vector<8x8xf32> to vector<8x8xbf16>
    %cst_115 = arith.constant 0.000000e+00 : bf16
    %259 = vector.shape_cast %5 : vector<1x32xi1> to vector<1x32xi1>
    %260 = vector.broadcast %259 : vector<1x32xi1> to vector<8x32xi1>
    %261 = vector.broadcast %cst_115 : bf16 to vector<8x32xbf16>
    %262 = arith.select %260, %114, %261 : vector<8x32xi1>, vector<8x32xbf16>
    %cst_116 = arith.constant dense<0.000000e+00> : vector<8x32xf32>
    %263 = tpu.matmul %258, %262, %cst_116 {dimension_numbers = #tpu.dot_dimension_numbers<[1], [0], [0], [1], [0, 0, 1, 1], [], []>} : vector<8x8xbf16>, vector<8x32xbf16>, vector<8x32xf32> -> vector<8x32xf32>
    %264 = arith.addf %149, %263 : vector<8x32xf32>
    %cst_117 = arith.constant dense<0.000000e+00> : vector<8x8xf32>
    %265 = tpu.matmul %146, %112, %cst_117 {dimension_numbers = #tpu.dot_dimension_numbers<[1], [1], [0], [0], [0, 0, 1, 0], [], []>} : vector<8x32xbf16>, vector<8x32xbf16>, vector<8x8xf32> -> vector<8x8xf32>
    %cst_118 = arith.constant -1.000000e+30 : f32
    %266 = vector.broadcast %cst_118 : f32 to vector<8x8xf32>
    %267 = arith.select %23, %265, %266 : vector<8x8xi1>, vector<8x8xf32>
    %cst_119 = arith.constant dense<0xFF800000> : vector<8xf32>
    %268 = vector.multi_reduction <maximumf>, %267, %cst_119 [1] : vector<8x8xf32> to vector<8xf32>
    %269 = vector.shape_cast %268 : vector<8xf32> to vector<8x1xf32>
    %270 = vector.broadcast %269 : vector<8x1xf32> to vector<8x8xf32>
    %271 = arith.subf %267, %270 : vector<8x8xf32>
    %272 = math.exp %271 : vector<8x8xf32>
    %273 = arith.mulf %272, %13 : vector<8x8xf32>
    %cst_120 = arith.constant dense<0.000000e+00> : vector<8xf32>
    %274 = vector.multi_reduction <add>, %273, %cst_120 [1] : vector<8x8xf32> to vector<8xf32>
    %275 = vector.shape_cast %274 : vector<8xf32> to vector<8x1xf32>
    %cst_121 = arith.constant 9.99999968E-21 : f32
    %276 = vector.broadcast %cst_121 : f32 to vector<8x1xf32>
    %277 = arith.maximumf %275, %276 : vector<8x1xf32>
    %278 = tpu.reciprocal %277 {approx = true} : vector<8x1xf32> -> vector<8x1xf32>
    %279 = vector.broadcast %278 : vector<8x1xf32> to vector<8x8xf32>
    %280 = arith.mulf %273, %279 : vector<8x8xf32>
    %281 = arith.truncf %280 : vector<8x8xf32> to vector<8x8xbf16>
    %cst_122 = arith.constant 0.000000e+00 : bf16
    %282 = vector.shape_cast %10 : vector<1x32xi1> to vector<1x32xi1>
    %283 = vector.broadcast %282 : vector<1x32xi1> to vector<8x32xi1>
    %284 = vector.broadcast %cst_122 : bf16 to vector<8x32xbf16>
    %285 = arith.select %283, %114, %284 : vector<8x32xi1>, vector<8x32xbf16>
    %cst_123 = arith.constant dense<0.000000e+00> : vector<8x32xf32>
    %286 = tpu.matmul %281, %285, %cst_123 {dimension_numbers = #tpu.dot_dimension_numbers<[1], [0], [0], [1], [0, 0, 1, 1], [], []>} : vector<8x8xbf16>, vector<8x32xbf16>, vector<8x32xf32> -> vector<8x32xf32>
    %287 = arith.addf %264, %286 : vector<8x32xf32>
    %cst_124 = arith.constant dense<0.000000e+00> : vector<8x16xf32>
    %288 = tpu.matmul %142, %80, %cst_124 {dimension_numbers = #tpu.dot_dimension_numbers<[1], [1], [0], [0], [0, 0, 1, 0], [], []>} : vector<8x32xbf16>, vector<16x32xbf16>, vector<8x16xf32> -> vector<8x16xf32>
    %cst_125 = arith.constant -1.000000e+30 : f32
    %289 = vector.broadcast %cst_125 : f32 to vector<8x16xf32>
    %290 = arith.select %25, %288, %289 : vector<8x16xi1>, vector<8x16xf32>
    %cst_126 = arith.constant dense<0xFF800000> : vector<8xf32>
    %291 = vector.multi_reduction <maximumf>, %290, %cst_126 [1] : vector<8x16xf32> to vector<8xf32>
    %292 = vector.shape_cast %291 : vector<8xf32> to vector<8x1xf32>
    %293 = vector.broadcast %292 : vector<8x1xf32> to vector<8x16xf32>
    %294 = arith.subf %290, %293 : vector<8x16xf32>
    %295 = math.exp %294 : vector<8x16xf32>
    %296 = arith.mulf %295, %14 : vector<8x16xf32>
    %cst_127 = arith.constant dense<0.000000e+00> : vector<8xf32>
    %297 = vector.multi_reduction <add>, %296, %cst_127 [1] : vector<8x16xf32> to vector<8xf32>
    %298 = vector.shape_cast %297 : vector<8xf32> to vector<8x1xf32>
    %cst_128 = arith.constant 9.99999968E-21 : f32
    %299 = vector.broadcast %cst_128 : f32 to vector<8x1xf32>
    %300 = arith.maximumf %298, %299 : vector<8x1xf32>
    %301 = tpu.reciprocal %300 {approx = true} : vector<8x1xf32> -> vector<8x1xf32>
    %302 = vector.broadcast %301 : vector<8x1xf32> to vector<8x16xf32>
    %303 = arith.mulf %296, %302 : vector<8x16xf32>
    %304 = arith.truncf %303 : vector<8x16xf32> to vector<8x16xbf16>
    %cst_129 = arith.constant 0.000000e+00 : bf16
    %305 = vector.shape_cast %5 : vector<1x32xi1> to vector<1x32xi1>
    %306 = vector.broadcast %305 : vector<1x32xi1> to vector<16x32xi1>
    %307 = vector.broadcast %cst_129 : bf16 to vector<16x32xbf16>
    %308 = arith.select %306, %82, %307 : vector<16x32xi1>, vector<16x32xbf16>
    %cst_130 = arith.constant dense<0.000000e+00> : vector<8x32xf32>
    %309 = tpu.matmul %304, %308, %cst_130 {dimension_numbers = #tpu.dot_dimension_numbers<[1], [0], [0], [1], [0, 0, 1, 1], [], []>} : vector<8x16xbf16>, vector<16x32xbf16>, vector<8x32xf32> -> vector<8x32xf32>
    %310 = arith.addf %287, %309 : vector<8x32xf32>
    %cst_131 = arith.constant dense<0.000000e+00> : vector<8x16xf32>
    %311 = tpu.matmul %146, %80, %cst_131 {dimension_numbers = #tpu.dot_dimension_numbers<[1], [1], [0], [0], [0, 0, 1, 0], [], []>} : vector<8x32xbf16>, vector<16x32xbf16>, vector<8x16xf32> -> vector<8x16xf32>
    %cst_132 = arith.constant -1.000000e+30 : f32
    %312 = vector.broadcast %cst_132 : f32 to vector<8x16xf32>
    %313 = arith.select %25, %311, %312 : vector<8x16xi1>, vector<8x16xf32>
    %cst_133 = arith.constant dense<0xFF800000> : vector<8xf32>
    %314 = vector.multi_reduction <maximumf>, %313, %cst_133 [1] : vector<8x16xf32> to vector<8xf32>
    %315 = vector.shape_cast %314 : vector<8xf32> to vector<8x1xf32>
    %316 = vector.broadcast %315 : vector<8x1xf32> to vector<8x16xf32>
    %317 = arith.subf %313, %316 : vector<8x16xf32>
    %318 = math.exp %317 : vector<8x16xf32>
    %319 = arith.mulf %318, %14 : vector<8x16xf32>
    %cst_134 = arith.constant dense<0.000000e+00> : vector<8xf32>
    %320 = vector.multi_reduction <add>, %319, %cst_134 [1] : vector<8x16xf32> to vector<8xf32>
    %321 = vector.shape_cast %320 : vector<8xf32> to vector<8x1xf32>
    %cst_135 = arith.constant 9.99999968E-21 : f32
    %322 = vector.broadcast %cst_135 : f32 to vector<8x1xf32>
    %323 = arith.maximumf %321, %322 : vector<8x1xf32>
    %324 = tpu.reciprocal %323 {approx = true} : vector<8x1xf32> -> vector<8x1xf32>
    %325 = vector.broadcast %324 : vector<8x1xf32> to vector<8x16xf32>
    %326 = arith.mulf %319, %325 : vector<8x16xf32>
    %327 = arith.truncf %326 : vector<8x16xf32> to vector<8x16xbf16>
    %cst_136 = arith.constant 0.000000e+00 : bf16
    %328 = vector.shape_cast %10 : vector<1x32xi1> to vector<1x32xi1>
    %329 = vector.broadcast %328 : vector<1x32xi1> to vector<16x32xi1>
    %330 = vector.broadcast %cst_136 : bf16 to vector<16x32xbf16>
    %331 = arith.select %329, %82, %330 : vector<16x32xi1>, vector<16x32xbf16>
    %cst_137 = arith.constant dense<0.000000e+00> : vector<8x32xf32>
    %332 = tpu.matmul %327, %331, %cst_137 {dimension_numbers = #tpu.dot_dimension_numbers<[1], [0], [0], [1], [0, 0, 1, 1], [], []>} : vector<8x16xbf16>, vector<16x32xbf16>, vector<8x32xf32> -> vector<8x32xf32>
    %333 = arith.addf %310, %332 : vector<8x32xf32>
    %cst_138 = arith.constant dense<0.000000e+00> : vector<8x16xf32>
    %334 = tpu.matmul %142, %98, %cst_138 {dimension_numbers = #tpu.dot_dimension_numbers<[1], [1], [0], [0], [0, 0, 1, 0], [], []>} : vector<8x32xbf16>, vector<16x32xbf16>, vector<8x16xf32> -> vector<8x16xf32>
    %cst_139 = arith.constant -1.000000e+30 : f32
    %335 = vector.broadcast %cst_139 : f32 to vector<8x16xf32>
    %336 = arith.select %27, %334, %335 : vector<8x16xi1>, vector<8x16xf32>
    %cst_140 = arith.constant dense<0xFF800000> : vector<8xf32>
    %337 = vector.multi_reduction <maximumf>, %336, %cst_140 [1] : vector<8x16xf32> to vector<8xf32>
    %338 = vector.shape_cast %337 : vector<8xf32> to vector<8x1xf32>
    %339 = vector.broadcast %338 : vector<8x1xf32> to vector<8x16xf32>
    %340 = arith.subf %336, %339 : vector<8x16xf32>
    %341 = math.exp %340 : vector<8x16xf32>
    %342 = arith.mulf %341, %15 : vector<8x16xf32>
    %cst_141 = arith.constant dense<0.000000e+00> : vector<8xf32>
    %343 = vector.multi_reduction <add>, %342, %cst_141 [1] : vector<8x16xf32> to vector<8xf32>
    %344 = vector.shape_cast %343 : vector<8xf32> to vector<8x1xf32>
    %cst_142 = arith.constant 9.99999968E-21 : f32
    %345 = vector.broadcast %cst_142 : f32 to vector<8x1xf32>
    %346 = arith.maximumf %344, %345 : vector<8x1xf32>
    %347 = tpu.reciprocal %346 {approx = true} : vector<8x1xf32> -> vector<8x1xf32>
    %348 = vector.broadcast %347 : vector<8x1xf32> to vector<8x16xf32>
    %349 = arith.mulf %342, %348 : vector<8x16xf32>
    %350 = arith.truncf %349 : vector<8x16xf32> to vector<8x16xbf16>
    %cst_143 = arith.constant 0.000000e+00 : bf16
    %351 = vector.shape_cast %5 : vector<1x32xi1> to vector<1x32xi1>
    %352 = vector.broadcast %351 : vector<1x32xi1> to vector<16x32xi1>
    %353 = vector.broadcast %cst_143 : bf16 to vector<16x32xbf16>
    %354 = arith.select %352, %100, %353 : vector<16x32xi1>, vector<16x32xbf16>
    %cst_144 = arith.constant dense<0.000000e+00> : vector<8x32xf32>
    %355 = tpu.matmul %350, %354, %cst_144 {dimension_numbers = #tpu.dot_dimension_numbers<[1], [0], [0], [1], [0, 0, 1, 1], [], []>} : vector<8x16xbf16>, vector<16x32xbf16>, vector<8x32xf32> -> vector<8x32xf32>
    %356 = arith.addf %333, %355 : vector<8x32xf32>
    %cst_145 = arith.constant dense<0.000000e+00> : vector<8x16xf32>
    %357 = tpu.matmul %146, %98, %cst_145 {dimension_numbers = #tpu.dot_dimension_numbers<[1], [1], [0], [0], [0, 0, 1, 0], [], []>} : vector<8x32xbf16>, vector<16x32xbf16>, vector<8x16xf32> -> vector<8x16xf32>
    %cst_146 = arith.constant -1.000000e+30 : f32
    %358 = vector.broadcast %cst_146 : f32 to vector<8x16xf32>
    %359 = arith.select %27, %357, %358 : vector<8x16xi1>, vector<8x16xf32>
    %cst_147 = arith.constant dense<0xFF800000> : vector<8xf32>
    %360 = vector.multi_reduction <maximumf>, %359, %cst_147 [1] : vector<8x16xf32> to vector<8xf32>
    %361 = vector.shape_cast %360 : vector<8xf32> to vector<8x1xf32>
    %362 = vector.broadcast %361 : vector<8x1xf32> to vector<8x16xf32>
    %363 = arith.subf %359, %362 : vector<8x16xf32>
    %364 = math.exp %363 : vector<8x16xf32>
    %365 = arith.mulf %364, %15 : vector<8x16xf32>
    %cst_148 = arith.constant dense<0.000000e+00> : vector<8xf32>
    %366 = vector.multi_reduction <add>, %365, %cst_148 [1] : vector<8x16xf32> to vector<8xf32>
    %367 = vector.shape_cast %366 : vector<8xf32> to vector<8x1xf32>
    %cst_149 = arith.constant 9.99999968E-21 : f32
    %368 = vector.broadcast %cst_149 : f32 to vector<8x1xf32>
    %369 = arith.maximumf %367, %368 : vector<8x1xf32>
    %370 = tpu.reciprocal %369 {approx = true} : vector<8x1xf32> -> vector<8x1xf32>
    %371 = vector.broadcast %370 : vector<8x1xf32> to vector<8x16xf32>
    %372 = arith.mulf %365, %371 : vector<8x16xf32>
    %373 = arith.truncf %372 : vector<8x16xf32> to vector<8x16xbf16>
    %cst_150 = arith.constant 0.000000e+00 : bf16
    %374 = vector.shape_cast %10 : vector<1x32xi1> to vector<1x32xi1>
    %375 = vector.broadcast %374 : vector<1x32xi1> to vector<16x32xi1>
    %376 = vector.broadcast %cst_150 : bf16 to vector<16x32xbf16>
    %377 = arith.select %375, %100, %376 : vector<16x32xi1>, vector<16x32xbf16>
    %cst_151 = arith.constant dense<0.000000e+00> : vector<8x32xf32>
    %378 = tpu.matmul %373, %377, %cst_151 {dimension_numbers = #tpu.dot_dimension_numbers<[1], [0], [0], [1], [0, 0, 1, 1], [], []>} : vector<8x16xbf16>, vector<16x32xbf16>, vector<8x32xf32> -> vector<8x32xf32>
    %379 = arith.addf %356, %378 : vector<8x32xf32>
    %cst_152 = arith.constant dense<0.000000e+00> : vector<16x8xf32>
    %380 = tpu.matmul %126, %116, %cst_152 {dimension_numbers = #tpu.dot_dimension_numbers<[1], [1], [0], [0], [0, 0, 1, 0], [], []>} : vector<16x32xbf16>, vector<8x32xbf16>, vector<16x8xf32> -> vector<16x8xf32>
    %cst_153 = arith.constant -1.000000e+30 : f32
    %381 = vector.broadcast %cst_153 : f32 to vector<16x8xf32>
    %382 = arith.select %29, %380, %381 : vector<16x8xi1>, vector<16x8xf32>
    %cst_154 = arith.constant dense<0xFF800000> : vector<16xf32>
    %383 = vector.multi_reduction <maximumf>, %382, %cst_154 [1] : vector<16x8xf32> to vector<16xf32>
    %384 = vector.shape_cast %383 : vector<16xf32> to vector<16x1xf32>
    %385 = vector.broadcast %384 : vector<16x1xf32> to vector<16x8xf32>
    %386 = arith.subf %382, %385 : vector<16x8xf32>
    %387 = math.exp %386 : vector<16x8xf32>
    %388 = arith.mulf %387, %16 : vector<16x8xf32>
    %cst_155 = arith.constant dense<0.000000e+00> : vector<16xf32>
    %389 = vector.multi_reduction <add>, %388, %cst_155 [1] : vector<16x8xf32> to vector<16xf32>
    %390 = vector.shape_cast %389 : vector<16xf32> to vector<16x1xf32>
    %cst_156 = arith.constant 9.99999968E-21 : f32
    %391 = vector.broadcast %cst_156 : f32 to vector<16x1xf32>
    %392 = arith.maximumf %390, %391 : vector<16x1xf32>
    %393 = tpu.reciprocal %392 {approx = true} : vector<16x1xf32> -> vector<16x1xf32>
    %394 = vector.broadcast %393 : vector<16x1xf32> to vector<16x8xf32>
    %395 = arith.mulf %388, %394 : vector<16x8xf32>
    %396 = arith.truncf %395 : vector<16x8xf32> to vector<16x8xbf16>
    %cst_157 = arith.constant 0.000000e+00 : bf16
    %397 = vector.shape_cast %5 : vector<1x32xi1> to vector<1x32xi1>
    %398 = vector.broadcast %397 : vector<1x32xi1> to vector<8x32xi1>
    %399 = vector.broadcast %cst_157 : bf16 to vector<8x32xbf16>
    %400 = arith.select %398, %118, %399 : vector<8x32xi1>, vector<8x32xbf16>
    %cst_158 = arith.constant dense<0.000000e+00> : vector<16x32xf32>
    %401 = tpu.matmul %396, %400, %cst_158 {dimension_numbers = #tpu.dot_dimension_numbers<[1], [0], [0], [1], [0, 0, 1, 1], [], []>} : vector<16x8xbf16>, vector<8x32xbf16>, vector<16x32xf32> -> vector<16x32xf32>
    %402 = arith.addf %195, %401 : vector<16x32xf32>
    %cst_159 = arith.constant dense<0.000000e+00> : vector<16x8xf32>
    %403 = tpu.matmul %130, %116, %cst_159 {dimension_numbers = #tpu.dot_dimension_numbers<[1], [1], [0], [0], [0, 0, 1, 0], [], []>} : vector<16x32xbf16>, vector<8x32xbf16>, vector<16x8xf32> -> vector<16x8xf32>
    %cst_160 = arith.constant -1.000000e+30 : f32
    %404 = vector.broadcast %cst_160 : f32 to vector<16x8xf32>
    %405 = arith.select %29, %403, %404 : vector<16x8xi1>, vector<16x8xf32>
    %cst_161 = arith.constant dense<0xFF800000> : vector<16xf32>
    %406 = vector.multi_reduction <maximumf>, %405, %cst_161 [1] : vector<16x8xf32> to vector<16xf32>
    %407 = vector.shape_cast %406 : vector<16xf32> to vector<16x1xf32>
    %408 = vector.broadcast %407 : vector<16x1xf32> to vector<16x8xf32>
    %409 = arith.subf %405, %408 : vector<16x8xf32>
    %410 = math.exp %409 : vector<16x8xf32>
    %411 = arith.mulf %410, %16 : vector<16x8xf32>
    %cst_162 = arith.constant dense<0.000000e+00> : vector<16xf32>
    %412 = vector.multi_reduction <add>, %411, %cst_162 [1] : vector<16x8xf32> to vector<16xf32>
    %413 = vector.shape_cast %412 : vector<16xf32> to vector<16x1xf32>
    %cst_163 = arith.constant 9.99999968E-21 : f32
    %414 = vector.broadcast %cst_163 : f32 to vector<16x1xf32>
    %415 = arith.maximumf %413, %414 : vector<16x1xf32>
    %416 = tpu.reciprocal %415 {approx = true} : vector<16x1xf32> -> vector<16x1xf32>
    %417 = vector.broadcast %416 : vector<16x1xf32> to vector<16x8xf32>
    %418 = arith.mulf %411, %417 : vector<16x8xf32>
    %419 = arith.truncf %418 : vector<16x8xf32> to vector<16x8xbf16>
    %cst_164 = arith.constant 0.000000e+00 : bf16
    %420 = vector.shape_cast %10 : vector<1x32xi1> to vector<1x32xi1>
    %421 = vector.broadcast %420 : vector<1x32xi1> to vector<8x32xi1>
    %422 = vector.broadcast %cst_164 : bf16 to vector<8x32xbf16>
    %423 = arith.select %421, %118, %422 : vector<8x32xi1>, vector<8x32xbf16>
    %cst_165 = arith.constant dense<0.000000e+00> : vector<16x32xf32>
    %424 = tpu.matmul %419, %423, %cst_165 {dimension_numbers = #tpu.dot_dimension_numbers<[1], [0], [0], [1], [0, 0, 1, 1], [], []>} : vector<16x8xbf16>, vector<8x32xbf16>, vector<16x32xf32> -> vector<16x32xf32>
    %425 = arith.addf %402, %424 : vector<16x32xf32>
    %cst_166 = arith.constant dense<0.000000e+00> : vector<16x8xf32>
    %426 = tpu.matmul %134, %120, %cst_166 {dimension_numbers = #tpu.dot_dimension_numbers<[1], [1], [0], [0], [0, 0, 1, 0], [], []>} : vector<16x32xbf16>, vector<8x32xbf16>, vector<16x8xf32> -> vector<16x8xf32>
    %cst_167 = arith.constant -1.000000e+30 : f32
    %427 = vector.broadcast %cst_167 : f32 to vector<16x8xf32>
    %428 = arith.select %31, %426, %427 : vector<16x8xi1>, vector<16x8xf32>
    %cst_168 = arith.constant dense<0xFF800000> : vector<16xf32>
    %429 = vector.multi_reduction <maximumf>, %428, %cst_168 [1] : vector<16x8xf32> to vector<16xf32>
    %430 = vector.shape_cast %429 : vector<16xf32> to vector<16x1xf32>
    %431 = vector.broadcast %430 : vector<16x1xf32> to vector<16x8xf32>
    %432 = arith.subf %428, %431 : vector<16x8xf32>
    %433 = math.exp %432 : vector<16x8xf32>
    %434 = arith.mulf %433, %17 : vector<16x8xf32>
    %cst_169 = arith.constant dense<0.000000e+00> : vector<16xf32>
    %435 = vector.multi_reduction <add>, %434, %cst_169 [1] : vector<16x8xf32> to vector<16xf32>
    %436 = vector.shape_cast %435 : vector<16xf32> to vector<16x1xf32>
    %cst_170 = arith.constant 9.99999968E-21 : f32
    %437 = vector.broadcast %cst_170 : f32 to vector<16x1xf32>
    %438 = arith.maximumf %436, %437 : vector<16x1xf32>
    %439 = tpu.reciprocal %438 {approx = true} : vector<16x1xf32> -> vector<16x1xf32>
    %440 = vector.broadcast %439 : vector<16x1xf32> to vector<16x8xf32>
    %441 = arith.mulf %434, %440 : vector<16x8xf32>
    %442 = arith.truncf %441 : vector<16x8xf32> to vector<16x8xbf16>
    %cst_171 = arith.constant 0.000000e+00 : bf16
    %443 = vector.shape_cast %5 : vector<1x32xi1> to vector<1x32xi1>
    %444 = vector.broadcast %443 : vector<1x32xi1> to vector<8x32xi1>
    %445 = vector.broadcast %cst_171 : bf16 to vector<8x32xbf16>
    %446 = arith.select %444, %122, %445 : vector<8x32xi1>, vector<8x32xbf16>
    %cst_172 = arith.constant dense<0.000000e+00> : vector<16x32xf32>
    %447 = tpu.matmul %442, %446, %cst_172 {dimension_numbers = #tpu.dot_dimension_numbers<[1], [0], [0], [1], [0, 0, 1, 1], [], []>} : vector<16x8xbf16>, vector<8x32xbf16>, vector<16x32xf32> -> vector<16x32xf32>
    %448 = arith.addf %241, %447 : vector<16x32xf32>
    %cst_173 = arith.constant dense<0.000000e+00> : vector<16x8xf32>
    %449 = tpu.matmul %138, %120, %cst_173 {dimension_numbers = #tpu.dot_dimension_numbers<[1], [1], [0], [0], [0, 0, 1, 0], [], []>} : vector<16x32xbf16>, vector<8x32xbf16>, vector<16x8xf32> -> vector<16x8xf32>
    %cst_174 = arith.constant -1.000000e+30 : f32
    %450 = vector.broadcast %cst_174 : f32 to vector<16x8xf32>
    %451 = arith.select %31, %449, %450 : vector<16x8xi1>, vector<16x8xf32>
    %cst_175 = arith.constant dense<0xFF800000> : vector<16xf32>
    %452 = vector.multi_reduction <maximumf>, %451, %cst_175 [1] : vector<16x8xf32> to vector<16xf32>
    %453 = vector.shape_cast %452 : vector<16xf32> to vector<16x1xf32>
    %454 = vector.broadcast %453 : vector<16x1xf32> to vector<16x8xf32>
    %455 = arith.subf %451, %454 : vector<16x8xf32>
    %456 = math.exp %455 : vector<16x8xf32>
    %457 = arith.mulf %456, %17 : vector<16x8xf32>
    %cst_176 = arith.constant dense<0.000000e+00> : vector<16xf32>
    %458 = vector.multi_reduction <add>, %457, %cst_176 [1] : vector<16x8xf32> to vector<16xf32>
    %459 = vector.shape_cast %458 : vector<16xf32> to vector<16x1xf32>
    %cst_177 = arith.constant 9.99999968E-21 : f32
    %460 = vector.broadcast %cst_177 : f32 to vector<16x1xf32>
    %461 = arith.maximumf %459, %460 : vector<16x1xf32>
    %462 = tpu.reciprocal %461 {approx = true} : vector<16x1xf32> -> vector<16x1xf32>
    %463 = vector.broadcast %462 : vector<16x1xf32> to vector<16x8xf32>
    %464 = arith.mulf %457, %463 : vector<16x8xf32>
    %465 = arith.truncf %464 : vector<16x8xf32> to vector<16x8xbf16>
    %cst_178 = arith.constant 0.000000e+00 : bf16
    %466 = vector.shape_cast %10 : vector<1x32xi1> to vector<1x32xi1>
    %467 = vector.broadcast %466 : vector<1x32xi1> to vector<8x32xi1>
    %468 = vector.broadcast %cst_178 : bf16 to vector<8x32xbf16>
    %469 = arith.select %467, %122, %468 : vector<8x32xi1>, vector<8x32xbf16>
    %cst_179 = arith.constant dense<0.000000e+00> : vector<16x32xf32>
    %470 = tpu.matmul %465, %469, %cst_179 {dimension_numbers = #tpu.dot_dimension_numbers<[1], [0], [0], [1], [0, 0, 1, 1], [], []>} : vector<16x8xbf16>, vector<8x32xbf16>, vector<16x32xf32> -> vector<16x32xf32>
    %471 = arith.addf %448, %470 : vector<16x32xf32>
    %cst_180 = arith.constant 5.000000e-01 : f32
    %472 = vector.broadcast %cst_180 : f32 to vector<16x32xf32>
    %473 = arith.mulf %472, %425 : vector<16x32xf32>
    %474 = arith.mulf %425, %425 : vector<16x32xf32>
    %475 = arith.mulf %474, %425 : vector<16x32xf32>
    %cst_181 = arith.constant 4.471500e-02 : f32
    %476 = vector.broadcast %cst_181 : f32 to vector<16x32xf32>
    %477 = arith.mulf %476, %475 : vector<16x32xf32>
    %478 = arith.addf %425, %477 : vector<16x32xf32>
    %cst_182 = arith.constant 0.797884583 : f32
    %479 = vector.broadcast %cst_182 : f32 to vector<16x32xf32>
    %480 = arith.mulf %479, %478 : vector<16x32xf32>
    %481 = math.tanh %480 : vector<16x32xf32>
    %cst_183 = arith.constant 1.000000e+00 : f32
    %482 = vector.broadcast %cst_183 : f32 to vector<16x32xf32>
    %483 = arith.addf %482, %481 : vector<16x32xf32>
    %484 = arith.mulf %473, %483 : vector<16x32xf32>
    %485 = arith.truncf %484 : vector<16x32xf32> to vector<16x32xbf16>
    %c0_184 = arith.constant 0 : index
    %c0_185 = arith.constant 0 : index
    %c0_186 = arith.constant 0 : index
    %c0_187 = arith.constant 0 : index
    %486 = vector.load %arg5[%c0_184, %c0_185, %c0_186, %c0_187] : memref<2x3x32x32xbf16, #tpu.memory_space<vmem>>, vector<1x1x32x32xbf16>
    %487 = vector.shape_cast %486 : vector<1x1x32x32xbf16> to vector<32x32xbf16>
    %cst_188 = arith.constant dense<0.000000e+00> : vector<16x32xf32>
    %488 = tpu.matmul %485, %487, %cst_188 {dimension_numbers = #tpu.dot_dimension_numbers<[1], [0], [0], [1], [0, 0, 1, 1], [], []>} : vector<16x32xbf16>, vector<32x32xbf16>, vector<16x32xf32> -> vector<16x32xf32>
    %c0_189 = arith.constant 0 : index
    %c0_190 = arith.constant 0 : index
    %c0_191 = arith.constant 0 : index
    %c0_192 = arith.constant 0 : index
    %489 = vector.load %arg6[%c0_189, %c0_190, %c0_191, %c0_192] : memref<2x3x1x32xf32, #tpu.memory_space<vmem>>, vector<1x1x1x32xf32>
    %490 = vector.shape_cast %489 : vector<1x1x1x32xf32> to vector<1x32xf32>
    %491 = vector.broadcast %490 : vector<1x32xf32> to vector<16x32xf32>
    %492 = arith.addf %488, %491 : vector<16x32xf32>
    %c0_193 = arith.constant 0 : index
    %493 = memref.load %arg16[%c0_193] : memref<6xf32, #tpu.memory_space<smem>>
    %494 = vector.broadcast %493 : f32 to vector<16x32xf32>
    %495 = arith.mulf %494, %492 : vector<16x32xf32>
    %cst_194 = arith.constant 1.000000e+00 : f32
    %496 = arith.subf %cst_194, %493 : f32
    %497 = vector.broadcast %496 : f32 to vector<16x32xf32>
    %498 = arith.mulf %497, %42 : vector<16x32xf32>
    %499 = arith.addf %495, %498 : vector<16x32xf32>
    %cst_195 = arith.constant 0.000000e+00 : f32
    %500 = vector.broadcast %cst_195 : f32 to vector<16x32xf32>
    %501 = arith.maximumf %499, %500 : vector<16x32xf32>
    %cst_196 = arith.constant 5.000000e-01 : f32
    %502 = vector.broadcast %cst_196 : f32 to vector<16x32xf32>
    %503 = arith.mulf %502, %471 : vector<16x32xf32>
    %504 = arith.mulf %471, %471 : vector<16x32xf32>
    %505 = arith.mulf %504, %471 : vector<16x32xf32>
    %cst_197 = arith.constant 4.471500e-02 : f32
    %506 = vector.broadcast %cst_197 : f32 to vector<16x32xf32>
    %507 = arith.mulf %506, %505 : vector<16x32xf32>
    %508 = arith.addf %471, %507 : vector<16x32xf32>
    %cst_198 = arith.constant 0.797884583 : f32
    %509 = vector.broadcast %cst_198 : f32 to vector<16x32xf32>
    %510 = arith.mulf %509, %508 : vector<16x32xf32>
    %511 = math.tanh %510 : vector<16x32xf32>
    %cst_199 = arith.constant 1.000000e+00 : f32
    %512 = vector.broadcast %cst_199 : f32 to vector<16x32xf32>
    %513 = arith.addf %512, %511 : vector<16x32xf32>
    %514 = arith.mulf %503, %513 : vector<16x32xf32>
    %515 = arith.truncf %514 : vector<16x32xf32> to vector<16x32xbf16>
    %c0_200 = arith.constant 0 : index
    %c1_201 = arith.constant 1 : index
    %c0_202 = arith.constant 0 : index
    %c0_203 = arith.constant 0 : index
    %516 = vector.load %arg5[%c0_200, %c1_201, %c0_202, %c0_203] : memref<2x3x32x32xbf16, #tpu.memory_space<vmem>>, vector<1x1x32x32xbf16>
    %517 = vector.shape_cast %516 : vector<1x1x32x32xbf16> to vector<32x32xbf16>
    %cst_204 = arith.constant dense<0.000000e+00> : vector<16x32xf32>
    %518 = tpu.matmul %515, %517, %cst_204 {dimension_numbers = #tpu.dot_dimension_numbers<[1], [0], [0], [1], [0, 0, 1, 1], [], []>} : vector<16x32xbf16>, vector<32x32xbf16>, vector<16x32xf32> -> vector<16x32xf32>
    %c0_205 = arith.constant 0 : index
    %c1_206 = arith.constant 1 : index
    %c0_207 = arith.constant 0 : index
    %c0_208 = arith.constant 0 : index
    %519 = vector.load %arg6[%c0_205, %c1_206, %c0_207, %c0_208] : memref<2x3x1x32xf32, #tpu.memory_space<vmem>>, vector<1x1x1x32xf32>
    %520 = vector.shape_cast %519 : vector<1x1x1x32xf32> to vector<1x32xf32>
    %521 = vector.broadcast %520 : vector<1x32xf32> to vector<16x32xf32>
    %522 = arith.addf %518, %521 : vector<16x32xf32>
    %c1_209 = arith.constant 1 : index
    %523 = memref.load %arg16[%c1_209] : memref<6xf32, #tpu.memory_space<smem>>
    %524 = vector.broadcast %523 : f32 to vector<16x32xf32>
    %525 = arith.mulf %524, %522 : vector<16x32xf32>
    %cst_210 = arith.constant 1.000000e+00 : f32
    %526 = arith.subf %cst_210, %523 : f32
    %527 = vector.broadcast %526 : f32 to vector<16x32xf32>
    %528 = arith.mulf %527, %53 : vector<16x32xf32>
    %529 = arith.addf %525, %528 : vector<16x32xf32>
    %cst_211 = arith.constant 0.000000e+00 : f32
    %530 = vector.broadcast %cst_211 : f32 to vector<16x32xf32>
    %531 = arith.maximumf %529, %530 : vector<16x32xf32>
    %cst_212 = arith.constant 5.000000e-01 : f32
    %532 = vector.broadcast %cst_212 : f32 to vector<8x32xf32>
    %533 = arith.mulf %532, %379 : vector<8x32xf32>
    %534 = arith.mulf %379, %379 : vector<8x32xf32>
    %535 = arith.mulf %534, %379 : vector<8x32xf32>
    %cst_213 = arith.constant 4.471500e-02 : f32
    %536 = vector.broadcast %cst_213 : f32 to vector<8x32xf32>
    %537 = arith.mulf %536, %535 : vector<8x32xf32>
    %538 = arith.addf %379, %537 : vector<8x32xf32>
    %cst_214 = arith.constant 0.797884583 : f32
    %539 = vector.broadcast %cst_214 : f32 to vector<8x32xf32>
    %540 = arith.mulf %539, %538 : vector<8x32xf32>
    %541 = math.tanh %540 : vector<8x32xf32>
    %cst_215 = arith.constant 1.000000e+00 : f32
    %542 = vector.broadcast %cst_215 : f32 to vector<8x32xf32>
    %543 = arith.addf %542, %541 : vector<8x32xf32>
    %544 = arith.mulf %533, %543 : vector<8x32xf32>
    %545 = arith.truncf %544 : vector<8x32xf32> to vector<8x32xbf16>
    %c0_216 = arith.constant 0 : index
    %c2_217 = arith.constant 2 : index
    %c0_218 = arith.constant 0 : index
    %c0_219 = arith.constant 0 : index
    %546 = vector.load %arg5[%c0_216, %c2_217, %c0_218, %c0_219] : memref<2x3x32x32xbf16, #tpu.memory_space<vmem>>, vector<1x1x32x32xbf16>
    %547 = vector.shape_cast %546 : vector<1x1x32x32xbf16> to vector<32x32xbf16>
    %cst_220 = arith.constant dense<0.000000e+00> : vector<8x32xf32>
    %548 = tpu.matmul %545, %547, %cst_220 {dimension_numbers = #tpu.dot_dimension_numbers<[1], [0], [0], [1], [0, 0, 1, 1], [], []>} : vector<8x32xbf16>, vector<32x32xbf16>, vector<8x32xf32> -> vector<8x32xf32>
    %c0_221 = arith.constant 0 : index
    %c2_222 = arith.constant 2 : index
    %c0_223 = arith.constant 0 : index
    %c0_224 = arith.constant 0 : index
    %549 = vector.load %arg6[%c0_221, %c2_222, %c0_223, %c0_224] : memref<2x3x1x32xf32, #tpu.memory_space<vmem>>, vector<1x1x1x32xf32>
    %550 = vector.shape_cast %549 : vector<1x1x1x32xf32> to vector<1x32xf32>
    %551 = vector.broadcast %550 : vector<1x32xf32> to vector<8x32xf32>
    %552 = arith.addf %548, %551 : vector<8x32xf32>
    %c2_225 = arith.constant 2 : index
    %553 = memref.load %arg16[%c2_225] : memref<6xf32, #tpu.memory_space<smem>>
    %554 = vector.broadcast %553 : f32 to vector<8x32xf32>
    %555 = arith.mulf %554, %552 : vector<8x32xf32>
    %cst_226 = arith.constant 1.000000e+00 : f32
    %556 = arith.subf %cst_226, %553 : f32
    %557 = vector.broadcast %556 : f32 to vector<8x32xf32>
    %558 = arith.mulf %557, %64 : vector<8x32xf32>
    %559 = arith.addf %555, %558 : vector<8x32xf32>
    %cst_227 = arith.constant 0.000000e+00 : f32
    %560 = vector.broadcast %cst_227 : f32 to vector<8x32xf32>
    %561 = arith.maximumf %559, %560 : vector<8x32xf32>
    %562 = arith.truncf %501 : vector<16x32xf32> to vector<16x32xbf16>
    %c1_228 = arith.constant 1 : index
    %c0_229 = arith.constant 0 : index
    %c0_230 = arith.constant 0 : index
    %c0_231 = arith.constant 0 : index
    %563 = vector.load %arg3[%c1_228, %c0_229, %c0_230, %c0_231] : memref<2x3x32x224xbf16, #tpu.memory_space<vmem>>, vector<1x1x32x224xbf16>
    %564 = vector.shape_cast %563 : vector<1x1x32x224xbf16> to vector<32x224xbf16>
    %cst_232 = arith.constant dense<0.000000e+00> : vector<16x224xf32>
    %565 = tpu.matmul %562, %564, %cst_232 {dimension_numbers = #tpu.dot_dimension_numbers<[1], [0], [0], [1], [0, 0, 1, 1], [], []>} : vector<16x32xbf16>, vector<32x224xbf16>, vector<16x224xf32> -> vector<16x224xf32>
    %c1_233 = arith.constant 1 : index
    %c0_234 = arith.constant 0 : index
    %c0_235 = arith.constant 0 : index
    %c0_236 = arith.constant 0 : index
    %566 = vector.load %arg4[%c1_233, %c0_234, %c0_235, %c0_236] : memref<2x3x1x224xf32, #tpu.memory_space<vmem>>, vector<1x1x1x224xf32>
    %567 = vector.shape_cast %566 : vector<1x1x1x224xf32> to vector<1x224xf32>
    %568 = vector.broadcast %567 : vector<1x224xf32> to vector<16x224xf32>
    %569 = arith.addf %565, %568 : vector<16x224xf32>
    %570 = vector.extract_strided_slice %569 {offsets = [0, 0], sizes = [16, 32], strides = [1, 1]} : vector<16x224xf32> to vector<16x32xf32>
    %571 = arith.truncf %570 : vector<16x32xf32> to vector<16x32xbf16>
    %572 = vector.extract_strided_slice %569 {offsets = [0, 32], sizes = [16, 32], strides = [1, 1]} : vector<16x224xf32> to vector<16x32xf32>
    %573 = arith.truncf %572 : vector<16x32xf32> to vector<16x32xbf16>
    %574 = vector.extract_strided_slice %569 {offsets = [0, 64], sizes = [16, 32], strides = [1, 1]} : vector<16x224xf32> to vector<16x32xf32>
    %575 = arith.truncf %574 : vector<16x32xf32> to vector<16x32xbf16>
    %576 = vector.extract_strided_slice %569 {offsets = [0, 96], sizes = [16, 32], strides = [1, 1]} : vector<16x224xf32> to vector<16x32xf32>
    %577 = arith.truncf %576 : vector<16x32xf32> to vector<16x32xbf16>
    %578 = vector.extract_strided_slice %569 {offsets = [0, 128], sizes = [16, 32], strides = [1, 1]} : vector<16x224xf32> to vector<16x32xf32>
    %579 = arith.truncf %578 : vector<16x32xf32> to vector<16x32xbf16>
    %580 = arith.truncf %531 : vector<16x32xf32> to vector<16x32xbf16>
    %c1_237 = arith.constant 1 : index
    %c1_238 = arith.constant 1 : index
    %c0_239 = arith.constant 0 : index
    %c0_240 = arith.constant 0 : index
    %581 = vector.load %arg3[%c1_237, %c1_238, %c0_239, %c0_240] : memref<2x3x32x224xbf16, #tpu.memory_space<vmem>>, vector<1x1x32x224xbf16>
    %582 = vector.shape_cast %581 : vector<1x1x32x224xbf16> to vector<32x224xbf16>
    %cst_241 = arith.constant dense<0.000000e+00> : vector<16x224xf32>
    %583 = tpu.matmul %580, %582, %cst_241 {dimension_numbers = #tpu.dot_dimension_numbers<[1], [0], [0], [1], [0, 0, 1, 1], [], []>} : vector<16x32xbf16>, vector<32x224xbf16>, vector<16x224xf32> -> vector<16x224xf32>
    %c1_242 = arith.constant 1 : index
    %c1_243 = arith.constant 1 : index
    %c0_244 = arith.constant 0 : index
    %c0_245 = arith.constant 0 : index
    %584 = vector.load %arg4[%c1_242, %c1_243, %c0_244, %c0_245] : memref<2x3x1x224xf32, #tpu.memory_space<vmem>>, vector<1x1x1x224xf32>
    %585 = vector.shape_cast %584 : vector<1x1x1x224xf32> to vector<1x224xf32>
    %586 = vector.broadcast %585 : vector<1x224xf32> to vector<16x224xf32>
    %587 = arith.addf %583, %586 : vector<16x224xf32>
    %588 = vector.extract_strided_slice %587 {offsets = [0, 0], sizes = [16, 32], strides = [1, 1]} : vector<16x224xf32> to vector<16x32xf32>
    %589 = arith.truncf %588 : vector<16x32xf32> to vector<16x32xbf16>
    %590 = vector.extract_strided_slice %587 {offsets = [0, 32], sizes = [16, 32], strides = [1, 1]} : vector<16x224xf32> to vector<16x32xf32>
    %591 = arith.truncf %590 : vector<16x32xf32> to vector<16x32xbf16>
    %592 = vector.extract_strided_slice %587 {offsets = [0, 64], sizes = [16, 32], strides = [1, 1]} : vector<16x224xf32> to vector<16x32xf32>
    %593 = arith.truncf %592 : vector<16x32xf32> to vector<16x32xbf16>
    %594 = vector.extract_strided_slice %587 {offsets = [0, 96], sizes = [16, 32], strides = [1, 1]} : vector<16x224xf32> to vector<16x32xf32>
    %595 = arith.truncf %594 : vector<16x32xf32> to vector<16x32xbf16>
    %596 = vector.extract_strided_slice %587 {offsets = [0, 128], sizes = [16, 32], strides = [1, 1]} : vector<16x224xf32> to vector<16x32xf32>
    %597 = arith.truncf %596 : vector<16x32xf32> to vector<16x32xbf16>
    %598 = arith.truncf %561 : vector<8x32xf32> to vector<8x32xbf16>
    %c1_246 = arith.constant 1 : index
    %c2_247 = arith.constant 2 : index
    %c0_248 = arith.constant 0 : index
    %c0_249 = arith.constant 0 : index
    %599 = vector.load %arg3[%c1_246, %c2_247, %c0_248, %c0_249] : memref<2x3x32x224xbf16, #tpu.memory_space<vmem>>, vector<1x1x32x224xbf16>
    %600 = vector.shape_cast %599 : vector<1x1x32x224xbf16> to vector<32x224xbf16>
    %cst_250 = arith.constant dense<0.000000e+00> : vector<8x224xf32>
    %601 = tpu.matmul %598, %600, %cst_250 {dimension_numbers = #tpu.dot_dimension_numbers<[1], [0], [0], [1], [0, 0, 1, 1], [], []>} : vector<8x32xbf16>, vector<32x224xbf16>, vector<8x224xf32> -> vector<8x224xf32>
    %c1_251 = arith.constant 1 : index
    %c2_252 = arith.constant 2 : index
    %c0_253 = arith.constant 0 : index
    %c0_254 = arith.constant 0 : index
    %602 = vector.load %arg4[%c1_251, %c2_252, %c0_253, %c0_254] : memref<2x3x1x224xf32, #tpu.memory_space<vmem>>, vector<1x1x1x224xf32>
    %603 = vector.shape_cast %602 : vector<1x1x1x224xf32> to vector<1x224xf32>
    %604 = vector.broadcast %603 : vector<1x224xf32> to vector<8x224xf32>
    %605 = arith.addf %601, %604 : vector<8x224xf32>
    %606 = vector.extract_strided_slice %605 {offsets = [0, 0], sizes = [8, 32], strides = [1, 1]} : vector<8x224xf32> to vector<8x32xf32>
    %607 = arith.truncf %606 : vector<8x32xf32> to vector<8x32xbf16>
    %608 = vector.extract_strided_slice %605 {offsets = [0, 32], sizes = [8, 32], strides = [1, 1]} : vector<8x224xf32> to vector<8x32xf32>
    %609 = arith.truncf %608 : vector<8x32xf32> to vector<8x32xbf16>
    %610 = vector.extract_strided_slice %605 {offsets = [0, 64], sizes = [8, 32], strides = [1, 1]} : vector<8x224xf32> to vector<8x32xf32>
    %611 = arith.truncf %610 : vector<8x32xf32> to vector<8x32xbf16>
    %612 = vector.extract_strided_slice %605 {offsets = [0, 96], sizes = [8, 32], strides = [1, 1]} : vector<8x224xf32> to vector<8x32xf32>
    %613 = arith.truncf %612 : vector<8x32xf32> to vector<8x32xbf16>
    %614 = vector.extract_strided_slice %605 {offsets = [0, 128], sizes = [8, 32], strides = [1, 1]} : vector<8x224xf32> to vector<8x32xf32>
    %615 = arith.truncf %614 : vector<8x32xf32> to vector<8x32xbf16>
    %616 = vector.extract_strided_slice %605 {offsets = [0, 160], sizes = [8, 32], strides = [1, 1]} : vector<8x224xf32> to vector<8x32xf32>
    %617 = arith.truncf %616 : vector<8x32xf32> to vector<8x32xbf16>
    %618 = vector.extract_strided_slice %605 {offsets = [0, 192], sizes = [8, 32], strides = [1, 1]} : vector<8x224xf32> to vector<8x32xf32>
    %619 = arith.truncf %618 : vector<8x32xf32> to vector<8x32xbf16>
    %cst_255 = arith.constant 0.000000e+00 : bf16
    %620 = vector.shape_cast %5 : vector<1x32xi1> to vector<1x32xi1>
    %621 = vector.broadcast %620 : vector<1x32xi1> to vector<16x32xi1>
    %622 = vector.broadcast %cst_255 : bf16 to vector<16x32xbf16>
    %623 = arith.select %621, %571, %622 : vector<16x32xi1>, vector<16x32xbf16>
    %cst_256 = arith.constant 0.000000e+00 : bf16
    %624 = vector.shape_cast %10 : vector<1x32xi1> to vector<1x32xi1>
    %625 = vector.broadcast %624 : vector<1x32xi1> to vector<16x32xi1>
    %626 = vector.broadcast %cst_256 : bf16 to vector<16x32xbf16>
    %627 = arith.select %625, %571, %626 : vector<16x32xi1>, vector<16x32xbf16>
    %cst_257 = arith.constant 0.000000e+00 : bf16
    %628 = vector.shape_cast %5 : vector<1x32xi1> to vector<1x32xi1>
    %629 = vector.broadcast %628 : vector<1x32xi1> to vector<16x32xi1>
    %630 = vector.broadcast %cst_257 : bf16 to vector<16x32xbf16>
    %631 = arith.select %629, %589, %630 : vector<16x32xi1>, vector<16x32xbf16>
    %cst_258 = arith.constant 0.000000e+00 : bf16
    %632 = vector.shape_cast %10 : vector<1x32xi1> to vector<1x32xi1>
    %633 = vector.broadcast %632 : vector<1x32xi1> to vector<16x32xi1>
    %634 = vector.broadcast %cst_258 : bf16 to vector<16x32xbf16>
    %635 = arith.select %633, %589, %634 : vector<16x32xi1>, vector<16x32xbf16>
    %cst_259 = arith.constant 0.000000e+00 : bf16
    %636 = vector.shape_cast %5 : vector<1x32xi1> to vector<1x32xi1>
    %637 = vector.broadcast %636 : vector<1x32xi1> to vector<8x32xi1>
    %638 = vector.broadcast %cst_259 : bf16 to vector<8x32xbf16>
    %639 = arith.select %637, %607, %638 : vector<8x32xi1>, vector<8x32xbf16>
    %cst_260 = arith.constant 0.000000e+00 : bf16
    %640 = vector.shape_cast %10 : vector<1x32xi1> to vector<1x32xi1>
    %641 = vector.broadcast %640 : vector<1x32xi1> to vector<8x32xi1>
    %642 = vector.broadcast %cst_260 : bf16 to vector<8x32xbf16>
    %643 = arith.select %641, %607, %642 : vector<8x32xi1>, vector<8x32xbf16>
    %cst_261 = arith.constant 0.000000e+00 : f32
    %644 = vector.broadcast %cst_261 : f32 to vector<16x32xf32>
    %cst_262 = arith.constant 0.000000e+00 : f32
    %645 = vector.broadcast %cst_262 : f32 to vector<16x32xf32>
    %cst_263 = arith.constant 0.000000e+00 : f32
    %646 = vector.broadcast %cst_263 : f32 to vector<8x32xf32>
    %cst_264 = arith.constant dense<0.000000e+00> : vector<16x16xf32>
    %647 = tpu.matmul %623, %573, %cst_264 {dimension_numbers = #tpu.dot_dimension_numbers<[1], [1], [0], [0], [0, 0, 1, 0], [], []>} : vector<16x32xbf16>, vector<16x32xbf16>, vector<16x16xf32> -> vector<16x16xf32>
    %cst_265 = arith.constant -1.000000e+30 : f32
    %648 = vector.broadcast %cst_265 : f32 to vector<16x16xf32>
    %649 = arith.select %19, %647, %648 : vector<16x16xi1>, vector<16x16xf32>
    %cst_266 = arith.constant dense<0xFF800000> : vector<16xf32>
    %650 = vector.multi_reduction <maximumf>, %649, %cst_266 [1] : vector<16x16xf32> to vector<16xf32>
    %651 = vector.shape_cast %650 : vector<16xf32> to vector<16x1xf32>
    %652 = vector.broadcast %651 : vector<16x1xf32> to vector<16x16xf32>
    %653 = arith.subf %649, %652 : vector<16x16xf32>
    %654 = math.exp %653 : vector<16x16xf32>
    %655 = arith.mulf %654, %11 : vector<16x16xf32>
    %cst_267 = arith.constant dense<0.000000e+00> : vector<16xf32>
    %656 = vector.multi_reduction <add>, %655, %cst_267 [1] : vector<16x16xf32> to vector<16xf32>
    %657 = vector.shape_cast %656 : vector<16xf32> to vector<16x1xf32>
    %cst_268 = arith.constant 9.99999968E-21 : f32
    %658 = vector.broadcast %cst_268 : f32 to vector<16x1xf32>
    %659 = arith.maximumf %657, %658 : vector<16x1xf32>
    %660 = tpu.reciprocal %659 {approx = true} : vector<16x1xf32> -> vector<16x1xf32>
    %661 = vector.broadcast %660 : vector<16x1xf32> to vector<16x16xf32>
    %662 = arith.mulf %655, %661 : vector<16x16xf32>
    %663 = arith.truncf %662 : vector<16x16xf32> to vector<16x16xbf16>
    %cst_269 = arith.constant 0.000000e+00 : bf16
    %664 = vector.shape_cast %5 : vector<1x32xi1> to vector<1x32xi1>
    %665 = vector.broadcast %664 : vector<1x32xi1> to vector<16x32xi1>
    %666 = vector.broadcast %cst_269 : bf16 to vector<16x32xbf16>
    %667 = arith.select %665, %575, %666 : vector<16x32xi1>, vector<16x32xbf16>
    %cst_270 = arith.constant dense<0.000000e+00> : vector<16x32xf32>
    %668 = tpu.matmul %663, %667, %cst_270 {dimension_numbers = #tpu.dot_dimension_numbers<[1], [0], [0], [1], [0, 0, 1, 1], [], []>} : vector<16x16xbf16>, vector<16x32xbf16>, vector<16x32xf32> -> vector<16x32xf32>
    %669 = arith.addf %644, %668 : vector<16x32xf32>
    %cst_271 = arith.constant dense<0.000000e+00> : vector<16x16xf32>
    %670 = tpu.matmul %627, %573, %cst_271 {dimension_numbers = #tpu.dot_dimension_numbers<[1], [1], [0], [0], [0, 0, 1, 0], [], []>} : vector<16x32xbf16>, vector<16x32xbf16>, vector<16x16xf32> -> vector<16x16xf32>
    %cst_272 = arith.constant -1.000000e+30 : f32
    %671 = vector.broadcast %cst_272 : f32 to vector<16x16xf32>
    %672 = arith.select %19, %670, %671 : vector<16x16xi1>, vector<16x16xf32>
    %cst_273 = arith.constant dense<0xFF800000> : vector<16xf32>
    %673 = vector.multi_reduction <maximumf>, %672, %cst_273 [1] : vector<16x16xf32> to vector<16xf32>
    %674 = vector.shape_cast %673 : vector<16xf32> to vector<16x1xf32>
    %675 = vector.broadcast %674 : vector<16x1xf32> to vector<16x16xf32>
    %676 = arith.subf %672, %675 : vector<16x16xf32>
    %677 = math.exp %676 : vector<16x16xf32>
    %678 = arith.mulf %677, %11 : vector<16x16xf32>
    %cst_274 = arith.constant dense<0.000000e+00> : vector<16xf32>
    %679 = vector.multi_reduction <add>, %678, %cst_274 [1] : vector<16x16xf32> to vector<16xf32>
    %680 = vector.shape_cast %679 : vector<16xf32> to vector<16x1xf32>
    %cst_275 = arith.constant 9.99999968E-21 : f32
    %681 = vector.broadcast %cst_275 : f32 to vector<16x1xf32>
    %682 = arith.maximumf %680, %681 : vector<16x1xf32>
    %683 = tpu.reciprocal %682 {approx = true} : vector<16x1xf32> -> vector<16x1xf32>
    %684 = vector.broadcast %683 : vector<16x1xf32> to vector<16x16xf32>
    %685 = arith.mulf %678, %684 : vector<16x16xf32>
    %686 = arith.truncf %685 : vector<16x16xf32> to vector<16x16xbf16>
    %cst_276 = arith.constant 0.000000e+00 : bf16
    %687 = vector.shape_cast %10 : vector<1x32xi1> to vector<1x32xi1>
    %688 = vector.broadcast %687 : vector<1x32xi1> to vector<16x32xi1>
    %689 = vector.broadcast %cst_276 : bf16 to vector<16x32xbf16>
    %690 = arith.select %688, %575, %689 : vector<16x32xi1>, vector<16x32xbf16>
    %cst_277 = arith.constant dense<0.000000e+00> : vector<16x32xf32>
    %691 = tpu.matmul %686, %690, %cst_277 {dimension_numbers = #tpu.dot_dimension_numbers<[1], [0], [0], [1], [0, 0, 1, 1], [], []>} : vector<16x16xbf16>, vector<16x32xbf16>, vector<16x32xf32> -> vector<16x32xf32>
    %692 = arith.addf %669, %691 : vector<16x32xf32>
    %cst_278 = arith.constant dense<0.000000e+00> : vector<16x16xf32>
    %693 = tpu.matmul %631, %591, %cst_278 {dimension_numbers = #tpu.dot_dimension_numbers<[1], [1], [0], [0], [0, 0, 1, 0], [], []>} : vector<16x32xbf16>, vector<16x32xbf16>, vector<16x16xf32> -> vector<16x16xf32>
    %cst_279 = arith.constant -1.000000e+30 : f32
    %694 = vector.broadcast %cst_279 : f32 to vector<16x16xf32>
    %695 = arith.select %21, %693, %694 : vector<16x16xi1>, vector<16x16xf32>
    %cst_280 = arith.constant dense<0xFF800000> : vector<16xf32>
    %696 = vector.multi_reduction <maximumf>, %695, %cst_280 [1] : vector<16x16xf32> to vector<16xf32>
    %697 = vector.shape_cast %696 : vector<16xf32> to vector<16x1xf32>
    %698 = vector.broadcast %697 : vector<16x1xf32> to vector<16x16xf32>
    %699 = arith.subf %695, %698 : vector<16x16xf32>
    %700 = math.exp %699 : vector<16x16xf32>
    %701 = arith.mulf %700, %12 : vector<16x16xf32>
    %cst_281 = arith.constant dense<0.000000e+00> : vector<16xf32>
    %702 = vector.multi_reduction <add>, %701, %cst_281 [1] : vector<16x16xf32> to vector<16xf32>
    %703 = vector.shape_cast %702 : vector<16xf32> to vector<16x1xf32>
    %cst_282 = arith.constant 9.99999968E-21 : f32
    %704 = vector.broadcast %cst_282 : f32 to vector<16x1xf32>
    %705 = arith.maximumf %703, %704 : vector<16x1xf32>
    %706 = tpu.reciprocal %705 {approx = true} : vector<16x1xf32> -> vector<16x1xf32>
    %707 = vector.broadcast %706 : vector<16x1xf32> to vector<16x16xf32>
    %708 = arith.mulf %701, %707 : vector<16x16xf32>
    %709 = arith.truncf %708 : vector<16x16xf32> to vector<16x16xbf16>
    %cst_283 = arith.constant 0.000000e+00 : bf16
    %710 = vector.shape_cast %5 : vector<1x32xi1> to vector<1x32xi1>
    %711 = vector.broadcast %710 : vector<1x32xi1> to vector<16x32xi1>
    %712 = vector.broadcast %cst_283 : bf16 to vector<16x32xbf16>
    %713 = arith.select %711, %593, %712 : vector<16x32xi1>, vector<16x32xbf16>
    %cst_284 = arith.constant dense<0.000000e+00> : vector<16x32xf32>
    %714 = tpu.matmul %709, %713, %cst_284 {dimension_numbers = #tpu.dot_dimension_numbers<[1], [0], [0], [1], [0, 0, 1, 1], [], []>} : vector<16x16xbf16>, vector<16x32xbf16>, vector<16x32xf32> -> vector<16x32xf32>
    %715 = arith.addf %645, %714 : vector<16x32xf32>
    %cst_285 = arith.constant dense<0.000000e+00> : vector<16x16xf32>
    %716 = tpu.matmul %635, %591, %cst_285 {dimension_numbers = #tpu.dot_dimension_numbers<[1], [1], [0], [0], [0, 0, 1, 0], [], []>} : vector<16x32xbf16>, vector<16x32xbf16>, vector<16x16xf32> -> vector<16x16xf32>
    %cst_286 = arith.constant -1.000000e+30 : f32
    %717 = vector.broadcast %cst_286 : f32 to vector<16x16xf32>
    %718 = arith.select %21, %716, %717 : vector<16x16xi1>, vector<16x16xf32>
    %cst_287 = arith.constant dense<0xFF800000> : vector<16xf32>
    %719 = vector.multi_reduction <maximumf>, %718, %cst_287 [1] : vector<16x16xf32> to vector<16xf32>
    %720 = vector.shape_cast %719 : vector<16xf32> to vector<16x1xf32>
    %721 = vector.broadcast %720 : vector<16x1xf32> to vector<16x16xf32>
    %722 = arith.subf %718, %721 : vector<16x16xf32>
    %723 = math.exp %722 : vector<16x16xf32>
    %724 = arith.mulf %723, %12 : vector<16x16xf32>
    %cst_288 = arith.constant dense<0.000000e+00> : vector<16xf32>
    %725 = vector.multi_reduction <add>, %724, %cst_288 [1] : vector<16x16xf32> to vector<16xf32>
    %726 = vector.shape_cast %725 : vector<16xf32> to vector<16x1xf32>
    %cst_289 = arith.constant 9.99999968E-21 : f32
    %727 = vector.broadcast %cst_289 : f32 to vector<16x1xf32>
    %728 = arith.maximumf %726, %727 : vector<16x1xf32>
    %729 = tpu.reciprocal %728 {approx = true} : vector<16x1xf32> -> vector<16x1xf32>
    %730 = vector.broadcast %729 : vector<16x1xf32> to vector<16x16xf32>
    %731 = arith.mulf %724, %730 : vector<16x16xf32>
    %732 = arith.truncf %731 : vector<16x16xf32> to vector<16x16xbf16>
    %cst_290 = arith.constant 0.000000e+00 : bf16
    %733 = vector.shape_cast %10 : vector<1x32xi1> to vector<1x32xi1>
    %734 = vector.broadcast %733 : vector<1x32xi1> to vector<16x32xi1>
    %735 = vector.broadcast %cst_290 : bf16 to vector<16x32xbf16>
    %736 = arith.select %734, %593, %735 : vector<16x32xi1>, vector<16x32xbf16>
    %cst_291 = arith.constant dense<0.000000e+00> : vector<16x32xf32>
    %737 = tpu.matmul %732, %736, %cst_291 {dimension_numbers = #tpu.dot_dimension_numbers<[1], [0], [0], [1], [0, 0, 1, 1], [], []>} : vector<16x16xbf16>, vector<16x32xbf16>, vector<16x32xf32> -> vector<16x32xf32>
    %738 = arith.addf %715, %737 : vector<16x32xf32>
    %cst_292 = arith.constant dense<0.000000e+00> : vector<8x8xf32>
    %739 = tpu.matmul %639, %609, %cst_292 {dimension_numbers = #tpu.dot_dimension_numbers<[1], [1], [0], [0], [0, 0, 1, 0], [], []>} : vector<8x32xbf16>, vector<8x32xbf16>, vector<8x8xf32> -> vector<8x8xf32>
    %cst_293 = arith.constant -1.000000e+30 : f32
    %740 = vector.broadcast %cst_293 : f32 to vector<8x8xf32>
    %741 = arith.select %23, %739, %740 : vector<8x8xi1>, vector<8x8xf32>
    %cst_294 = arith.constant dense<0xFF800000> : vector<8xf32>
    %742 = vector.multi_reduction <maximumf>, %741, %cst_294 [1] : vector<8x8xf32> to vector<8xf32>
    %743 = vector.shape_cast %742 : vector<8xf32> to vector<8x1xf32>
    %744 = vector.broadcast %743 : vector<8x1xf32> to vector<8x8xf32>
    %745 = arith.subf %741, %744 : vector<8x8xf32>
    %746 = math.exp %745 : vector<8x8xf32>
    %747 = arith.mulf %746, %13 : vector<8x8xf32>
    %cst_295 = arith.constant dense<0.000000e+00> : vector<8xf32>
    %748 = vector.multi_reduction <add>, %747, %cst_295 [1] : vector<8x8xf32> to vector<8xf32>
    %749 = vector.shape_cast %748 : vector<8xf32> to vector<8x1xf32>
    %cst_296 = arith.constant 9.99999968E-21 : f32
    %750 = vector.broadcast %cst_296 : f32 to vector<8x1xf32>
    %751 = arith.maximumf %749, %750 : vector<8x1xf32>
    %752 = tpu.reciprocal %751 {approx = true} : vector<8x1xf32> -> vector<8x1xf32>
    %753 = vector.broadcast %752 : vector<8x1xf32> to vector<8x8xf32>
    %754 = arith.mulf %747, %753 : vector<8x8xf32>
    %755 = arith.truncf %754 : vector<8x8xf32> to vector<8x8xbf16>
    %cst_297 = arith.constant 0.000000e+00 : bf16
    %756 = vector.shape_cast %5 : vector<1x32xi1> to vector<1x32xi1>
    %757 = vector.broadcast %756 : vector<1x32xi1> to vector<8x32xi1>
    %758 = vector.broadcast %cst_297 : bf16 to vector<8x32xbf16>
    %759 = arith.select %757, %611, %758 : vector<8x32xi1>, vector<8x32xbf16>
    %cst_298 = arith.constant dense<0.000000e+00> : vector<8x32xf32>
    %760 = tpu.matmul %755, %759, %cst_298 {dimension_numbers = #tpu.dot_dimension_numbers<[1], [0], [0], [1], [0, 0, 1, 1], [], []>} : vector<8x8xbf16>, vector<8x32xbf16>, vector<8x32xf32> -> vector<8x32xf32>
    %761 = arith.addf %646, %760 : vector<8x32xf32>
    %cst_299 = arith.constant dense<0.000000e+00> : vector<8x8xf32>
    %762 = tpu.matmul %643, %609, %cst_299 {dimension_numbers = #tpu.dot_dimension_numbers<[1], [1], [0], [0], [0, 0, 1, 0], [], []>} : vector<8x32xbf16>, vector<8x32xbf16>, vector<8x8xf32> -> vector<8x8xf32>
    %cst_300 = arith.constant -1.000000e+30 : f32
    %763 = vector.broadcast %cst_300 : f32 to vector<8x8xf32>
    %764 = arith.select %23, %762, %763 : vector<8x8xi1>, vector<8x8xf32>
    %cst_301 = arith.constant dense<0xFF800000> : vector<8xf32>
    %765 = vector.multi_reduction <maximumf>, %764, %cst_301 [1] : vector<8x8xf32> to vector<8xf32>
    %766 = vector.shape_cast %765 : vector<8xf32> to vector<8x1xf32>
    %767 = vector.broadcast %766 : vector<8x1xf32> to vector<8x8xf32>
    %768 = arith.subf %764, %767 : vector<8x8xf32>
    %769 = math.exp %768 : vector<8x8xf32>
    %770 = arith.mulf %769, %13 : vector<8x8xf32>
    %cst_302 = arith.constant dense<0.000000e+00> : vector<8xf32>
    %771 = vector.multi_reduction <add>, %770, %cst_302 [1] : vector<8x8xf32> to vector<8xf32>
    %772 = vector.shape_cast %771 : vector<8xf32> to vector<8x1xf32>
    %cst_303 = arith.constant 9.99999968E-21 : f32
    %773 = vector.broadcast %cst_303 : f32 to vector<8x1xf32>
    %774 = arith.maximumf %772, %773 : vector<8x1xf32>
    %775 = tpu.reciprocal %774 {approx = true} : vector<8x1xf32> -> vector<8x1xf32>
    %776 = vector.broadcast %775 : vector<8x1xf32> to vector<8x8xf32>
    %777 = arith.mulf %770, %776 : vector<8x8xf32>
    %778 = arith.truncf %777 : vector<8x8xf32> to vector<8x8xbf16>
    %cst_304 = arith.constant 0.000000e+00 : bf16
    %779 = vector.shape_cast %10 : vector<1x32xi1> to vector<1x32xi1>
    %780 = vector.broadcast %779 : vector<1x32xi1> to vector<8x32xi1>
    %781 = vector.broadcast %cst_304 : bf16 to vector<8x32xbf16>
    %782 = arith.select %780, %611, %781 : vector<8x32xi1>, vector<8x32xbf16>
    %cst_305 = arith.constant dense<0.000000e+00> : vector<8x32xf32>
    %783 = tpu.matmul %778, %782, %cst_305 {dimension_numbers = #tpu.dot_dimension_numbers<[1], [0], [0], [1], [0, 0, 1, 1], [], []>} : vector<8x8xbf16>, vector<8x32xbf16>, vector<8x32xf32> -> vector<8x32xf32>
    %784 = arith.addf %761, %783 : vector<8x32xf32>
    %cst_306 = arith.constant dense<0.000000e+00> : vector<8x16xf32>
    %785 = tpu.matmul %639, %577, %cst_306 {dimension_numbers = #tpu.dot_dimension_numbers<[1], [1], [0], [0], [0, 0, 1, 0], [], []>} : vector<8x32xbf16>, vector<16x32xbf16>, vector<8x16xf32> -> vector<8x16xf32>
    %cst_307 = arith.constant -1.000000e+30 : f32
    %786 = vector.broadcast %cst_307 : f32 to vector<8x16xf32>
    %787 = arith.select %25, %785, %786 : vector<8x16xi1>, vector<8x16xf32>
    %cst_308 = arith.constant dense<0xFF800000> : vector<8xf32>
    %788 = vector.multi_reduction <maximumf>, %787, %cst_308 [1] : vector<8x16xf32> to vector<8xf32>
    %789 = vector.shape_cast %788 : vector<8xf32> to vector<8x1xf32>
    %790 = vector.broadcast %789 : vector<8x1xf32> to vector<8x16xf32>
    %791 = arith.subf %787, %790 : vector<8x16xf32>
    %792 = math.exp %791 : vector<8x16xf32>
    %793 = arith.mulf %792, %14 : vector<8x16xf32>
    %cst_309 = arith.constant dense<0.000000e+00> : vector<8xf32>
    %794 = vector.multi_reduction <add>, %793, %cst_309 [1] : vector<8x16xf32> to vector<8xf32>
    %795 = vector.shape_cast %794 : vector<8xf32> to vector<8x1xf32>
    %cst_310 = arith.constant 9.99999968E-21 : f32
    %796 = vector.broadcast %cst_310 : f32 to vector<8x1xf32>
    %797 = arith.maximumf %795, %796 : vector<8x1xf32>
    %798 = tpu.reciprocal %797 {approx = true} : vector<8x1xf32> -> vector<8x1xf32>
    %799 = vector.broadcast %798 : vector<8x1xf32> to vector<8x16xf32>
    %800 = arith.mulf %793, %799 : vector<8x16xf32>
    %801 = arith.truncf %800 : vector<8x16xf32> to vector<8x16xbf16>
    %cst_311 = arith.constant 0.000000e+00 : bf16
    %802 = vector.shape_cast %5 : vector<1x32xi1> to vector<1x32xi1>
    %803 = vector.broadcast %802 : vector<1x32xi1> to vector<16x32xi1>
    %804 = vector.broadcast %cst_311 : bf16 to vector<16x32xbf16>
    %805 = arith.select %803, %579, %804 : vector<16x32xi1>, vector<16x32xbf16>
    %cst_312 = arith.constant dense<0.000000e+00> : vector<8x32xf32>
    %806 = tpu.matmul %801, %805, %cst_312 {dimension_numbers = #tpu.dot_dimension_numbers<[1], [0], [0], [1], [0, 0, 1, 1], [], []>} : vector<8x16xbf16>, vector<16x32xbf16>, vector<8x32xf32> -> vector<8x32xf32>
    %807 = arith.addf %784, %806 : vector<8x32xf32>
    %cst_313 = arith.constant dense<0.000000e+00> : vector<8x16xf32>
    %808 = tpu.matmul %643, %577, %cst_313 {dimension_numbers = #tpu.dot_dimension_numbers<[1], [1], [0], [0], [0, 0, 1, 0], [], []>} : vector<8x32xbf16>, vector<16x32xbf16>, vector<8x16xf32> -> vector<8x16xf32>
    %cst_314 = arith.constant -1.000000e+30 : f32
    %809 = vector.broadcast %cst_314 : f32 to vector<8x16xf32>
    %810 = arith.select %25, %808, %809 : vector<8x16xi1>, vector<8x16xf32>
    %cst_315 = arith.constant dense<0xFF800000> : vector<8xf32>
    %811 = vector.multi_reduction <maximumf>, %810, %cst_315 [1] : vector<8x16xf32> to vector<8xf32>
    %812 = vector.shape_cast %811 : vector<8xf32> to vector<8x1xf32>
    %813 = vector.broadcast %812 : vector<8x1xf32> to vector<8x16xf32>
    %814 = arith.subf %810, %813 : vector<8x16xf32>
    %815 = math.exp %814 : vector<8x16xf32>
    %816 = arith.mulf %815, %14 : vector<8x16xf32>
    %cst_316 = arith.constant dense<0.000000e+00> : vector<8xf32>
    %817 = vector.multi_reduction <add>, %816, %cst_316 [1] : vector<8x16xf32> to vector<8xf32>
    %818 = vector.shape_cast %817 : vector<8xf32> to vector<8x1xf32>
    %cst_317 = arith.constant 9.99999968E-21 : f32
    %819 = vector.broadcast %cst_317 : f32 to vector<8x1xf32>
    %820 = arith.maximumf %818, %819 : vector<8x1xf32>
    %821 = tpu.reciprocal %820 {approx = true} : vector<8x1xf32> -> vector<8x1xf32>
    %822 = vector.broadcast %821 : vector<8x1xf32> to vector<8x16xf32>
    %823 = arith.mulf %816, %822 : vector<8x16xf32>
    %824 = arith.truncf %823 : vector<8x16xf32> to vector<8x16xbf16>
    %cst_318 = arith.constant 0.000000e+00 : bf16
    %825 = vector.shape_cast %10 : vector<1x32xi1> to vector<1x32xi1>
    %826 = vector.broadcast %825 : vector<1x32xi1> to vector<16x32xi1>
    %827 = vector.broadcast %cst_318 : bf16 to vector<16x32xbf16>
    %828 = arith.select %826, %579, %827 : vector<16x32xi1>, vector<16x32xbf16>
    %cst_319 = arith.constant dense<0.000000e+00> : vector<8x32xf32>
    %829 = tpu.matmul %824, %828, %cst_319 {dimension_numbers = #tpu.dot_dimension_numbers<[1], [0], [0], [1], [0, 0, 1, 1], [], []>} : vector<8x16xbf16>, vector<16x32xbf16>, vector<8x32xf32> -> vector<8x32xf32>
    %830 = arith.addf %807, %829 : vector<8x32xf32>
    %cst_320 = arith.constant dense<0.000000e+00> : vector<8x16xf32>
    %831 = tpu.matmul %639, %595, %cst_320 {dimension_numbers = #tpu.dot_dimension_numbers<[1], [1], [0], [0], [0, 0, 1, 0], [], []>} : vector<8x32xbf16>, vector<16x32xbf16>, vector<8x16xf32> -> vector<8x16xf32>
    %cst_321 = arith.constant -1.000000e+30 : f32
    %832 = vector.broadcast %cst_321 : f32 to vector<8x16xf32>
    %833 = arith.select %27, %831, %832 : vector<8x16xi1>, vector<8x16xf32>
    %cst_322 = arith.constant dense<0xFF800000> : vector<8xf32>
    %834 = vector.multi_reduction <maximumf>, %833, %cst_322 [1] : vector<8x16xf32> to vector<8xf32>
    %835 = vector.shape_cast %834 : vector<8xf32> to vector<8x1xf32>
    %836 = vector.broadcast %835 : vector<8x1xf32> to vector<8x16xf32>
    %837 = arith.subf %833, %836 : vector<8x16xf32>
    %838 = math.exp %837 : vector<8x16xf32>
    %839 = arith.mulf %838, %15 : vector<8x16xf32>
    %cst_323 = arith.constant dense<0.000000e+00> : vector<8xf32>
    %840 = vector.multi_reduction <add>, %839, %cst_323 [1] : vector<8x16xf32> to vector<8xf32>
    %841 = vector.shape_cast %840 : vector<8xf32> to vector<8x1xf32>
    %cst_324 = arith.constant 9.99999968E-21 : f32
    %842 = vector.broadcast %cst_324 : f32 to vector<8x1xf32>
    %843 = arith.maximumf %841, %842 : vector<8x1xf32>
    %844 = tpu.reciprocal %843 {approx = true} : vector<8x1xf32> -> vector<8x1xf32>
    %845 = vector.broadcast %844 : vector<8x1xf32> to vector<8x16xf32>
    %846 = arith.mulf %839, %845 : vector<8x16xf32>
    %847 = arith.truncf %846 : vector<8x16xf32> to vector<8x16xbf16>
    %cst_325 = arith.constant 0.000000e+00 : bf16
    %848 = vector.shape_cast %5 : vector<1x32xi1> to vector<1x32xi1>
    %849 = vector.broadcast %848 : vector<1x32xi1> to vector<16x32xi1>
    %850 = vector.broadcast %cst_325 : bf16 to vector<16x32xbf16>
    %851 = arith.select %849, %597, %850 : vector<16x32xi1>, vector<16x32xbf16>
    %cst_326 = arith.constant dense<0.000000e+00> : vector<8x32xf32>
    %852 = tpu.matmul %847, %851, %cst_326 {dimension_numbers = #tpu.dot_dimension_numbers<[1], [0], [0], [1], [0, 0, 1, 1], [], []>} : vector<8x16xbf16>, vector<16x32xbf16>, vector<8x32xf32> -> vector<8x32xf32>
    %853 = arith.addf %830, %852 : vector<8x32xf32>
    %cst_327 = arith.constant dense<0.000000e+00> : vector<8x16xf32>
    %854 = tpu.matmul %643, %595, %cst_327 {dimension_numbers = #tpu.dot_dimension_numbers<[1], [1], [0], [0], [0, 0, 1, 0], [], []>} : vector<8x32xbf16>, vector<16x32xbf16>, vector<8x16xf32> -> vector<8x16xf32>
    %cst_328 = arith.constant -1.000000e+30 : f32
    %855 = vector.broadcast %cst_328 : f32 to vector<8x16xf32>
    %856 = arith.select %27, %854, %855 : vector<8x16xi1>, vector<8x16xf32>
    %cst_329 = arith.constant dense<0xFF800000> : vector<8xf32>
    %857 = vector.multi_reduction <maximumf>, %856, %cst_329 [1] : vector<8x16xf32> to vector<8xf32>
    %858 = vector.shape_cast %857 : vector<8xf32> to vector<8x1xf32>
    %859 = vector.broadcast %858 : vector<8x1xf32> to vector<8x16xf32>
    %860 = arith.subf %856, %859 : vector<8x16xf32>
    %861 = math.exp %860 : vector<8x16xf32>
    %862 = arith.mulf %861, %15 : vector<8x16xf32>
    %cst_330 = arith.constant dense<0.000000e+00> : vector<8xf32>
    %863 = vector.multi_reduction <add>, %862, %cst_330 [1] : vector<8x16xf32> to vector<8xf32>
    %864 = vector.shape_cast %863 : vector<8xf32> to vector<8x1xf32>
    %cst_331 = arith.constant 9.99999968E-21 : f32
    %865 = vector.broadcast %cst_331 : f32 to vector<8x1xf32>
    %866 = arith.maximumf %864, %865 : vector<8x1xf32>
    %867 = tpu.reciprocal %866 {approx = true} : vector<8x1xf32> -> vector<8x1xf32>
    %868 = vector.broadcast %867 : vector<8x1xf32> to vector<8x16xf32>
    %869 = arith.mulf %862, %868 : vector<8x16xf32>
    %870 = arith.truncf %869 : vector<8x16xf32> to vector<8x16xbf16>
    %cst_332 = arith.constant 0.000000e+00 : bf16
    %871 = vector.shape_cast %10 : vector<1x32xi1> to vector<1x32xi1>
    %872 = vector.broadcast %871 : vector<1x32xi1> to vector<16x32xi1>
    %873 = vector.broadcast %cst_332 : bf16 to vector<16x32xbf16>
    %874 = arith.select %872, %597, %873 : vector<16x32xi1>, vector<16x32xbf16>
    %cst_333 = arith.constant dense<0.000000e+00> : vector<8x32xf32>
    %875 = tpu.matmul %870, %874, %cst_333 {dimension_numbers = #tpu.dot_dimension_numbers<[1], [0], [0], [1], [0, 0, 1, 1], [], []>} : vector<8x16xbf16>, vector<16x32xbf16>, vector<8x32xf32> -> vector<8x32xf32>
    %876 = arith.addf %853, %875 : vector<8x32xf32>
    %cst_334 = arith.constant dense<0.000000e+00> : vector<16x8xf32>
    %877 = tpu.matmul %623, %613, %cst_334 {dimension_numbers = #tpu.dot_dimension_numbers<[1], [1], [0], [0], [0, 0, 1, 0], [], []>} : vector<16x32xbf16>, vector<8x32xbf16>, vector<16x8xf32> -> vector<16x8xf32>
    %cst_335 = arith.constant -1.000000e+30 : f32
    %878 = vector.broadcast %cst_335 : f32 to vector<16x8xf32>
    %879 = arith.select %29, %877, %878 : vector<16x8xi1>, vector<16x8xf32>
    %cst_336 = arith.constant dense<0xFF800000> : vector<16xf32>
    %880 = vector.multi_reduction <maximumf>, %879, %cst_336 [1] : vector<16x8xf32> to vector<16xf32>
    %881 = vector.shape_cast %880 : vector<16xf32> to vector<16x1xf32>
    %882 = vector.broadcast %881 : vector<16x1xf32> to vector<16x8xf32>
    %883 = arith.subf %879, %882 : vector<16x8xf32>
    %884 = math.exp %883 : vector<16x8xf32>
    %885 = arith.mulf %884, %16 : vector<16x8xf32>
    %cst_337 = arith.constant dense<0.000000e+00> : vector<16xf32>
    %886 = vector.multi_reduction <add>, %885, %cst_337 [1] : vector<16x8xf32> to vector<16xf32>
    %887 = vector.shape_cast %886 : vector<16xf32> to vector<16x1xf32>
    %cst_338 = arith.constant 9.99999968E-21 : f32
    %888 = vector.broadcast %cst_338 : f32 to vector<16x1xf32>
    %889 = arith.maximumf %887, %888 : vector<16x1xf32>
    %890 = tpu.reciprocal %889 {approx = true} : vector<16x1xf32> -> vector<16x1xf32>
    %891 = vector.broadcast %890 : vector<16x1xf32> to vector<16x8xf32>
    %892 = arith.mulf %885, %891 : vector<16x8xf32>
    %893 = arith.truncf %892 : vector<16x8xf32> to vector<16x8xbf16>
    %cst_339 = arith.constant 0.000000e+00 : bf16
    %894 = vector.shape_cast %5 : vector<1x32xi1> to vector<1x32xi1>
    %895 = vector.broadcast %894 : vector<1x32xi1> to vector<8x32xi1>
    %896 = vector.broadcast %cst_339 : bf16 to vector<8x32xbf16>
    %897 = arith.select %895, %615, %896 : vector<8x32xi1>, vector<8x32xbf16>
    %cst_340 = arith.constant dense<0.000000e+00> : vector<16x32xf32>
    %898 = tpu.matmul %893, %897, %cst_340 {dimension_numbers = #tpu.dot_dimension_numbers<[1], [0], [0], [1], [0, 0, 1, 1], [], []>} : vector<16x8xbf16>, vector<8x32xbf16>, vector<16x32xf32> -> vector<16x32xf32>
    %899 = arith.addf %692, %898 : vector<16x32xf32>
    %cst_341 = arith.constant dense<0.000000e+00> : vector<16x8xf32>
    %900 = tpu.matmul %627, %613, %cst_341 {dimension_numbers = #tpu.dot_dimension_numbers<[1], [1], [0], [0], [0, 0, 1, 0], [], []>} : vector<16x32xbf16>, vector<8x32xbf16>, vector<16x8xf32> -> vector<16x8xf32>
    %cst_342 = arith.constant -1.000000e+30 : f32
    %901 = vector.broadcast %cst_342 : f32 to vector<16x8xf32>
    %902 = arith.select %29, %900, %901 : vector<16x8xi1>, vector<16x8xf32>
    %cst_343 = arith.constant dense<0xFF800000> : vector<16xf32>
    %903 = vector.multi_reduction <maximumf>, %902, %cst_343 [1] : vector<16x8xf32> to vector<16xf32>
    %904 = vector.shape_cast %903 : vector<16xf32> to vector<16x1xf32>
    %905 = vector.broadcast %904 : vector<16x1xf32> to vector<16x8xf32>
    %906 = arith.subf %902, %905 : vector<16x8xf32>
    %907 = math.exp %906 : vector<16x8xf32>
    %908 = arith.mulf %907, %16 : vector<16x8xf32>
    %cst_344 = arith.constant dense<0.000000e+00> : vector<16xf32>
    %909 = vector.multi_reduction <add>, %908, %cst_344 [1] : vector<16x8xf32> to vector<16xf32>
    %910 = vector.shape_cast %909 : vector<16xf32> to vector<16x1xf32>
    %cst_345 = arith.constant 9.99999968E-21 : f32
    %911 = vector.broadcast %cst_345 : f32 to vector<16x1xf32>
    %912 = arith.maximumf %910, %911 : vector<16x1xf32>
    %913 = tpu.reciprocal %912 {approx = true} : vector<16x1xf32> -> vector<16x1xf32>
    %914 = vector.broadcast %913 : vector<16x1xf32> to vector<16x8xf32>
    %915 = arith.mulf %908, %914 : vector<16x8xf32>
    %916 = arith.truncf %915 : vector<16x8xf32> to vector<16x8xbf16>
    %cst_346 = arith.constant 0.000000e+00 : bf16
    %917 = vector.shape_cast %10 : vector<1x32xi1> to vector<1x32xi1>
    %918 = vector.broadcast %917 : vector<1x32xi1> to vector<8x32xi1>
    %919 = vector.broadcast %cst_346 : bf16 to vector<8x32xbf16>
    %920 = arith.select %918, %615, %919 : vector<8x32xi1>, vector<8x32xbf16>
    %cst_347 = arith.constant dense<0.000000e+00> : vector<16x32xf32>
    %921 = tpu.matmul %916, %920, %cst_347 {dimension_numbers = #tpu.dot_dimension_numbers<[1], [0], [0], [1], [0, 0, 1, 1], [], []>} : vector<16x8xbf16>, vector<8x32xbf16>, vector<16x32xf32> -> vector<16x32xf32>
    %922 = arith.addf %899, %921 : vector<16x32xf32>
    %cst_348 = arith.constant dense<0.000000e+00> : vector<16x8xf32>
    %923 = tpu.matmul %631, %617, %cst_348 {dimension_numbers = #tpu.dot_dimension_numbers<[1], [1], [0], [0], [0, 0, 1, 0], [], []>} : vector<16x32xbf16>, vector<8x32xbf16>, vector<16x8xf32> -> vector<16x8xf32>
    %cst_349 = arith.constant -1.000000e+30 : f32
    %924 = vector.broadcast %cst_349 : f32 to vector<16x8xf32>
    %925 = arith.select %31, %923, %924 : vector<16x8xi1>, vector<16x8xf32>
    %cst_350 = arith.constant dense<0xFF800000> : vector<16xf32>
    %926 = vector.multi_reduction <maximumf>, %925, %cst_350 [1] : vector<16x8xf32> to vector<16xf32>
    %927 = vector.shape_cast %926 : vector<16xf32> to vector<16x1xf32>
    %928 = vector.broadcast %927 : vector<16x1xf32> to vector<16x8xf32>
    %929 = arith.subf %925, %928 : vector<16x8xf32>
    %930 = math.exp %929 : vector<16x8xf32>
    %931 = arith.mulf %930, %17 : vector<16x8xf32>
    %cst_351 = arith.constant dense<0.000000e+00> : vector<16xf32>
    %932 = vector.multi_reduction <add>, %931, %cst_351 [1] : vector<16x8xf32> to vector<16xf32>
    %933 = vector.shape_cast %932 : vector<16xf32> to vector<16x1xf32>
    %cst_352 = arith.constant 9.99999968E-21 : f32
    %934 = vector.broadcast %cst_352 : f32 to vector<16x1xf32>
    %935 = arith.maximumf %933, %934 : vector<16x1xf32>
    %936 = tpu.reciprocal %935 {approx = true} : vector<16x1xf32> -> vector<16x1xf32>
    %937 = vector.broadcast %936 : vector<16x1xf32> to vector<16x8xf32>
    %938 = arith.mulf %931, %937 : vector<16x8xf32>
    %939 = arith.truncf %938 : vector<16x8xf32> to vector<16x8xbf16>
    %cst_353 = arith.constant 0.000000e+00 : bf16
    %940 = vector.shape_cast %5 : vector<1x32xi1> to vector<1x32xi1>
    %941 = vector.broadcast %940 : vector<1x32xi1> to vector<8x32xi1>
    %942 = vector.broadcast %cst_353 : bf16 to vector<8x32xbf16>
    %943 = arith.select %941, %619, %942 : vector<8x32xi1>, vector<8x32xbf16>
    %cst_354 = arith.constant dense<0.000000e+00> : vector<16x32xf32>
    %944 = tpu.matmul %939, %943, %cst_354 {dimension_numbers = #tpu.dot_dimension_numbers<[1], [0], [0], [1], [0, 0, 1, 1], [], []>} : vector<16x8xbf16>, vector<8x32xbf16>, vector<16x32xf32> -> vector<16x32xf32>
    %945 = arith.addf %738, %944 : vector<16x32xf32>
    %cst_355 = arith.constant dense<0.000000e+00> : vector<16x8xf32>
    %946 = tpu.matmul %635, %617, %cst_355 {dimension_numbers = #tpu.dot_dimension_numbers<[1], [1], [0], [0], [0, 0, 1, 0], [], []>} : vector<16x32xbf16>, vector<8x32xbf16>, vector<16x8xf32> -> vector<16x8xf32>
    %cst_356 = arith.constant -1.000000e+30 : f32
    %947 = vector.broadcast %cst_356 : f32 to vector<16x8xf32>
    %948 = arith.select %31, %946, %947 : vector<16x8xi1>, vector<16x8xf32>
    %cst_357 = arith.constant dense<0xFF800000> : vector<16xf32>
    %949 = vector.multi_reduction <maximumf>, %948, %cst_357 [1] : vector<16x8xf32> to vector<16xf32>
    %950 = vector.shape_cast %949 : vector<16xf32> to vector<16x1xf32>
    %951 = vector.broadcast %950 : vector<16x1xf32> to vector<16x8xf32>
    %952 = arith.subf %948, %951 : vector<16x8xf32>
    %953 = math.exp %952 : vector<16x8xf32>
    %954 = arith.mulf %953, %17 : vector<16x8xf32>
    %cst_358 = arith.constant dense<0.000000e+00> : vector<16xf32>
    %955 = vector.multi_reduction <add>, %954, %cst_358 [1] : vector<16x8xf32> to vector<16xf32>
    %956 = vector.shape_cast %955 : vector<16xf32> to vector<16x1xf32>
    %cst_359 = arith.constant 9.99999968E-21 : f32
    %957 = vector.broadcast %cst_359 : f32 to vector<16x1xf32>
    %958 = arith.maximumf %956, %957 : vector<16x1xf32>
    %959 = tpu.reciprocal %958 {approx = true} : vector<16x1xf32> -> vector<16x1xf32>
    %960 = vector.broadcast %959 : vector<16x1xf32> to vector<16x8xf32>
    %961 = arith.mulf %954, %960 : vector<16x8xf32>
    %962 = arith.truncf %961 : vector<16x8xf32> to vector<16x8xbf16>
    %cst_360 = arith.constant 0.000000e+00 : bf16
    %963 = vector.shape_cast %10 : vector<1x32xi1> to vector<1x32xi1>
    %964 = vector.broadcast %963 : vector<1x32xi1> to vector<8x32xi1>
    %965 = vector.broadcast %cst_360 : bf16 to vector<8x32xbf16>
    %966 = arith.select %964, %619, %965 : vector<8x32xi1>, vector<8x32xbf16>
    %cst_361 = arith.constant dense<0.000000e+00> : vector<16x32xf32>
    %967 = tpu.matmul %962, %966, %cst_361 {dimension_numbers = #tpu.dot_dimension_numbers<[1], [0], [0], [1], [0, 0, 1, 1], [], []>} : vector<16x8xbf16>, vector<8x32xbf16>, vector<16x32xf32> -> vector<16x32xf32>
    %968 = arith.addf %945, %967 : vector<16x32xf32>
    %cst_362 = arith.constant 5.000000e-01 : f32
    %969 = vector.broadcast %cst_362 : f32 to vector<16x32xf32>
    %970 = arith.mulf %969, %922 : vector<16x32xf32>
    %971 = arith.mulf %922, %922 : vector<16x32xf32>
    %972 = arith.mulf %971, %922 : vector<16x32xf32>
    %cst_363 = arith.constant 4.471500e-02 : f32
    %973 = vector.broadcast %cst_363 : f32 to vector<16x32xf32>
    %974 = arith.mulf %973, %972 : vector<16x32xf32>
    %975 = arith.addf %922, %974 : vector<16x32xf32>
    %cst_364 = arith.constant 0.797884583 : f32
    %976 = vector.broadcast %cst_364 : f32 to vector<16x32xf32>
    %977 = arith.mulf %976, %975 : vector<16x32xf32>
    %978 = math.tanh %977 : vector<16x32xf32>
    %cst_365 = arith.constant 1.000000e+00 : f32
    %979 = vector.broadcast %cst_365 : f32 to vector<16x32xf32>
    %980 = arith.addf %979, %978 : vector<16x32xf32>
    %981 = arith.mulf %970, %980 : vector<16x32xf32>
    %982 = arith.truncf %981 : vector<16x32xf32> to vector<16x32xbf16>
    %c1_366 = arith.constant 1 : index
    %c0_367 = arith.constant 0 : index
    %c0_368 = arith.constant 0 : index
    %c0_369 = arith.constant 0 : index
    %983 = vector.load %arg5[%c1_366, %c0_367, %c0_368, %c0_369] : memref<2x3x32x32xbf16, #tpu.memory_space<vmem>>, vector<1x1x32x32xbf16>
    %984 = vector.shape_cast %983 : vector<1x1x32x32xbf16> to vector<32x32xbf16>
    %cst_370 = arith.constant dense<0.000000e+00> : vector<16x32xf32>
    %985 = tpu.matmul %982, %984, %cst_370 {dimension_numbers = #tpu.dot_dimension_numbers<[1], [0], [0], [1], [0, 0, 1, 1], [], []>} : vector<16x32xbf16>, vector<32x32xbf16>, vector<16x32xf32> -> vector<16x32xf32>
    %c1_371 = arith.constant 1 : index
    %c0_372 = arith.constant 0 : index
    %c0_373 = arith.constant 0 : index
    %c0_374 = arith.constant 0 : index
    %986 = vector.load %arg6[%c1_371, %c0_372, %c0_373, %c0_374] : memref<2x3x1x32xf32, #tpu.memory_space<vmem>>, vector<1x1x1x32xf32>
    %987 = vector.shape_cast %986 : vector<1x1x1x32xf32> to vector<1x32xf32>
    %988 = vector.broadcast %987 : vector<1x32xf32> to vector<16x32xf32>
    %989 = arith.addf %985, %988 : vector<16x32xf32>
    %c3 = arith.constant 3 : index
    %990 = memref.load %arg16[%c3] : memref<6xf32, #tpu.memory_space<smem>>
    %991 = vector.broadcast %990 : f32 to vector<16x32xf32>
    %992 = arith.mulf %991, %989 : vector<16x32xf32>
    %cst_375 = arith.constant 1.000000e+00 : f32
    %993 = arith.subf %cst_375, %990 : f32
    %994 = vector.broadcast %993 : f32 to vector<16x32xf32>
    %995 = arith.mulf %994, %501 : vector<16x32xf32>
    %996 = arith.addf %992, %995 : vector<16x32xf32>
    %cst_376 = arith.constant 0.000000e+00 : f32
    %997 = vector.broadcast %cst_376 : f32 to vector<16x32xf32>
    %998 = arith.maximumf %996, %997 : vector<16x32xf32>
    %cst_377 = arith.constant 5.000000e-01 : f32
    %999 = vector.broadcast %cst_377 : f32 to vector<16x32xf32>
    %1000 = arith.mulf %999, %968 : vector<16x32xf32>
    %1001 = arith.mulf %968, %968 : vector<16x32xf32>
    %1002 = arith.mulf %1001, %968 : vector<16x32xf32>
    %cst_378 = arith.constant 4.471500e-02 : f32
    %1003 = vector.broadcast %cst_378 : f32 to vector<16x32xf32>
    %1004 = arith.mulf %1003, %1002 : vector<16x32xf32>
    %1005 = arith.addf %968, %1004 : vector<16x32xf32>
    %cst_379 = arith.constant 0.797884583 : f32
    %1006 = vector.broadcast %cst_379 : f32 to vector<16x32xf32>
    %1007 = arith.mulf %1006, %1005 : vector<16x32xf32>
    %1008 = math.tanh %1007 : vector<16x32xf32>
    %cst_380 = arith.constant 1.000000e+00 : f32
    %1009 = vector.broadcast %cst_380 : f32 to vector<16x32xf32>
    %1010 = arith.addf %1009, %1008 : vector<16x32xf32>
    %1011 = arith.mulf %1000, %1010 : vector<16x32xf32>
    %1012 = arith.truncf %1011 : vector<16x32xf32> to vector<16x32xbf16>
    %c1_381 = arith.constant 1 : index
    %c1_382 = arith.constant 1 : index
    %c0_383 = arith.constant 0 : index
    %c0_384 = arith.constant 0 : index
    %1013 = vector.load %arg5[%c1_381, %c1_382, %c0_383, %c0_384] : memref<2x3x32x32xbf16, #tpu.memory_space<vmem>>, vector<1x1x32x32xbf16>
    %1014 = vector.shape_cast %1013 : vector<1x1x32x32xbf16> to vector<32x32xbf16>
    %cst_385 = arith.constant dense<0.000000e+00> : vector<16x32xf32>
    %1015 = tpu.matmul %1012, %1014, %cst_385 {dimension_numbers = #tpu.dot_dimension_numbers<[1], [0], [0], [1], [0, 0, 1, 1], [], []>} : vector<16x32xbf16>, vector<32x32xbf16>, vector<16x32xf32> -> vector<16x32xf32>
    %c1_386 = arith.constant 1 : index
    %c1_387 = arith.constant 1 : index
    %c0_388 = arith.constant 0 : index
    %c0_389 = arith.constant 0 : index
    %1016 = vector.load %arg6[%c1_386, %c1_387, %c0_388, %c0_389] : memref<2x3x1x32xf32, #tpu.memory_space<vmem>>, vector<1x1x1x32xf32>
    %1017 = vector.shape_cast %1016 : vector<1x1x1x32xf32> to vector<1x32xf32>
    %1018 = vector.broadcast %1017 : vector<1x32xf32> to vector<16x32xf32>
    %1019 = arith.addf %1015, %1018 : vector<16x32xf32>
    %c4 = arith.constant 4 : index
    %1020 = memref.load %arg16[%c4] : memref<6xf32, #tpu.memory_space<smem>>
    %1021 = vector.broadcast %1020 : f32 to vector<16x32xf32>
    %1022 = arith.mulf %1021, %1019 : vector<16x32xf32>
    %cst_390 = arith.constant 1.000000e+00 : f32
    %1023 = arith.subf %cst_390, %1020 : f32
    %1024 = vector.broadcast %1023 : f32 to vector<16x32xf32>
    %1025 = arith.mulf %1024, %531 : vector<16x32xf32>
    %1026 = arith.addf %1022, %1025 : vector<16x32xf32>
    %cst_391 = arith.constant 0.000000e+00 : f32
    %1027 = vector.broadcast %cst_391 : f32 to vector<16x32xf32>
    %1028 = arith.maximumf %1026, %1027 : vector<16x32xf32>
    %cst_392 = arith.constant 5.000000e-01 : f32
    %1029 = vector.broadcast %cst_392 : f32 to vector<8x32xf32>
    %1030 = arith.mulf %1029, %876 : vector<8x32xf32>
    %1031 = arith.mulf %876, %876 : vector<8x32xf32>
    %1032 = arith.mulf %1031, %876 : vector<8x32xf32>
    %cst_393 = arith.constant 4.471500e-02 : f32
    %1033 = vector.broadcast %cst_393 : f32 to vector<8x32xf32>
    %1034 = arith.mulf %1033, %1032 : vector<8x32xf32>
    %1035 = arith.addf %876, %1034 : vector<8x32xf32>
    %cst_394 = arith.constant 0.797884583 : f32
    %1036 = vector.broadcast %cst_394 : f32 to vector<8x32xf32>
    %1037 = arith.mulf %1036, %1035 : vector<8x32xf32>
    %1038 = math.tanh %1037 : vector<8x32xf32>
    %cst_395 = arith.constant 1.000000e+00 : f32
    %1039 = vector.broadcast %cst_395 : f32 to vector<8x32xf32>
    %1040 = arith.addf %1039, %1038 : vector<8x32xf32>
    %1041 = arith.mulf %1030, %1040 : vector<8x32xf32>
    %1042 = arith.truncf %1041 : vector<8x32xf32> to vector<8x32xbf16>
    %c1_396 = arith.constant 1 : index
    %c2_397 = arith.constant 2 : index
    %c0_398 = arith.constant 0 : index
    %c0_399 = arith.constant 0 : index
    %1043 = vector.load %arg5[%c1_396, %c2_397, %c0_398, %c0_399] : memref<2x3x32x32xbf16, #tpu.memory_space<vmem>>, vector<1x1x32x32xbf16>
    %1044 = vector.shape_cast %1043 : vector<1x1x32x32xbf16> to vector<32x32xbf16>
    %cst_400 = arith.constant dense<0.000000e+00> : vector<8x32xf32>
    %1045 = tpu.matmul %1042, %1044, %cst_400 {dimension_numbers = #tpu.dot_dimension_numbers<[1], [0], [0], [1], [0, 0, 1, 1], [], []>} : vector<8x32xbf16>, vector<32x32xbf16>, vector<8x32xf32> -> vector<8x32xf32>
    %c1_401 = arith.constant 1 : index
    %c2_402 = arith.constant 2 : index
    %c0_403 = arith.constant 0 : index
    %c0_404 = arith.constant 0 : index
    %1046 = vector.load %arg6[%c1_401, %c2_402, %c0_403, %c0_404] : memref<2x3x1x32xf32, #tpu.memory_space<vmem>>, vector<1x1x1x32xf32>
    %1047 = vector.shape_cast %1046 : vector<1x1x1x32xf32> to vector<1x32xf32>
    %1048 = vector.broadcast %1047 : vector<1x32xf32> to vector<8x32xf32>
    %1049 = arith.addf %1045, %1048 : vector<8x32xf32>
    %c5 = arith.constant 5 : index
    %1050 = memref.load %arg16[%c5] : memref<6xf32, #tpu.memory_space<smem>>
    %1051 = vector.broadcast %1050 : f32 to vector<8x32xf32>
    %1052 = arith.mulf %1051, %1049 : vector<8x32xf32>
    %cst_405 = arith.constant 1.000000e+00 : f32
    %1053 = arith.subf %cst_405, %1050 : f32
    %1054 = vector.broadcast %1053 : f32 to vector<8x32xf32>
    %1055 = arith.mulf %1054, %561 : vector<8x32xf32>
    %1056 = arith.addf %1052, %1055 : vector<8x32xf32>
    %cst_406 = arith.constant 0.000000e+00 : f32
    %1057 = vector.broadcast %cst_406 : f32 to vector<8x32xf32>
    %1058 = arith.maximumf %1056, %1057 : vector<8x32xf32>
    %c0_407 = arith.constant 0 : index
    %c0_408 = arith.constant 0 : index
    %1059 = vector.load %arg14[%c0_407, %c0_408] : memref<32x16xbf16, #tpu.memory_space<vmem>>, vector<32x16xbf16>
    %c0_409 = arith.constant 0 : index
    %c0_410 = arith.constant 0 : index
    %1060 = vector.load %arg15[%c0_409, %c0_410] : memref<1x16xf32, #tpu.memory_space<vmem>>, vector<1x16xf32>
    %1061 = arith.truncf %998 : vector<16x32xf32> to vector<16x32xbf16>
    %cst_411 = arith.constant dense<0.000000e+00> : vector<16x16xf32>
    %1062 = tpu.matmul %1061, %1059, %cst_411 {dimension_numbers = #tpu.dot_dimension_numbers<[1], [0], [0], [1], [0, 0, 1, 1], [], []>} : vector<16x32xbf16>, vector<32x16xbf16>, vector<16x16xf32> -> vector<16x16xf32>
    %1063 = vector.broadcast %1060 : vector<1x16xf32> to vector<16x16xf32>
    %1064 = arith.addf %1062, %1063 : vector<16x16xf32>
    %c0_412 = arith.constant 0 : index
    %c0_413 = arith.constant 0 : index
    %1065 = vector.load %arg17[%c0_412, %c0_413] : memref<40x16xf32, #tpu.memory_space<vmem>>, vector<16x16xf32>
    tpu.vector_store %arg17[%c0_412, %c0_413], %1064 {strides = array<i32>} : memref<40x16xf32, #tpu.memory_space<vmem>>, vector<16x16xf32>,
    %1066 = arith.truncf %1028 : vector<16x32xf32> to vector<16x32xbf16>
    %cst_414 = arith.constant dense<0.000000e+00> : vector<16x16xf32>
    %1067 = tpu.matmul %1066, %1059, %cst_414 {dimension_numbers = #tpu.dot_dimension_numbers<[1], [0], [0], [1], [0, 0, 1, 1], [], []>} : vector<16x32xbf16>, vector<32x16xbf16>, vector<16x16xf32> -> vector<16x16xf32>
    %1068 = vector.broadcast %1060 : vector<1x16xf32> to vector<16x16xf32>
    %1069 = arith.addf %1067, %1068 : vector<16x16xf32>
    %c16_415 = arith.constant 16 : index
    %c0_416 = arith.constant 0 : index
    %1070 = vector.load %arg17[%c16_415, %c0_416] : memref<40x16xf32, #tpu.memory_space<vmem>>, vector<16x16xf32>
    tpu.vector_store %arg17[%c16_415, %c0_416], %1069 {strides = array<i32>} : memref<40x16xf32, #tpu.memory_space<vmem>>, vector<16x16xf32>,
    %1071 = arith.truncf %1058 : vector<8x32xf32> to vector<8x32xbf16>
    %cst_417 = arith.constant dense<0.000000e+00> : vector<8x16xf32>
    %1072 = tpu.matmul %1071, %1059, %cst_417 {dimension_numbers = #tpu.dot_dimension_numbers<[1], [0], [0], [1], [0, 0, 1, 1], [], []>} : vector<8x32xbf16>, vector<32x16xbf16>, vector<8x16xf32> -> vector<8x16xf32>
    %1073 = vector.broadcast %1060 : vector<1x16xf32> to vector<8x16xf32>
    %1074 = arith.addf %1072, %1073 : vector<8x16xf32>
    %c32_418 = arith.constant 32 : index
    %c0_419 = arith.constant 0 : index
    %1075 = vector.load %arg17[%c32_418, %c0_419] : memref<40x16xf32, #tpu.memory_space<vmem>>, vector<8x16xf32>
    tpu.vector_store %arg17[%c32_418, %c0_419], %1074 {strides = array<i32>} : memref<40x16xf32, #tpu.memory_space<vmem>>, vector<8x16xf32>,
    return
  }
}

</mosaic_0001>

<bundles_post_ra>
// kernel: hgt_forward.1
= control target key start
LH: loop header
LB: loop body
LE: loop exit
PB: predicated region body
PF: predicated region fallthrough
CT: control target
= control target key end

     0   :  { %s7717_s0 = inlined_call_operand.vmem [shape: f32[40,32], index: 0, kind: input, shape index: {}]   ;;  %s7718_s1 = inlined_call_operand.vmem [shape: bf16[3,32,32], index: 1, kind: input, shape index: {}]   ;;  %s7719_s2 = inlined_call_operand.hbm [shape: f32[3,1,32], index: 2, kind: input, shape index: {}]   ;;  %s7720_s3 = inlined_call_operand.hbm [shape: bf16[2,3,32,224], index: 3, kind: input, shape index: {}]   ;;  %s7721_s4 = inlined_call_operand.hbm [shape: f32[2,3,1,224], index: 4, kind: input, shape index: {}]   ;;  %s7722_s5 = inlined_call_operand.vmem [shape: bf16[2,3,32,32], index: 5, kind: input, shape index: {}]   ;;  %s7723_s6 = inlined_call_operand.hbm [shape: f32[2,3,1,32], index: 6, kind: input, shape index: {}]   ;;  %s7724_s7 = inlined_call_operand.vmem [shape: f32[16,16], index: 7, kind: input, shape index: {}]   ;;  %s7725_s8 = inlined_call_operand.hbm [shape: f32[16,16], index: 8, kind: input, shape index: {}]   ;;  %s7726_s9 = inlined_call_operand.hbm [shape: f32[8,8], index: 9, kind: input, shape index: {}]   ;;  %s7727_s10 = inlined_call_operand.hbm [shape: f32[8,16], index: 10, kind: input, shape index: {}]   ;;  %s7728_s11 = inlined_call_operand.hbm [shape: f32[8,16], index: 11, kind: input, shape index: {}]   ;;  %s7729_s12 = inlined_call_operand.vmem [shape: f32[16,8], index: 12, kind: input, shape index: {}]   ;;  %s7730_s13 = inlined_call_operand.vmem [shape: f32[16,8], index: 13, kind: input, shape index: {}]   ;;  %s7731_s14 = inlined_call_operand.vmem [shape: bf16[32,16], index: 14, kind: input, shape index: {}]   ;;  %s7732_s15 = inlined_call_operand.hbm [shape: f32[1,16], index: 15, kind: input, shape index: {}]   ;;  %s7733_s16 = inlined_call_operand.hbm [shape: f32[6], index: 16, kind: input, shape index: {}]   ;;  %s7734_s17 = inlined_call_operand.vmem [shape: f32[40,16], index: 17, kind: output, shape index: {}]  }
   0x1   :  { %7753 = sst [smem:[#allocation25_spill]] %s7717_s0 }
   0x2   :  { %7754 = sst [smem:[#allocation26_spill]] %s7718_s1 }
   0x3   :  { %22 = vsyncpa [#allocation3], 0 }
   0x4   :  { %23 = vsyncpa [#allocation6], 0 }
   0x5   :  { %24 = vsyncpa [#allocation9], 0 }
   0x6   :  { %25 = vsyncpa [#allocation12], 0 }
   0x7   :  { %26 = vsyncpa [#allocation15], 0 }
   0x8   :  { %27 = vsyncpa [#allocation4], 0  ;;  %s6213_s24 = smov [#allocation5]  }
   0x9   :  { %s49_s25 = sshll.u32 %s6213_s24, 4  ;;  %s50_s25 = int_to_ptr.vmem [resolvable:$true] %s49_s25 }
   0xa   :  { %s6021_s26 = scalar_lea.vmem %s50_s25, 3072  ;;  %p6026_p1 = scmp.lt.s32.totalorder %s50_s25, %s50_s25 }
   0xb   :  { %p6022_p0 = scmp.ne.s32.totalorder %s50_s25, %s6021_s26  ;;  %p6027_p2 = scmp.lt.s32.totalorder %s6021_s26, %s6021_s26 }
   0xd   :  { %p6028_p3 = por %p6027_p2, %p6026_p1 }
   0xf   :  { %p6029_p4 = pnand %p6028_p3, %p6022_p0 }
  0x11   :  { %6032 = shalt.err (!%p6029_p4)
}
  0x12   :  { %s6214_s27 = smov 128   ;;  %s6215_s28 = smov 8  }
  0x13   :  { %55 = dma.hbm_to_vmem [thread:$0]  %s7720_s3, 3072, %s50_s25, [#allocation6], %s6214_s27, %s6214_s27, %s6215_s28  }
  0x14   :  { %s6216_s30 = smov [#allocation8]   ;;  %s6217_s19 = smov [#allocation11]  }
  0x15   :  { %s75_s18 = sshll.u32 %s6216_s30, 4  ;;  %s102_s1 = sshll.u32 %s6217_s19, 4  ;;  %s76_s18 = int_to_ptr.vmem [resolvable:$true] %s75_s18  ;;  %s103_s1 = int_to_ptr.vmem [resolvable:$true] %s102_s1 }
  0x16   :  { %s6041_s20 = scalar_lea.vmem %s76_s18, 96  ;;  %p6046_p6 = scmp.lt.s32.totalorder %s76_s18, %s76_s18 }
  0x17   :  { %p6042_p5 = scmp.ne.s32.totalorder %s76_s18, %s6041_s20  ;;  %p6047_p7 = scmp.lt.s32.totalorder %s6041_s20, %s6041_s20 }
  0x19   :  { %p6048_p8 = por %p6047_p7, %p6046_p6 }
  0x1b   :  { %p6049_p9 = pnand %p6048_p8, %p6042_p5 }
  0x1d   :  { %6052 = shalt.err (!%p6049_p9)
}
  0x1e   :  { %s6218_s21 = smov 16   ;;  %s6219_s22 = smov 1  }
  0x1f   :  { %81 = dma.hbm_to_vmem [thread:$0]  %s7723_s6, 96, %s76_s18, [#allocation9], %s6218_s21, %s6218_s21, %s6219_s22  }
  0x20   :  { %s6061_s3 = scalar_lea.vmem %s103_s1, 128  ;;  %p6066_p11 = scmp.lt.s32.totalorder %s103_s1, %s103_s1 }
  0x21   :  { %p6062_p10 = scmp.ne.s32.totalorder %s103_s1, %s6061_s3  ;;  %p6067_p12 = scmp.lt.s32.totalorder %s6061_s3, %s6061_s3 }
  0x23   :  { %p6068_p13 = por %p6067_p12, %p6066_p11 }
  0x25   :  { %p6069_p0 = pnand %p6068_p13, %p6062_p10 }
  0x27   :  { %6072 = shalt.err (!%p6069_p0)
}
  0x28   :  { %105 = dma.hbm_to_vmem [thread:$0]  %s7726_s9, 128, %s103_s1, [#allocation12]  }
  0x29   :  { %s6220_s29 = smov [#allocation14]   ;;  %s6221_s30 = smov [#allocation2]  }
  0x2a   :  { %s122_s0 = sshll.u32 %s6220_s29, 4  ;;  %s37_s19 = sshll.u32 %s6221_s30, 4  ;;  %s123_s0 = int_to_ptr.vmem [resolvable:$true] %s122_s0  ;;  %s38_s19 = int_to_ptr.vmem [resolvable:$true] %s37_s19 }
  0x2b   :  { %s6081_s20 = scalar_lea.vmem %s123_s0, 128  ;;  %p6086_p2 = scmp.lt.s32.totalorder %s123_s0, %s123_s0 }
  0x2c   :  { %p6082_p1 = scmp.ne.s32.totalorder %s123_s0, %s6081_s20  ;;  %p6087_p3 = scmp.lt.s32.totalorder %s6081_s20, %s6081_s20 }
  0x2e   :  { %p6088_p4 = por %p6087_p3, %p6086_p2 }
  0x30   :  { %p6089_p5 = pnand %p6088_p4, %p6082_p1 }
  0x32   :  { %6092 = shalt.err (!%p6089_p5)
}
  0x33   :  { %125 = dma.hbm_to_vmem [thread:$0]  %s7728_s11, 128, %s123_s0, [#allocation15]  }
  0x34   :  { %s6101_s23 = scalar_lea.vmem %s38_s19, 48  ;;  %s6105_s9 = scalar_lea.vmem %s38_s19, 64 }
  0x35   :  { %p6102_p6 = scmp.ne.s32.totalorder %s38_s19, %s6101_s23  ;;  %p6106_p7 = scmp.lt.s32.totalorder %s38_s19, %s38_s19 }
  0x36   :  { %p6107_p8 = scmp.lt.s32.totalorder %s6105_s9, %s6101_s23 }
  0x38   :  { %p6108_p9 = por %p6107_p8, %p6106_p7 }
  0x3a   :  { %p6109_p10 = pnand %p6108_p9, %p6102_p6 }
  0x3c   :  { %6112 = shalt.err (!%p6109_p10)
}
  0x3d   :  { %43 = dma.hbm_to_vmem [thread:$0]  %s7719_s2, 48, %s38_s19, [#allocation3], %s6218_s21, %s6218_s21, %s6219_s22  }
  0x3e   :  { %s6222_s3 = smov [#allocation7]  }
  0x3f   :  { %s61_s25 = sshll.u32 %s6222_s3, 4  ;;  %s62_s25 = int_to_ptr.vmem [resolvable:$true] %s61_s25 }
  0x40   :  { %s6121_s11 = scalar_lea.vmem %s62_s25, 192  ;;  %p6126_p12 = scmp.lt.s32.totalorder %s62_s25, %s62_s25 }
  0x41   :  { %p6122_p11 = scmp.ne.s32.totalorder %s62_s25, %s6121_s11  ;;  %p6127_p13 = scmp.lt.s32.totalorder %s6121_s11, %s6121_s11 }
  0x43   :  { %p6128_p0 = por %p6127_p13, %p6126_p12 }
  0x45   :  { %p6129_p1 = pnand %p6128_p0, %p6122_p11 }
  0x47   :  { %6132 = shalt.err (!%p6129_p1)
}
  0x48   :  { %s6223_s26 = smov 32   ;;  %s6224_s29 = smov 2  }
  0x49   :  { %67 = dma.hbm_to_vmem [thread:$0]  %s7721_s4, 192, %s62_s25, [#allocation6], %s6223_s26, %s6223_s26, %s6224_s29  }
  0x4a   :  { %s6225_s20 = smov [#allocation10]   ;;  %s6226_s21 = smov [#allocation13]  }
  0x4b   :  { %s89_s2 = sshll.u32 %s6225_s20, 4  ;;  %s112_s22 = sshll.u32 %s6226_s21, 4  ;;  %s90_s2 = int_to_ptr.vmem [resolvable:$true] %s89_s2  ;;  %s113_s22 = int_to_ptr.vmem [resolvable:$true] %s112_s22 }
  0x4c   :  { %s6141_s19 = scalar_lea.vmem %s90_s2, 256  ;;  %p6146_p3 = scmp.lt.s32.totalorder %s90_s2, %s90_s2 }
  0x4d   :  { %p6142_p2 = scmp.ne.s32.totalorder %s90_s2, %s6141_s19  ;;  %p6147_p4 = scmp.lt.s32.totalorder %s6141_s19, %s6141_s19 }
  0x4f   :  { %p6148_p5 = por %p6147_p4, %p6146_p3 }
  0x51   :  { %p6149_p6 = pnand %p6148_p5, %p6142_p2 }
  0x53   :  { %6152 = shalt.err (!%p6149_p6)
}
  0x54   :  { %95 = dma.hbm_to_vmem [thread:$0]  %s7725_s8, 256, %s90_s2, [#allocation9], %s6214_s27, %s6214_s27, %s6215_s28  }
  0x55   :  { %s6161_s4 = scalar_lea.vmem %s113_s22, 128  ;;  %p6166_p8 = scmp.lt.s32.totalorder %s113_s22, %s113_s22 }
  0x56   :  { %p6162_p7 = scmp.ne.s32.totalorder %s113_s22, %s6161_s4  ;;  %p6167_p9 = scmp.lt.s32.totalorder %s6161_s4, %s6161_s4 }
  0x58   :  { %p6168_p10 = por %p6167_p9, %p6166_p8 }
  0x5a   :  { %p6169_p11 = pnand %p6168_p10, %p6162_p7 }
  0x5c   :  { %6172 = shalt.err (!%p6169_p11)
}
  0x5d   :  { %115 = dma.hbm_to_vmem [thread:$0]  %s7727_s10, 128, %s113_s22, [#allocation12]  }
  0x5e   :  { %s6227_s1 = smov [#allocation16]  }
  0x5f   :  { %s138_s24 = sshll.u32 %s6227_s1, 4  ;;  %s139_s24 = int_to_ptr.vmem [resolvable:$true] %s138_s24 }
  0x60   :  { %s6181_s3 = scalar_lea.vmem %s139_s24, 16  ;;  %s6185_s25 = scalar_lea.vmem %s139_s24, 32 }
  0x61   :  { %p6182_p12 = scmp.ne.s32.totalorder %s139_s24, %s6181_s3  ;;  %p6186_p13 = scmp.lt.s32.totalorder %s139_s24, %s139_s24 }
  0x62   :  { %p6187_p0 = scmp.lt.s32.totalorder %s6185_s25, %s6181_s3 }
  0x64   :  { %p6188_p1 = por %p6187_p0, %p6186_p13 }
  0x66   :  { %p6189_p2 = pnand %p6188_p1, %p6182_p12 }
  0x68   :  { %6192 = shalt.err (!%p6189_p2)
}
  0x69   :  { %141 = dma.hbm_to_vmem [thread:$0]  %s7732_s15, 16, %s139_s24, [#allocation15]  }
  0x6a   :  { %s6228_s28 = smov [#allocation17]  }
  0x6b   :  { %149 = dma.hbm_to_smem %s7733_s16, 16, %s6228_s28, [#allocation4]  }
  0x6c   :  { %6201 = dma.done.wait [#allocation3], 48  }
  0x6d   :  { %6202 = vsyncadd [#allocation3], 4294967248 }
  0x6e   :  { %6203 = dma.done.wait [#allocation6], 3264  }
  0x6f   :  { %6204 = vsyncadd [#allocation6], 4294964032 }
  0x70   :  { %6205 = dma.done.wait [#allocation9], 352  }
  0x71   :  { %6206 = vsyncadd [#allocation9], 4294966944 }
  0x72   :  { %6207 = dma.done.wait [#allocation12], 256  }
  0x73   :  { %6208 = vsyncadd [#allocation12], 4294967040 }
  0x74   :  { %6209 = dma.done.wait [#allocation15], 144  }
  0x75   :  { %6210 = vsyncadd [#allocation15], 4294967152 }
  0x76   :  { %6211 = dma.done.wait [#allocation4], 16  }
  0x77   :  { %6212 = vsyncadd [#allocation4], 4294967280 }
  0x78   :  { %180 = sfence }
  0x79   :  { %s7755_s0 = sld [smem:[#allocation26_spill]]  ;;  %v7749_v1 = vmov 0.0   ;;  %vm6230_vm0 = vmmov 0   ;;  %vm240_vm1 = vcmask 261120   ;;  %v5755_v11 = vld [vmem:[#allocation5 + $0x14] ss:$8 sps:$4 sm:$0xff]   ;;  %v184_v56 = vlaneseq }
  0x7a   :  { %5296 = vmatprep.subr.bf16.mxu0 %v7749_v1  ;;  %5304 = vmatprep.subr.bf16.mxu1 %v7749_v1  ;;  %s7756_s21 = sld [smem:[#allocation25_spill]]  ;;  %v5753_v12 = vld [vmem:[#allocation5 + $0x10] ss:$8 sps:$4 sm:$0xff]   ;;  %v5758_v13 = vld [vmem:[#allocation5 + $0x4] ss:$8 sps:$4 sm:$0xff]   ;;  %v7747_v15 = vmov 0  }
  0x7b   :  { %5300 = vmatprep.mubr.msk.bf16.mxu0 %vm6230_vm0, %v7749_v1  ;;  %5308 = vmatprep.mubr.msk.bf16.mxu1 %vm6230_vm0, %v7749_v1  ;;  %v5756_v14 = vld [vmem:[#allocation5] ss:$8 sps:$4 sm:$0xff]   ;;  %v5763_v19 = vld [vmem:[#allocation5 + $0x34] ss:$8 sps:$4 sm:$0xff]   ;;  %v5761_v21 = vld [vmem:[#allocation5 + $0x30] ss:$8 sps:$4 sm:$0xff]  }
  0x7c   :  { %v5766_v22 = vld [vmem:[#allocation5 + $0x24] ss:$8 sps:$4 sm:$0xff]   ;;  %v5764_v23 = vld [vmem:[#allocation5 + $0x20] ss:$8 sps:$4 sm:$0xff]   ;;  %v4987_v24 = vld [vmem:[#allocation2] ss:$0 sm:$0xff] }
  0x7d   :  { %v4995_v26 = vld [vmem:[#allocation2 + $0x1] ss:$0 sm:$0xff]  ;;  %v5767_v44 = vld [vmem:[#allocation5 + $0x50] ss:$8 sps:$4 sm:$0xff]   ;;  %v5003_v46 = vld [vmem:[#allocation2 + $0x2] ss:$0 sm:$0xff] }
  0x7e   :  { %v5769_v45 = vld [vmem:[#allocation5 + $0x54] ss:$8 sps:$4 sm:$0xff]   ;;  %v5772_v49 = vld [vmem:[#allocation5 + $0x44] ss:$8 sps:$4 sm:$0xff]   ;;  %v5770_v52 = vld [vmem:[#allocation5 + $0x40] ss:$8 sps:$4 sm:$0xff]  }
  0x7f   :  { %v5749_v0 = vld [vmem:[%s7755_s0 + $0x8] sm:$0xff]   ;;  %v5750_v2 = vld [vmem:[%s7755_s0] sm:$0xff]   ;;  %v5751_v5 = vld [vmem:[%s7755_s0 + $0x18] sm:$0xff]   ;;  %v440_v57 = vshrl.u32 %v184_v56, 7  ;;  %s6232_s10 = smov 96   ;;  %vm765_vm11 = vcmask 130048  }
  0x80   :  { %5297 = vmatpush3.bf16.msra.mxu0 %v5749_v0  ;;  %v214_v3 = vld [vmem:[%s7756_s21] sm:$0xff]  ;;  %v215_v4 = vld [vmem:[%s7756_s21 + $0x8] sm:$0xff]  ;;  %v5752_v6 = vld [vmem:[%s7755_s0 + $0x10] sm:$0xff]   ;;  %5305 = vmatpush3.bf16.msra.mxu1 %v5751_v5  ;;  %s6233_s20 = smov 64   ;;  %s2437_s16 = sld [smem:[#allocation17]] }
  0x81   :  { %5298 = vmatprep.subr.bf16.mxu0 %v7749_v1  ;;  %v216_v7 = vpack.c.bf16 %v215_v4, %v214_v3  ;;  %v287_v8 = vld [vmem:[%s7756_s21 + $0x10] sm:$0xff]  ;;  %v288_v9 = vld [vmem:[%s7756_s21 + $0x18] sm:$0xff]  ;;  %5306 = vmatprep.subr.bf16.mxu1 %v7749_v1  ;;  %v5759_v16 = vld [vmem:[%s7755_s0 + $0x28] sm:$0xff]   ;;  %v6452_v58 = vsub.s32 0, %v440_v57  ;;  %v6457_v63 = vsub.s32 1, %v440_v57  ;;  %s5071_s30 = sld [smem:[#allocation17 + $0x2]] }
  0x82   :  { %v289_v10 = vpack.c.bf16 %v288_v9, %v287_v8  ;;  %v5760_v17 = vld [vmem:[%s7755_s0 + $0x20] sm:$0xff]   ;;  %s5062_s22 = sld [smem:[#allocation17 + $0x1]] }
  0x83   :  { %v361_v18 = vld [vmem:[%s7756_s21 + $0x20] sm:$0xff]  ;;  %s5141_s6 = sld [smem:[#allocation17 + $0x5]] }
  0x84   :  { %5299 = vmatpush3.bf16.msra.mxu0 %v5750_v2  ;;  %5307 = vmatpush3.bf16.msra.mxu1 %v5752_v6  ;;  %v362_v20 = vpack.c.bf16 %v361_v18, %v361_v18  ;;  %v437_v59 = vld [vmem:[#allocation7] sm:$0x3]  ;;  %v524_v2 = vld [vmem:[#allocation7 + $0x2] sm:$0x3] }
  0x85   :  { %5312 = vmatprep.subr.bf16.mxu0 %v7749_v1  ;;  %484 = vmatprep.subr.bf16.mxu1 %v5755_v11  ;;  %v442_v61 = vrot.slane %v437_v59, %v6452_v58  ;;  %v529_v6 = vrot.slane %v524_v2, %v6452_v58 }
  0x86   :  { %s2441_s2 = ssub.f32 1.0, %s2437_s16 }
  0x87   :  { %5301 = vmatmul.mubr.msk.bf16.vlgmr.msra.gmra.mxu0 %vm240_vm1, %v216_v7  ;;  %5309 = vmatmul.mubr.msk.bf16.vlgmr.msra.gmra.mxu1 %vm240_vm1, %v289_v10  ;;  %v533_v7 = vrot.slane %v524_v2, %v6457_v63  ;;  %s2630_s21 = ssub.f32 1.0, %s5071_s30 }
  0x88   :  { %5316 = vmatprep.mubr.msk.bf16.mxu0 %vm6230_vm0, %v7749_v1  ;;  %485 = vmatpush1.bf16.msra.mxu1 %v5753_v12  ;;  %s2541_s19 = ssub.f32 1.0, %s5062_s22 }
  0x89   :  { %486 = vmatprep.subr.bf16.mxu1 %v5758_v13  ;;  %504 = vmatprep.mubr.bf16.mxu1 %v7747_v15  ;;  %s4810_s4 = ssub.f32 1.0, %s5141_s6 }
  0x8a   :  { %5313 = vmatpush3.bf16.msra.mxu0 %v5759_v16 }
  0x8b   :  { %5314 = vmatprep.subr.bf16.mxu0 %v7749_v1 }
  0x8c   :  { %487 = vmatpush1.bf16.msra.mxu1 %v5756_v14 }
  0x8d   :  { %658 = vmatprep.subr.bf16.mxu1 %v5769_v45 }
  0x8e   :  { %5315 = vmatpush3.bf16.msra.mxu0 %v5760_v17 }
  0x8f   :  { %571 = vmatprep.subr.bf16.mxu0 %v5763_v19  ;;  %v6469_v19 = vld [vmem:[#allocation7 + $0x4] sm:$0x3] }
  0x91   :  { %5317 = vmatmul.mubr.msk.bf16.vlgmr.msra.gmra.mxu0 %vm240_vm1, %v362_v20 }
  0x92   :  { %572 = vmatpush1.bf16.msra.mxu0 %v5761_v21  ;;  %591 = vmatprep.mubr.bf16.mxu0 %v7747_v15  ;;  %v620_v21 = vrot.slane %v6469_v19, %v6457_v63 }
  0x93   :  { %573 = vmatprep.subr.bf16.mxu0 %v5766_v22 }
  0x96   :  { %574 = vmatpush1.bf16.msra.mxu0 %v5764_v23 }
  0x97   :  { %5320 = vmatprep.subr.bf16.mxu0 %v7749_v1 }
 0x147   :  { %v278_v25 = vpop.f32.mrf.mxu0  ;;  %v352_v29 = vpop.f32.mrf.mxu1 }
 0x148   :  { %v6419_v28 = vadd.f32 %v4987_v24, %v278_v25  ;;  %v6421_v31 = vadd.f32 %v4995_v26, %v352_v29 }
 0x149   :  { %v5302_v27 = vpop.f32.mrf.mxu0  ;;  %v5310_v33 = vpop.f32.mrf.mxu1 }
 0x14a   :  { %v7746_v35 = vmax.f32 %v6419_v28, 0.0  ;;  %v7742_v38 = vmax.f32 %v6421_v31, 0.0  ;;  %v185_v27 = vand.u32 127, %v184_v56 }
 0x14b   :  { %v281_v30 = vpop.f32.mrf.mxu0  ;;  %v355_v37 = vpop.f32.mrf.mxu1 }
 0x14c   :  { %v6423_v32 = vadd.f32 %v4987_v24, %v281_v30  ;;  %v6428_v39 = vadd.f32 %v4995_v26, %v355_v37  ;;  %vm189_vm2 = vcmp.ge.s32.totalorder %v185_v27, 16  ;;  %vm190_vm3 = vcmp.lt.s32.totalorder %v185_v27, 32 }
 0x14d   :  { %v5303_v34 = vpop.f32.mrf.mxu0  ;;  %v5311_v41 = vpop.f32.mrf.mxu1  ;;  %vm187_vm4 = vcmp.lt.s32.totalorder %v185_v27, 16  ;;  %vm191_vm5 = vmand %vm189_vm2, %vm190_vm3 }
 0x14e   :  { %v7743_v36 = vmax.f32 %v6423_v32, 0.0  ;;  %v7741_v42 = vmax.f32 %v6428_v39, 0.0  ;;  %vm6479_vm6 = vmpackc.low %vm187_vm4, %vm187_vm4  ;;  %vm1270_vm4 = vcmask 64512  }
 0x14f   :  { %vm6483_vm7 = vmpackc.low %vm191_vm5, %vm191_vm5  ;;  %v692_v33 = vsel %vm6479_vm6, 65537, %v7747_v15  ;;  %vm1351_vm5 = vcmask 1043456  }
 0x150   :  { %v432_v40 = vpack.c.bf16 %v7743_v36, %v7746_v35  ;;  %v517_v43 = vpack.c.bf16 %v7741_v42, %v7742_v38  ;;  %v702_v34 = vsel %vm6483_vm7, 65537, %v7747_v15  ;;  %v6495_v41 = vrot.slane %v692_v33, %v6452_v58 }
 0x151   :  { %v425_v47 = vpop.f32.mrf.mxu0 }
 0x152   :  { %5011 = vmatmul.mubr.msk.bf16.vlgmr.msra.gmra.mxu1 %vm240_vm1, %v432_v40  ;;  %5016 = vmatmul.mubr.msk.bf16.vlgmr.msra.gmra.mxu0 %vm240_vm1, %v517_v43  ;;  %v426_v48 = vadd.f32 %v5003_v46, %v425_v47  ;;  %v6498_v43 = vrot.slane %v702_v34, %v6452_v58  ;;  %vm697_vm8 = vcmp.ne.s16.totalorder %v6495_v41, 0  ;;  %v6525_v46 = vld [vmem:[%s7724_s7] sm:$0xff]  ;;  %v6531_v47 = vld [vmem:[%s7724_s7 + $0x8] sm:$0xff] }
 0x153   :  { %678 = vmatprep.mubr.bf16.mxu1 %v7747_v15  ;;  %5322 = vmatprep.mubr.msk.bf16.mxu0 %vm6230_vm0, %v7749_v1  ;;  %v5318_v50 = vpop.f32.mrf.mxu0  ;;  %vm203_vm10 = vcmp.gt.f32.partialorder %v6525_v46, 0.0  ;;  %vm204_vm12 = vcmp.gt.f32.partialorder %v6531_v47, 0.0 }
 0x154   :  { %v6444_v51 = vmax.f32 %v426_v48, 0.0  ;;  %659 = vmatpush1.bf16.msra.mxu1 %v5767_v44  ;;  %vm707_vm9 = vcmp.ne.s16.totalorder %v6498_v43, 0 }
 0x155   :  { %660 = vmatprep.subr.bf16.mxu1 %v5772_v49  ;;  %v428_v53 = vpop.f32.mrf.mxu0 }
 0x156   :  { %v604_v54 = vpack.c.bf16 %v6444_v51, %v6444_v51 }
 0x157   :  { %v5319_v55 = vpop.f32.mrf.mxu0 }
 0x158   :  { %661 = vmatpush1.bf16.msra.mxu1 %v5770_v52 }
 0x159   :  { %5326 = vmatprep.subr.bf16.mxu1 %v7749_v1 }
 0x15b   :  { %5021 = vmatmul.mubr.msk.bf16.vlgmr.msra.gmra.mxu1 %vm240_vm1, %v604_v54 }
 0x15c   :  { %5328 = vmatprep.mubr.msk.bf16.mxu1 %vm6230_vm0, %v7749_v1 }
 0x212   :  { %v506_v60 = vpop.f32.mrf.mxu1  ;;  %v593_v3 = vpop.f32.mrf.mxu0 }
 0x213   :  { %v507_v4 = vadd.f32 %v506_v60, %v442_v61  ;;  %v594_v10 = vadd.f32 %v593_v3, %v529_v6 }
 0x214   :  { %v6455_v62 = vpop.f32.mrf.mxu1  ;;  %v595_v8 = vpop.f32.mrf.mxu0 }
 0x215   :  { %v596_v11 = vadd.f32 %v595_v8, %v533_v7 }
 0x216   :  { %v510_v0 = vpop.f32.mrf.mxu1  ;;  %v597_v12 = vpop.f32.mrf.mxu0 }
 0x217   :  { %v511_v5 = vadd.f32 %v510_v0, %v442_v61  ;;  %v598_v13 = vadd.f32 %v597_v12, %v529_v6 }
 0x218   :  { %v599_v14 = vpop.f32.mrf.mxu0  ;;  %v6471_v20 = vpop.f32.mrf.mxu1 }
 0x219   :  { %v6461_v9 = vpack.c.bf16 %v511_v5, %v507_v4  ;;  %v6465_v16 = vpack.c.bf16 %v598_v13, %v594_v10  ;;  %v600_v17 = vadd.f32 %v599_v14, %v533_v7 }
 0x21b   :  { %714 = vrot.lane.b32.xlu0 %v6461_v9, %s6232_s10  ;;  %v6467_v18 = vpack.c.bf16 %v600_v17, %v596_v11  ;;  %v6475_v22 = vpop.f32.mrf.mxu1  ;;  %v6507_v44 = vsel %vm697_vm8, %v6461_v9, 0  ;;  %v6512_v45 = vsel %vm707_vm9, %v6461_v9, 0 }
 0x21d   :  { %v682_v23 = vpop.f32.mrf.mxu1 }
 0x21e   :  { %v6477_v24 = vadd.f32 %v682_v23, %v620_v21 }
 0x21f   :  { %v684_v25 = vpop.f32.mrf.mxu1 }
 0x221   :  { %v685_v26 = vpop.f32.mrf.mxu1 }
 0x28d   :  { %v715_v37 = vpop.permute.xlu0 %714 }
 0x28e   :  { %v720_v40 = vsel %vm240_vm1, %v715_v37, 0 }
 0x28f   :  { %5321 = vmatpush3.bf16.xpose.msra.mxu0 %v720_v40  ;;  %5327 = vmatpush3.bf16.xpose.msra.mxu1 %v720_v40 }
 0x290   :  { %5332 = vmatprep.subr.bf16.mxu0 %v7749_v1  ;;  %5338 = vmatprep.subr.bf16.mxu1 %v7749_v1 }
 0x296   :  { %5323 = vmatmul.mubr.msk.bf16.vlgmr.msra.gmra.mxu0 %vm240_vm1, %v6507_v44  ;;  %5329 = vmatmul.mubr.msk.bf16.vlgmr.msra.gmra.mxu1 %vm240_vm1, %v6512_v45 }
 0x297   :  { %5334 = vmatprep.mubr.msk.bf16.mxu0 %vm6230_vm0, %v7749_v1  ;;  %5340 = vmatprep.mubr.msk.bf16.mxu1 %vm6230_vm0, %v7749_v1 }
 0x356   :  { %v756_v48 = vpop.f32.mrf.mxu0  ;;  %v834_v49 = vpop.f32.mrf.mxu1 }
 0x357   :  { %v841_v50 = vsel %vm203_vm10, %v834_v49, -1e+30  ;;  %v763_v25 = vsel %vm203_vm10, %v756_v48, -1e+30 }
 0x358   :  { %v5324_v52 = vpop.f32.mrf.mxu0  ;;  %v5330_v53 = vpop.f32.mrf.mxu1  ;;  %v843_v54 = vsel %vm765_vm11, %v841_v50, -inf  ;;  %v766_v26 = vsel %vm765_vm11, %v763_v25, -inf }
 0x359   :  { %844 = vmax.xlane.f32.xlu0 %v843_v54 }
 0x35a   :  { %v759_v55 = vpop.f32.mrf.mxu0  ;;  %v837_v56 = vpop.f32.mrf.mxu1 }
 0x35b   :  { %v842_v57 = vsel %vm204_vm12, %v837_v56, -1e+30  ;;  %v764_v21 = vsel %vm204_vm12, %v759_v55, -1e+30  ;;  %v6573_v56 = vsel %vm697_vm8, %v6465_v16, 0 }
 0x35c   :  { %v5325_v59 = vpop.f32.mrf.mxu0  ;;  %v5331_v60 = vpop.f32.mrf.mxu1  ;;  %v846_v61 = vsel %vm765_vm11, %v842_v57, -inf  ;;  %v769_v23 = vsel %vm765_vm11, %v764_v21, -inf }
 0x35d   :  { %847 = vmax.xlane.f32.xlu1 %v846_v61 }
 0x36e   :  { %870 = vrot.lane.b32.xlu1 %v6498_v43, %s6233_s20 }
 0x3e2   :  { %v845_v0 = vpop.xlane.xlu0 %844 }
 0x3e3   :  { %v849_v2 = vsub.f32 %v841_v50, %v845_v0 }
 0x3e5   :  { %v851_v3 = vmul.f32 1.442695, %v849_v2 }
 0x3e6   :  { %v848_v4 = vpop.xlane.xlu1 %847 }
 0x3e7   :  { %5805 = vpow2.f32 %v851_v3  ;;  %v850_v5 = vsub.f32 %v842_v57, %v848_v4 }
 0x3e9   :  { %v853_v6 = vmul.f32 1.442695, %v850_v5 }
 0x3ea   :  { %v6548_v14 = vpop.permute.xlu1 %870 }
 0x3eb   :  { %5807 = vpow2.f32 %v853_v6  ;;  %vm872_vm13 = vcmp.ne.s16.totalorder %v6548_v14, 0 }
 0x3ec   :  { %v873_v17 = vsel %vm872_vm13, %v6461_v9, 0 }
 0x3f4   :  { %v5806_v7 = vpop.eup %5805 }
 0x3f5   :  { %v855_v8 = vmul.f32 %v5806_v7, %v6525_v46 }
 0x3f7   :  { %v857_v10 = vsel %vm765_vm11, %v855_v8, 0.0 }
 0x3f8   :  { %v5808_v11 = vpop.eup %5807  ;;  %858 = vadd.xlane.f32.xlu1 %v857_v10 }
 0x3f9   :  { %v856_v12 = vmul.f32 %v5808_v11, %v6531_v47 }
 0x3fb   :  { %v860_v13 = vsel %vm765_vm11, %v856_v12, 0.0 }
 0x3fc   :  { %861 = vadd.xlane.f32.xlu0 %v860_v13 }
 0x409   :  { %971 = vrot.lane.b32.xlu1 %v6465_v16, %s6232_s10 }
 0x412   :  { %875 = vrot.lane.b32.xlu0 %v873_v17, %s6233_s20 }
 0x42d   :  { %770 = vmax.xlane.f32.xlu1 %v769_v23 }
 0x431   :  { %767 = vmax.xlane.f32.xlu0 %v766_v26 }
 0x481   :  { %v859_v27 = vpop.xlane.xlu1 %858 }
 0x482   :  { %v863_v33 = vmax.f32 %v859_v27, 1e-20 }
 0x484   :  { %5809 = vrcp.f32 %v863_v33 }
 0x485   :  { %v862_v34 = vpop.xlane.xlu0 %861  ;;  %v972_v54 = vpop.permute.xlu1 %971 }
 0x486   :  { %v864_v37 = vmax.f32 %v862_v34, 1e-20  ;;  %v6563_v55 = vsel %vm240_vm1, %v972_v54, 0 }
 0x488   :  { %5811 = vrcp.f32 %v864_v37 }
 0x489   :  { %v876_v40 = vpop.permute.xlu0 %875 }
 0x48a   :  { %5333 = vmatpush3.bf16.msra.mxu0 %v876_v40 }
 0x48b   :  { %5344 = vmatprep.subr.bf16.mxu0 %v7749_v1 }
 0x491   :  { %v5810_v49 = vpop.eup %5809 }
 0x492   :  { %v867_v52 = vmul.f32 %v5810_v49, %v855_v8 }
 0x495   :  { %v5812_v50 = vpop.eup %5811 }
 0x496   :  { %v868_v53 = vmul.f32 %v5812_v50, %v856_v12  ;;  %v6588_v12 = vld [vmem:[#allocation10] sm:$0xff] }
 0x497   :  { %vm205_vm14 = vcmp.gt.f32.partialorder %v6588_v12, 0.0 }
 0x498   :  { %v869_v48 = vpack.c.bf16 %v868_v53, %v867_v52 }
 0x49a   :  { %5335 = vmatmul.mubr.msk.bf16.vlgmr.msra.gmra.mxu0 %vm765_vm11, %v869_v48 }
 0x49b   :  { %5345 = vmatpush3.bf16.xpose.msra.mxu0 %v6563_v55  ;;  %5346 = vmatprep.mubr.msk.bf16.mxu0 %vm6230_vm0, %v7749_v1 }
 0x49c   :  { %5356 = vmatprep.subr.bf16.mxu0 %v7749_v1 }
 0x4a2   :  { %5347 = vmatmul.mubr.msk.bf16.vlgmr.msra.gmra.mxu0 %vm240_vm1, %v6573_v56 }
 0x4a3   :  { %5358 = vmatprep.mubr.msk.bf16.mxu0 %vm6230_vm0, %v7749_v1 }
 0x4b6   :  { %v771_v57 = vpop.xlane.xlu1 %770 }
 0x4b7   :  { %v773_v59 = vsub.f32 %v764_v21, %v771_v57  ;;  %v6593_v21 = vld [vmem:[#allocation10 + $0x8] sm:$0xff] }
 0x4b8   :  { %vm7737_vm15 = vcmp.gt.f32.partialorder %v6593_v21, 0.0 }
 0x4b9   :  { %v776_v60 = vmul.f32 1.442695, %v773_v59 }
 0x4ba   :  { %v768_v61 = vpop.xlane.xlu0 %767 }
 0x4bb   :  { %v772_v0 = vsub.f32 %v763_v25, %v768_v61  ;;  %5813 = vpow2.f32 %v776_v60 }
 0x4bd   :  { %v774_v2 = vmul.f32 1.442695, %v772_v0 }
 0x4bf   :  { %5815 = vpow2.f32 %v774_v2 }
 0x4c8   :  { %v5814_v3 = vpop.eup %5813 }
 0x4c9   :  { %v779_v7 = vmul.f32 %v5814_v3, %v6531_v47 }
 0x4cb   :  { %v783_v8 = vsel %vm765_vm11, %v779_v7, 0.0 }
 0x4cc   :  { %v5816_v4 = vpop.eup %5815 }
 0x4cd   :  { %v6580_v5 = vmul.f32 %v5816_v4, %v6525_v46  ;;  %v616_v4 = vrot.slane %v6469_v19, %v6452_v58  ;;  %v6002_v46 = vld [vmem:[%s7724_s7] sm:$0xff] }
 0x4cf   :  { %v780_v6 = vsel %vm765_vm11, %v6580_v5, 0.0 }
 0x4d0   :  { %781 = vadd.xlane.f32.xlu1 %v780_v6 }
 0x4d4   :  { %784 = vadd.xlane.f32.xlu1 %v783_v8  ;;  %v681_v8 = vadd.f32 %v6475_v22, %v616_v4 }
 0x559   :  { %v782_v19 = vpop.xlane.xlu1 %781 }
 0x55a   :  { %v6586_v10 = vpop.f32.mrf.mxu0 }
 0x55c   :  { %v5336_v11 = vpop.f32.mrf.mxu0 }
 0x55e   :  { %v6590_v13 = vpop.f32.mrf.mxu0 }
 0x560   :  { %v5337_v17 = vpop.f32.mrf.mxu0 }
 0x561   :  { %v6622_v17 = vpack.c.bf16 %v681_v8, %v681_v8 }
 0x562   :  { %v1013_v23 = vpop.f32.mrf.mxu0 }
 0x563   :  { %v1020_v25 = vsel %vm205_vm14, %v1013_v23, -1e+30  ;;  %v785_v23 = vpop.xlane.xlu1 %784  ;;  %v6654_v4 = vsel %vm6483_vm7, %v6622_v17, 0 }
 0x564   :  { %v5348_v26 = vpop.f32.mrf.mxu0  ;;  %v1022_v27 = vsel %vm765_vm11, %v1020_v25, -inf }
 0x565   :  { %1023 = vmax.xlane.f32.xlu0 %v1022_v27  ;;  %v786_v26 = vmax.f32 %v782_v19, 1e-20 }
 0x566   :  { %v1016_v33 = vpop.f32.mrf.mxu0 }
 0x567   :  { %v1021_v34 = vsel %vm7737_vm15, %v1016_v33, -1e+30 }
 0x568   :  { %v5349_v37 = vpop.f32.mrf.mxu0  ;;  %v1025_v40 = vsel %vm765_vm11, %v1021_v34, -inf }
 0x569   :  { %1026 = vmax.xlane.f32.xlu0 %v1025_v40 }
 0x57f   :  { %793 = vrot.lane.b32.xlu0 %v6495_v41, %s6233_s20 }
 0x5ee   :  { %v1024_v49 = vpop.xlane.xlu0 %1023 }
 0x5ef   :  { %v1028_v50 = vsub.f32 %v1020_v25, %v1024_v49  ;;  %v787_v25 = vmax.f32 %v785_v23, 1e-20 }
 0x5f1   :  { %v1030_v52 = vmul.f32 1.442695, %v1028_v50 }
 0x5f2   :  { %v1027_v53 = vpop.xlane.xlu0 %1026 }
 0x5f3   :  { %5817 = vpow2.f32 %v1030_v52  ;;  %v1029_v54 = vsub.f32 %v1021_v34, %v1027_v53 }
 0x5f5   :  { %v1032_v48 = vmul.f32 1.442695, %v1029_v54 }
 0x5f6   :  { %v6608_v3 = vpop.permute.xlu0 %793 }
 0x5f7   :  { %5819 = vpow2.f32 %v1032_v48  ;;  %vm795_vm2 = vcmp.ne.s16.totalorder %v6608_v3, 0 }
 0x5f8   :  { %v796_v6 = vsel %vm795_vm2, %v6461_v9, 0  ;;  %v1049_v11 = vsel %vm795_vm2, %v6465_v16, 0  ;;  %5821 = vrcp.f32 %v787_v25 }
 0x5f9   :  { %5823 = vrcp.f32 %v786_v26 }
 0x600   :  { %v5818_v57 = vpop.eup %5817 }
 0x601   :  { %v1034_v59 = vmul.f32 %v5818_v57, %v6588_v12 }
 0x603   :  { %v1036_v60 = vsel %vm765_vm11, %v1034_v59, 0.0 }
 0x604   :  { %v5820_v61 = vpop.eup %5819  ;;  %1037 = vadd.xlane.f32.xlu1 %v1036_v60 }
 0x605   :  { %v1035_v0 = vmul.f32 %v5820_v61, %v6593_v21  ;;  %v5822_v27 = vpop.eup %5821 }
 0x606   :  { %v5824_v22 = vpop.eup %5823  ;;  %v791_v37 = vmul.f32 %v5822_v27, %v779_v7 }
 0x607   :  { %v1039_v2 = vsel %vm765_vm11, %v1035_v0, 0.0  ;;  %v790_v50 = vmul.f32 %v5824_v22, %v6580_v5  ;;  %v6636_v5 = vsel %vm707_vm9, %v6465_v16, 0 }
 0x608   :  { %1040 = vadd.xlane.f32.xlu0 %v1039_v2 }
 0x609   :  { %v792_v53 = vpack.c.bf16 %v791_v37, %v790_v50 }
 0x615   :  { %923 = vrot.lane.b32.xlu1 %v796_v6, %s6233_s20 }
 0x619   :  { %1173 = vrot.lane.b32.xlu1 %v1049_v11, %s6233_s20 }
 0x61d   :  { %1221 = vrot.lane.b32.xlu1 %v6622_v17, %s6232_s10 }
 0x68d   :  { %v1038_v33 = vpop.xlane.xlu1 %1037 }
 0x68e   :  { %v1042_v34 = vmax.f32 %v1038_v33, 1e-20 }
 0x690   :  { %5825 = vrcp.f32 %v1042_v34 }
 0x691   :  { %v924_v40 = vpop.permute.xlu1 %923  ;;  %v1041_v49 = vpop.xlane.xlu0 %1040 }
 0x692   :  { %v1043_v52 = vmax.f32 %v1041_v49, 1e-20  ;;  %5339 = vmatpush3.bf16.msra.mxu1 %v924_v40  ;;  %v6672_v40 = vld [vmem:[#allocation11] sm:$0xff] }
 0x693   :  { %5350 = vmatprep.subr.bf16.mxu1 %v7749_v1  ;;  %vm7738_vm3 = vcmp.gt.f32.partialorder %v6672_v40, 0.0 }
 0x694   :  { %5827 = vrcp.f32 %v1043_v52 }
 0x695   :  { %5341 = vmatmul.mubr.msk.bf16.vlgmr.msra.gmra.mxu1 %vm765_vm11, %v792_v53  ;;  %v1174_v7 = vpop.permute.xlu1 %1173 }
 0x696   :  { %5351 = vmatpush3.bf16.xpose.msra.mxu1 %v6563_v55  ;;  %5352 = vmatprep.mubr.msk.bf16.mxu1 %vm6230_vm0, %v7749_v1 }
 0x697   :  { %5362 = vmatprep.subr.bf16.mxu1 %v7749_v1 }
 0x699   :  { %v1222_v60 = vpop.permute.xlu1 %1221 }
 0x69a   :  { %v6644_v2 = vsel %vm240_vm1, %v1222_v60, 0 }
 0x69d   :  { %5353 = vmatmul.mubr.msk.bf16.vlgmr.msra.gmra.mxu1 %vm240_vm1, %v6636_v5  ;;  %v5826_v54 = vpop.eup %5825 }
 0x69e   :  { %5363 = vmatpush3.bf16.msra.mxu1 %v1174_v7  ;;  %5364 = vmatprep.mubr.msk.bf16.mxu1 %vm6230_vm0, %v7749_v1  ;;  %v1046_v48 = vmul.f32 %v5826_v54, %v1034_v59  ;;  %v1344_v54 = vsel %vm872_vm13, %v6622_v17, 0 }
 0x69f   :  { %5374 = vmatprep.subr.bf16.mxu1 %v7749_v1 }
 0x6a1   :  { %v5828_v55 = vpop.eup %5827 }
 0x6a2   :  { %v1047_v57 = vmul.f32 %v5828_v55, %v1035_v0 }
 0x6a4   :  { %v1048_v61 = vpack.c.bf16 %v1047_v57, %v1046_v48 }
 0x6a6   :  { %5365 = vmatmul.mubr.msk.bf16.vlgmr.msra.gmra.mxu1 %vm765_vm11, %v1048_v61 }
 0x6a7   :  { %5375 = vmatpush3.bf16.xpose.msra.mxu1 %v6644_v2  ;;  %5376 = vmatprep.mubr.msk.bf16.mxu1 %vm6230_vm0, %v7749_v1 }
 0x6a8   :  { %5386 = vmatprep.subr.bf16.mxu1 %v7749_v1 }
 0x6ae   :  { %5377 = vmatmul.mubr.msk.bf16.vlgmr.msra.gmra.mxu1 %vm240_vm1, %v6654_v4 }
 0x6af   :  { %5388 = vmatprep.mubr.msk.bf16.mxu1 %vm6230_vm0, %v7749_v1 }
 0x755   :  { %v6660_v59 = vpop.f32.mrf.mxu1 }
 0x757   :  { %v5342_v0 = vpop.f32.mrf.mxu1 }
 0x759   :  { %v6662_v6 = vpop.f32.mrf.mxu1 }
 0x75b   :  { %v5343_v8 = vpop.f32.mrf.mxu1 }
 0x75d   :  { %v1087_v11 = vpop.f32.mrf.mxu1 }
 0x75e   :  { %v1094_v19 = vsel %vm205_vm14, %v1087_v11, -1e+30 }
 0x75f   :  { %v5354_v23 = vpop.f32.mrf.mxu1  ;;  %v1096_v25 = vsel %vm765_vm11, %v1094_v19, -inf }
 0x760   :  { %1097 = vmax.xlane.f32.xlu1 %v1096_v25 }
 0x761   :  { %v1090_v26 = vpop.f32.mrf.mxu1 }
 0x762   :  { %v1095_v27 = vsel %vm7737_vm15, %v1090_v26, -1e+30 }
 0x763   :  { %v5355_v33 = vpop.f32.mrf.mxu1  ;;  %v1099_v22 = vsel %vm765_vm11, %v1095_v27, -inf }
 0x764   :  { %1100 = vmax.xlane.f32.xlu0 %v1099_v22 }
 0x766   :  { %v6670_v34 = vpop.f32.mrf.mxu1 }
 0x768   :  { %v5366_v37 = vpop.f32.mrf.mxu1 }
 0x76a   :  { %v6674_v49 = vpop.f32.mrf.mxu1 }
 0x76c   :  { %v5367_v50 = vpop.f32.mrf.mxu1 }
 0x76e   :  { %v1323_v52 = vpop.f32.mrf.mxu1 }
 0x76f   :  { %v1329_v53 = vsel %vm7738_vm3, %v1323_v52, -1e+30 }
 0x770   :  { %v5378_v7 = vpop.f32.mrf.mxu1  ;;  %v1330_v55 = vsel %vm1270_vm4, %v1329_v53, -inf }
 0x771   :  { %1346 = vrot.lane.b32.xlu1 %v1344_v54, %s6233_s20  ;;  %1331 = vmax.xlane.f32.xlu0 %v1330_v55 }
 0x772   :  { %v1326_v48 = vpop.f32.mrf.mxu1 }
 0x773   :  { %v6702_v48 = vpack.c.bf16 %v6477_v24, %v6477_v24 }
 0x774   :  { %v5379_v57 = vpop.f32.mrf.mxu1 }
 0x775   :  { %1854 = vrot.lane.b32.xlu1 %v6622_v17, %s6223_s26 }
 0x7e9   :  { %v1098_v60 = vpop.xlane.xlu1 %1097 }
 0x7ea   :  { %v1102_v61 = vsub.f32 %v1094_v19, %v1098_v60 }
 0x7ec   :  { %v1104_v0 = vmul.f32 1.442695, %v1102_v61 }
 0x7ed   :  { %v1101_v8 = vpop.xlane.xlu0 %1100 }
 0x7ee   :  { %5829 = vpow2.f32 %v1104_v0  ;;  %v1103_v11 = vsub.f32 %v1095_v27, %v1101_v8 }
 0x7f0   :  { %v1106_v23 = vmul.f32 1.442695, %v1103_v11 }
 0x7f2   :  { %5831 = vpow2.f32 %v1106_v23 }
 0x7fa   :  { %v1332_v25 = vpop.xlane.xlu0 %1331 }
 0x7fb   :  { %v5830_v26 = vpop.eup %5829  ;;  %v1333_v33 = vsub.f32 %v1329_v53, %v1332_v25  ;;  %v1123_v53 = vsel %vm872_vm13, %v6465_v16, 0 }
 0x7fc   :  { %v1108_v22 = vmul.f32 %v5830_v26, %v6588_v12 }
 0x7fd   :  { %v1334_v37 = vmul.f32 1.442695, %v1333_v33  ;;  %v1347_v33 = vpop.permute.xlu1 %1346 }
 0x7fe   :  { %v1110_v50 = vsel %vm765_vm11, %v1108_v22, 0.0 }
 0x7ff   :  { %v5832_v52 = vpop.eup %5831  ;;  %5833 = vpow2.f32 %v1334_v37  ;;  %1111 = vadd.xlane.f32.xlu0 %v1110_v50  ;;  %v1353_v50 = vsel %vm1351_vm5, %v1347_v33, 0 }
 0x800   :  { %v1109_v7 = vmul.f32 %v5832_v52, %v6593_v21 }
 0x802   :  { %v1113_v19 = vsel %vm765_vm11, %v1109_v7, 0.0 }
 0x803   :  { %1114 = vadd.xlane.f32.xlu0 %v1113_v19 }
 0x80c   :  { %v5834_v54 = vpop.eup %5833 }
 0x80d   :  { %v1336_v27 = vmul.f32 %v5834_v54, %v6672_v40 }
 0x80f   :  { %v1337_v55 = vsel %vm1270_vm4, %v1336_v27, 0.0 }
 0x810   :  { %1338 = vadd.xlane.f32.xlu0 %v1337_v55  ;;  %v1855_v55 = vpop.permute.xlu1 %1854 }
 0x826   :  { %1125 = vrot.lane.b32.xlu0 %v1123_v53, %s6233_s20  ;;  %v1857_v53 = vsel %vm240_vm1, %v1855_v55, 0  ;;  %v6792_v55 = vld [vmem:[#allocation14] sm:$0xff] }
 0x82a   :  { %1444 = vrot.lane.b32.xlu0 %v6461_v9, %s6223_s26 }
 0x82e   :  { %1649 = vrot.lane.b32.xlu0 %v6465_v16, %s6223_s26 }
 0x832   :  { %2100 = vrot.lane.b32.xlu0 %v6702_v48, %s6232_s10 }
 0x888   :  { %v1112_v57 = vpop.xlane.xlu0 %1111 }
 0x889   :  { %v1116_v60 = vmax.f32 %v1112_v57, 1e-20 }
 0x88b   :  { %5835 = vrcp.f32 %v1116_v60 }
 0x88c   :  { %v1115_v61 = vpop.xlane.xlu0 %1114 }
 0x88d   :  { %v1117_v0 = vmax.f32 %v1115_v61, 1e-20 }
 0x88f   :  { %5837 = vrcp.f32 %v1117_v0 }
 0x898   :  { %v5836_v11 = vpop.eup %5835 }
 0x899   :  { %v1339_v8 = vpop.xlane.xlu0 %1338  ;;  %v1120_v16 = vmul.f32 %v5836_v11, %v1108_v22  ;;  %v711_v22 = vsel %vm6479_vm6, %v6622_v17, 0 }
 0x89a   :  { %v1340_v23 = vmax.f32 %v1339_v8, 1e-20 }
 0x89c   :  { %v5838_v9 = vpop.eup %5837  ;;  %5839 = vrcp.f32 %v1340_v23 }
 0x89d   :  { %v1126_v25 = vpop.permute.xlu0 %1125  ;;  %v1121_v26 = vmul.f32 %v5838_v9, %v1109_v7 }
 0x89e   :  { %5357 = vmatpush3.bf16.msra.mxu0 %v1126_v25 }
 0x89f   :  { %v1122_v24 = vpack.c.bf16 %v1121_v26, %v1120_v16  ;;  %5368 = vmatprep.subr.bf16.mxu0 %v7749_v1  ;;  %v6777_v16 = vld [vmem:[#allocation13] sm:$0xff] }
 0x8a0   :  { %vm7739_vm15 = vcmp.gt.f32.partialorder %v6777_v16, 0.0 }
 0x8a1   :  { %5359 = vmatmul.mubr.msk.bf16.vlgmr.msra.gmra.mxu0 %vm765_vm11, %v1122_v24  ;;  %v1445_v52 = vpop.permute.xlu0 %1444 }
 0x8a2   :  { %5369 = vmatpush3.bf16.xpose.msra.mxu0 %v6644_v2  ;;  %5370 = vmatprep.mubr.msk.bf16.mxu0 %vm6230_vm0, %v7749_v1  ;;  %v1447_v19 = vsel %vm240_vm1, %v1445_v52, 0 }
 0x8a3   :  { %5380 = vmatprep.subr.bf16.mxu0 %v7749_v1 }
 0x8a5   :  { %v1650_v54 = vpop.permute.xlu0 %1649 }
 0x8a9   :  { %v5840_v37 = vpop.eup %5839  ;;  %5371 = vmatmul.mubr.msk.bf16.vlgmr.msra.gmra.mxu0 %vm240_vm1, %v711_v22  ;;  %v2101_v57 = vpop.permute.xlu0 %2100 }
 0x8aa   :  { %5381 = vmatpush3.bf16.msra.mxu0 %v1353_v50  ;;  %5382 = vmatprep.mubr.msk.bf16.mxu0 %vm6230_vm0, %v7749_v1  ;;  %v1342_v2 = vmul.f32 %v5840_v37, %v1336_v27  ;;  %v1652_v27 = vsel %vm240_vm1, %v1650_v54, 0  ;;  %v2103_v60 = vsel %vm240_vm1, %v2101_v57, 0 }
 0x8ab   :  { %5392 = vmatprep.subr.bf16.mxu0 %v7749_v1 }
 0x8ac   :  { %v1343_v7 = vpack.c.bf16 %v1342_v2, %v1342_v2 }
 0x8b1   :  { %5383 = vmatmul.mubr.msk.bf16.vlgmr.msra.gmra.mxu0 %vm1270_vm4, %v1343_v7 }
 0x8b2   :  { %5393 = vmatpush3.bf16.xpose.msra.mxu0 %v1447_v19  ;;  %5394 = vmatprep.mubr.msk.bf16.mxu0 %vm6230_vm0, %v7749_v1 }
 0x8b3   :  { %5404 = vmatprep.subr.bf16.mxu0 %v7749_v1 }
 0x8b9   :  { %5395 = vmatmul.mubr.msk.bf16.vlgmr.msra.gmra.mxu0 %vm240_vm1, %v711_v22 }
 0x8ba   :  { %5405 = vmatpush3.bf16.xpose.msra.mxu0 %v1447_v19  ;;  %5406 = vmatprep.mubr.msk.bf16.mxu0 %vm6230_vm0, %v7749_v1 }
 0x8bb   :  { %5416 = vmatprep.subr.bf16.mxu0 %v7749_v1 }
 0x8c1   :  { %5407 = vmatmul.mubr.msk.bf16.vlgmr.msra.gmra.mxu0 %vm240_vm1, %v6654_v4 }
 0x8c2   :  { %5417 = vmatpush3.bf16.xpose.msra.mxu0 %v1652_v27  ;;  %5418 = vmatprep.mubr.msk.bf16.mxu0 %vm6230_vm0, %v7749_v1 }
 0x8c3   :  { %5428 = vmatprep.subr.bf16.mxu0 %v7749_v1 }
 0x8c9   :  { %5419 = vmatmul.mubr.msk.bf16.vlgmr.msra.gmra.mxu0 %vm240_vm1, %v711_v22 }
 0x8ca   :  { %5429 = vmatpush3.bf16.xpose.msra.mxu0 %v1652_v27  ;;  %5430 = vmatprep.mubr.msk.bf16.mxu0 %vm6230_vm0, %v7749_v1 }
 0x8cb   :  { %5440 = vmatprep.subr.bf16.mxu0 %v7749_v1 }
 0x8d1   :  { %5431 = vmatmul.mubr.msk.bf16.vlgmr.msra.gmra.mxu0 %vm240_vm1, %v6654_v4 }
 0x8d2   :  { %5441 = vmatpush3.bf16.xpose.msra.mxu0 %v1857_v53  ;;  %5442 = vmatprep.mubr.msk.bf16.mxu0 %vm6230_vm0, %v7749_v1 }
 0x8d3   :  { %5452 = vmatprep.subr.bf16.mxu0 %v7749_v1 }
 0x8d9   :  { %5443 = vmatmul.mubr.msk.bf16.vlgmr.msra.gmra.mxu0 %vm240_vm1, %v6507_v44 }
 0x8da   :  { %5453 = vmatpush3.bf16.xpose.msra.mxu0 %v1857_v53  ;;  %5454 = vmatprep.mubr.msk.bf16.mxu0 %vm6230_vm0, %v7749_v1 }
 0x8db   :  { %5464 = vmatprep.subr.bf16.mxu0 %v7749_v1 }
 0x8e1   :  { %5455 = vmatmul.mubr.msk.bf16.vlgmr.msra.gmra.mxu0 %vm240_vm1, %v6512_v45 }
 0x8e2   :  { %5465 = vmatpush3.bf16.xpose.msra.mxu0 %v2103_v60  ;;  %5466 = vmatprep.mubr.msk.bf16.mxu0 %vm6230_vm0, %v7749_v1 }
 0x8e3   :  { %5476 = vmatprep.subr.bf16.mxu0 %v7749_v1 }
 0x8e9   :  { %5467 = vmatmul.mubr.msk.bf16.vlgmr.msra.gmra.mxu0 %vm240_vm1, %v6573_v56 }
 0x8ea   :  { %5477 = vmatpush3.bf16.xpose.msra.mxu0 %v2103_v60  ;;  %5478 = vmatprep.mubr.msk.bf16.mxu0 %vm6230_vm0, %v7749_v1 }
 0x8eb   :  { %5488 = vmatprep.subr.bf16.mxu0 %v7749_v1 }
 0x8f1   :  { %5479 = vmatmul.mubr.msk.bf16.vlgmr.msra.gmra.mxu0 %vm240_vm1, %v6636_v5 }
 0x8f2   :  { %5492 = vmatprep.mubr.msk.bf16.mxu0 %vm6230_vm0, %v7749_v1 }
 0x961   :  { %v6765_v44 = vpop.f32.mrf.mxu0 }
 0x963   :  { %v5360_v45 = vpop.f32.mrf.mxu0 }
 0x965   :  { %v6767_v4 = vpop.f32.mrf.mxu0 }
 0x967   :  { %v5361_v61 = vpop.f32.mrf.mxu0 }
 0x969   :  { %v1263_v0 = vpop.f32.mrf.mxu0 }
 0x96a   :  { %v6771_v56 = vsel %vm7738_vm3, %v1263_v0, -1e+30  ;;  %vm7740_vm3 = vcmp.gt.f32.partialorder %v6792_v55, 0.0 }
 0x96b   :  { %v5372_v8 = vpop.f32.mrf.mxu0  ;;  %v1271_v11 = vsel %vm1270_vm4, %v6771_v56, -inf }
 0x96c   :  { %1272 = vmax.xlane.f32.xlu1 %v1271_v11 }
 0x96d   :  { %v1266_v5 = vpop.f32.mrf.mxu0 }
 0x96f   :  { %v5373_v23 = vpop.f32.mrf.mxu0 }
 0x971   :  { %v6775_v9 = vpop.f32.mrf.mxu0 }
 0x973   :  { %v5384_v25 = vpop.f32.mrf.mxu0 }
 0x975   :  { %v1392_v26 = vpop.f32.mrf.mxu0 }
 0x977   :  { %v5385_v24 = vpop.f32.mrf.mxu0 }
 0x978   :  { %v6810_v24 = vld [vmem:[%s7729_s12] sm:$0xff] }
 0x979   :  { %v1483_v33 = vpop.f32.mrf.mxu0 }
 0x97a   :  { %v6782_v22 = vsel %vm7739_vm15, %v1483_v33, -1e+30 }
 0x97b   :  { %v5396_v37 = vpop.f32.mrf.mxu0  ;;  %v1490_v50 = vsel %vm765_vm11, %v6782_v22, -inf }
 0x97c   :  { %1491 = vmax.xlane.f32.xlu0 %v1490_v50  ;;  %v6816_v50 = vld [vmem:[%s7729_s12 + $0x8] sm:$0xff] }
 0x97d   :  { %v1486_v2 = vpop.f32.mrf.mxu0  ;;  %7761 = vst [vmem:[#allocation24_spill] sm:$0xff] %v6816_v50 }
 0x97f   :  { %v5397_v52 = vpop.f32.mrf.mxu0 }
 0x981   :  { %v1583_v7 = vpop.f32.mrf.mxu0 }
 0x982   :  { %v6788_v19 = vsel %vm7739_vm15, %v1583_v7, -1e+30  ;;  %vm7745_vm15 = vcmp.gt.f32.partialorder %v6810_v24, 0.0 }
 0x983   :  { %v5408_v54 = vpop.f32.mrf.mxu0  ;;  %v1590_v27 = vsel %vm765_vm11, %v6788_v19, -inf }
 0x984   :  { %1591 = vmax.xlane.f32.xlu0 %v1590_v27 }
 0x985   :  { %v1586_v53 = vpop.f32.mrf.mxu0 }
 0x987   :  { %v5409_v57 = vpop.f32.mrf.mxu0 }
 0x989   :  { %v1688_v60 = vpop.f32.mrf.mxu0 }
 0x98a   :  { %v6797_v45 = vsel %vm7740_vm3, %v1688_v60, -1e+30 }
 0x98b   :  { %v5420_v61 = vpop.f32.mrf.mxu0  ;;  %v1695_v0 = vsel %vm765_vm11, %v6797_v45, -inf }
 0x98c   :  { %1696 = vmax.xlane.f32.xlu1 %v1695_v0 }
 0x98d   :  { %v1691_v8 = vpop.f32.mrf.mxu0 }
 0x98f   :  { %v5421_v11 = vpop.f32.mrf.mxu0 }
 0x991   :  { %v1788_v5 = vpop.f32.mrf.mxu0 }
 0x992   :  { %v6803_v23 = vsel %vm7740_vm3, %v1788_v5, -1e+30  ;;  %vm7744_vm3 = vcmp.gt.f32.partialorder %v6816_v50, 0.0 }
 0x993   :  { %v5432_v25 = vpop.f32.mrf.mxu0  ;;  %v1795_v26 = vsel %vm765_vm11, %v6803_v23, -inf }
 0x994   :  { %1796 = vmax.xlane.f32.xlu0 %v1795_v26 }
 0x995   :  { %v1791_v33 = vpop.f32.mrf.mxu0 }
 0x997   :  { %v5433_v37 = vpop.f32.mrf.mxu0 }
 0x999   :  { %v1893_v2 = vpop.f32.mrf.mxu0 }
 0x99a   :  { %v6820_v52 = vsel %vm7745_vm15, %v1893_v2, -1e+30 }
 0x99b   :  { %v5444_v7 = vpop.f32.mrf.mxu0  ;;  %v1902_v54 = vsel %vm1270_vm4, %v6820_v52, -inf }
 0x99c   :  { %1903 = vmax.xlane.f32.xlu1 %v1902_v54 }
 0x99d   :  { %v1896_v27 = vpop.f32.mrf.mxu0 }
 0x99e   :  { %v6827_v53 = vsel %vm7744_vm3, %v1896_v27, -1e+30 }
 0x99f   :  { %v5445_v57 = vpop.f32.mrf.mxu0  ;;  %v1905_v60 = vsel %vm1270_vm4, %v6827_v53, -inf }
 0x9a0   :  { %1906 = vmax.xlane.f32.xlu0 %v1905_v60 }
 0x9a1   :  { %v2013_v61 = vpop.f32.mrf.mxu0 }
 0x9a2   :  { %v6833_v0 = vsel %vm7745_vm15, %v2013_v61, -1e+30 }
 0x9a3   :  { %v5456_v8 = vpop.f32.mrf.mxu0  ;;  %v2022_v11 = vsel %vm1270_vm4, %v6833_v0, -inf }
 0x9a4   :  { %2023 = vmax.xlane.f32.xlu1 %v2022_v11 }
 0x9a5   :  { %v2016_v5 = vpop.f32.mrf.mxu0 }
 0x9a6   :  { %v6839_v25 = vsel %vm7744_vm3, %v2016_v5, -1e+30 }
 0x9a7   :  { %v5457_v26 = vpop.f32.mrf.mxu0  ;;  %v2025_v33 = vsel %vm1270_vm4, %v6839_v25, -inf }
 0x9a8   :  { %2026 = vmax.xlane.f32.xlu0 %v2025_v33 }
 0x9a9   :  { %v6843_v37 = vpop.f32.mrf.mxu0 }
 0x9ab   :  { %v5468_v2 = vpop.f32.mrf.mxu0 }
 0x9ad   :  { %v6845_v7 = vpop.f32.mrf.mxu0 }
 0x9af   :  { %v5469_v54 = vpop.f32.mrf.mxu0 }
 0x9b1   :  { %v6847_v27 = vpop.f32.mrf.mxu0 }
 0x9b3   :  { %v5480_v57 = vpop.f32.mrf.mxu0 }
 0x9b5   :  { %v6849_v60 = vpop.f32.mrf.mxu0 }
 0x9b7   :  { %v5481_v61 = vpop.f32.mrf.mxu0 }
 0x9f5   :  { %v1273_v8 = vpop.xlane.xlu1 %1272 }
 0x9f6   :  { %v1274_v11 = vsub.f32 %v6771_v56, %v1273_v8 }
 0x9f8   :  { %v1275_v5 = vmul.f32 1.442695, %v1274_v11 }
 0x9fa   :  { %5841 = vpow2.f32 %v1275_v5 }
 0xa05   :  { %v1492_v26 = vpop.xlane.xlu0 %1491 }
 0xa06   :  { %v1493_v33 = vsub.f32 %v6782_v22, %v1492_v26 }
 0xa07   :  { %v5842_v42 = vpop.eup %5841 }
 0xa08   :  { %v1494_v38 = vmul.f32 1.442695, %v1493_v33  ;;  %v6854_v2 = vmul.f32 %v5842_v42, %v6672_v40 }
 0xa0a   :  { %5843 = vpow2.f32 %v1494_v38  ;;  %v1278_v54 = vsel %vm1270_vm4, %v6854_v2, 0.0 }
 0xa0b   :  { %1279 = vadd.xlane.f32.xlu1 %v1278_v54 }
 0xa0d   :  { %v1592_v57 = vpop.xlane.xlu0 %1591 }
 0xa0e   :  { %v1593_v61 = vsub.f32 %v6788_v19, %v1592_v57 }
 0xa10   :  { %v1594_v36 = vmul.f32 1.442695, %v1593_v61 }
 0xa12   :  { %5845 = vpow2.f32 %v1594_v36 }
 0xa15   :  { %v1697_v56 = vpop.xlane.xlu1 %1696 }
 0xa16   :  { %v1698_v8 = vsub.f32 %v6797_v45, %v1697_v56 }
 0xa17   :  { %v5844_v11 = vpop.eup %5843 }
 0xa18   :  { %v1699_v22 = vmul.f32 1.442695, %v1698_v8  ;;  %v6861_v5 = vmul.f32 %v5844_v11, %v6777_v16 }
 0xa1a   :  { %5847 = vpow2.f32 %v1699_v22  ;;  %v1497_v38 = vsel %vm765_vm11, %v6861_v5, 0.0 }
 0xa1b   :  { %1498 = vadd.xlane.f32.xlu0 %v1497_v38 }
 0xa1d   :  { %v1797_v42 = vpop.xlane.xlu0 %1796 }
 0xa1e   :  { %v1798_v26 = vsub.f32 %v6803_v23, %v1797_v42 }
 0xa1f   :  { %v5846_v33 = vpop.eup %5845 }
 0xa20   :  { %v1799_v19 = vmul.f32 1.442695, %v1798_v26  ;;  %v6867_v36 = vmul.f32 %v5846_v33, %v6777_v16 }
 0xa22   :  { %5849 = vpow2.f32 %v1799_v19  ;;  %v1597_v45 = vsel %vm765_vm11, %v6867_v36, 0.0 }
 0xa23   :  { %1598 = vadd.xlane.f32.xlu1 %v1597_v45 }
 0xa25   :  { %v1904_v54 = vpop.xlane.xlu1 %1903 }
 0xa26   :  { %v1908_v57 = vsub.f32 %v6820_v52, %v1904_v54 }
 0xa27   :  { %v5848_v61 = vpop.eup %5847 }
 0xa28   :  { %v1910_v56 = vmul.f32 1.442695, %v1908_v57  ;;  %v6873_v8 = vmul.f32 %v5848_v61, %v6792_v55 }
 0xa29   :  { %v1907_v11 = vpop.xlane.xlu0 %1906 }
 0xa2a   :  { %5851 = vpow2.f32 %v1910_v56  ;;  %v1909_v23 = vsub.f32 %v6827_v53, %v1907_v11  ;;  %v1702_v22 = vsel %vm765_vm11, %v6873_v8, 0.0  ;;  %v1285_v53 = vsel %vm795_vm2, %v6622_v17, 0  ;;  %v6900_v17 = vld [vmem:[%s7730_s13] sm:$0xff] }
 0xa2b   :  { %1703 = vadd.xlane.f32.xlu0 %v1702_v22  ;;  %vm212_vm3 = vcmp.gt.f32.partialorder %v6900_v17, 0.0 }
 0xa2c   :  { %v1912_v38 = vmul.f32 1.442695, %v1909_v23 }
 0xa2d   :  { %v2024_v42 = vpop.xlane.xlu1 %2023 }
 0xa2e   :  { %5853 = vpow2.f32 %v1912_v38  ;;  %v2028_v26 = vsub.f32 %v6833_v0, %v2024_v42 }
 0xa2f   :  { %v5850_v33 = vpop.eup %5849 }
 0xa30   :  { %v2030_v52 = vmul.f32 1.442695, %v2028_v26  ;;  %v6880_v19 = vmul.f32 %v5850_v33, %v6792_v55 }
 0xa31   :  { %v2027_v57 = vpop.xlane.xlu0 %2026 }
 0xa32   :  { %5855 = vpow2.f32 %v2030_v52  ;;  %v1802_v45 = vsel %vm765_vm11, %v6880_v19, 0.0  ;;  %v2029_v11 = vsub.f32 %v6839_v25, %v2027_v57  ;;  %v6911_v25 = vld [vmem:[%s7730_s13 + $0x8] sm:$0xff]  ;;  %v6918_v52 = vsel %vm212_vm3, %v6843_v37, -1e+30 }
 0xa33   :  { %1803 = vadd.xlane.f32.xlu0 %v1802_v45  ;;  %vm213_vm15 = vcmp.gt.f32.partialorder %v6911_v25, 0.0  ;;  %v2148_v45 = vsel %vm1270_vm4, %v6918_v52, -inf  ;;  %v6933_v37 = vsel %vm212_vm3, %v6847_v27, -1e+30 }
 0xa34   :  { %1396 = vrot.lane.b32.xlu1 %v1285_v53, %s6233_s20  ;;  %v2032_v42 = vmul.f32 1.442695, %v2029_v11  ;;  %v6926_v53 = vsel %vm213_vm15, %v6845_v7, -1e+30  ;;  %v2271_v57 = vsel %vm1270_vm4, %v6933_v37, -inf }
 0xa36   :  { %5857 = vpow2.f32 %v2032_v42 }
 0xa37   :  { %v5852_v54 = vpop.eup %5851 }
 0xa38   :  { %v6889_v0 = vmul.f32 %v5852_v54, %v6810_v24  ;;  %v2151_v54 = vsel %vm1270_vm4, %v6926_v53, -inf }
 0xa3a   :  { %v1916_v61 = vsel %vm1270_vm4, %v6889_v0, 0.0 }
 0xa3b   :  { %v5854_v56 = vpop.eup %5853  ;;  %1917 = vadd.xlane.f32.xlu0 %v1916_v61  ;;  %v6940_v61 = vsel %vm213_vm15, %v6849_v60, -1e+30 }
 0xa3c   :  { %v6895_v23 = vmul.f32 %v5854_v56, %v6816_v50  ;;  %v2274_v56 = vsel %vm1270_vm4, %v6940_v61, -inf }
 0xa3e   :  { %v1919_v22 = vsel %vm1270_vm4, %v6895_v23, 0.0 }
 0xa3f   :  { %v5856_v38 = vpop.eup %5855  ;;  %1920 = vadd.xlane.f32.xlu0 %v1919_v22  ;;  %v2298_v22 = vsel %vm872_vm13, %v6702_v48, 0 }
 0xa40   :  { %v6906_v26 = vmul.f32 %v5856_v38, %v6810_v24 }
 0xa42   :  { %v2036_v33 = vsel %vm1270_vm4, %v6906_v26, 0.0 }
 0xa43   :  { %2037 = vadd.xlane.f32.xlu0 %v2036_v33  ;;  %v5858_v7 = vpop.eup %5857 }
 0xa44   :  { %v6945_v11 = vmul.f32 %v5858_v7, %v6816_v50 }
 0xa46   :  { %v2039_v27 = vsel %vm1270_vm4, %v6945_v11, 0.0 }
 0xa47   :  { %2149 = vmax.xlane.f32.xlu0 %v2148_v45  ;;  %v6001_v45 = vld [vmem:[#allocation7] sm:$0x3] }
 0xa4b   :  { %2152 = vmax.xlane.f32.xlu0 %v2151_v54  ;;  %v446_v54 = vrot.slane %v6001_v45, %v6457_v63 }
 0xa4d   :  { %v509_v35 = vadd.f32 %v6455_v62, %v446_v54 }
 0xa4f   :  { %2272 = vmax.xlane.f32.xlu0 %v2271_v57 }
 0xa53   :  { %2275 = vmax.xlane.f32.xlu0 %v2274_v56  ;;  %v513_v56 = vadd.f32 %v6471_v20, %v446_v54 }
 0xa55   :  { %v516_v1 = vpack.c.bf16 %v513_v56, %v509_v35 }
 0xa57   :  { %v1504_v20 = vsel %vm697_vm8, %v516_v1, 0 }
 0xa58   :  { %2040 = vadd.xlane.f32.xlu1 %v2039_v27 }
 0xa69   :  { %2300 = vrot.lane.b32.xlu1 %v2298_v22, %s6233_s20 }
 0xa94   :  { %v1280_v60 = vpop.xlane.xlu1 %1279 }
 0xa95   :  { %v1281_v38 = vmax.f32 %v1280_v60, 1e-20 }
 0xa97   :  { %5859 = vrcp.f32 %v1281_v38 }
 0xaa4   :  { %v1499_v42 = vpop.xlane.xlu0 %1498  ;;  %v5860_v57 = vpop.eup %5859 }
 0xaa5   :  { %v1500_v33 = vmax.f32 %v1499_v42, 1e-20  ;;  %v1283_v15 = vmul.f32 %v5860_v57, %v6854_v2  ;;  %v7762_v42 = vmov 0.0   ;;  %v1604_v57 = vsel %vm707_vm9, %v516_v1, 0 }
 0xaa7   :  { %5861 = vrcp.f32 %v1500_v33  ;;  %v1284_v38 = vpack.c.bf16 %v1283_v15, %v1283_v15 }
 0xaac   :  { %v1599_v7 = vpop.xlane.xlu1 %1598 }
 0xaad   :  { %v1600_v27 = vmax.f32 %v1599_v7, 1e-20 }
 0xaaf   :  { %5863 = vrcp.f32 %v1600_v27 }
 0xab0   :  { %v1397_v22 = vpop.permute.xlu1 %1396 }
 0xab1   :  { %v1402_v60 = vsel %vm1351_vm5, %v1397_v22, 0  ;;  %v1709_v22 = vsel %vm697_vm8, %v6467_v18, 0 }
 0xab2   :  { %5387 = vmatpush3.bf16.msra.mxu1 %v1402_v60 }
 0xab3   :  { %5398 = vmatprep.subr.bf16.mxu1 %v7762_v42 }
 0xab4   :  { %v5862_v33 = vpop.eup %5861  ;;  %v1704_v45 = vpop.xlane.xlu0 %1703 }
 0xab5   :  { %v1705_v50 = vmax.f32 %v1704_v45, 1e-20  ;;  %5389 = vmatmul.mubr.msk.bf16.vlgmr.msra.gmra.mxu1 %vm1270_vm4, %v1284_v38  ;;  %v1502_v35 = vmul.f32 %v5862_v33, %v6861_v5 }
 0xab6   :  { %5399 = vmatpush3.bf16.msra.mxu1 %v1504_v20  ;;  %5400 = vmatprep.mubr.msk.bf16.mxu1 %vm6230_vm0, %v7762_v42  ;;  %v1809_v20 = vsel %vm707_vm9, %v6467_v18, 0 }
 0xab7   :  { %5865 = vrcp.f32 %v1705_v50  ;;  %5410 = vmatprep.subr.bf16.mxu1 %v7762_v42  ;;  %v1503_v15 = vpack.c.bf16 %v1502_v35, %v1502_v35 }
 0xabc   :  { %v5864_v62 = vpop.eup %5863  ;;  %v1804_v2 = vpop.xlane.xlu0 %1803 }
 0xabd   :  { %v1805_v54 = vmax.f32 %v1804_v2, 1e-20  ;;  %5401 = vmatmul.mubr.msk.bf16.vlgmr.msra.gmra.mxu1 %vm765_vm11, %v1503_v15  ;;  %v1602_v50 = vmul.f32 %v5864_v62, %v6867_v36  ;;  %v1929_v62 = vsel %vm6479_vm6, %v6702_v48, 0 }
 0xabe   :  { %5411 = vmatpush3.bf16.msra.mxu1 %v1604_v57  ;;  %5412 = vmatprep.mubr.msk.bf16.mxu1 %vm6230_vm0, %v7762_v42 }
 0xabf   :  { %5867 = vrcp.f32 %v1805_v54  ;;  %5422 = vmatprep.subr.bf16.mxu1 %v7762_v42  ;;  %v1603_v7 = vpack.c.bf16 %v1602_v50, %v1602_v50  ;;  %v1934_v50 = vsel %vm1351_vm5, %v1929_v62, 0 }
 0xac4   :  { %v5866_v5 = vpop.eup %5865  ;;  %v1918_v56 = vpop.xlane.xlu0 %1917 }
 0xac5   :  { %v1922_v27 = vmax.f32 %v1918_v56, 1e-20  ;;  %5413 = vmatmul.mubr.msk.bf16.vlgmr.msra.gmra.mxu1 %vm765_vm11, %v1603_v7  ;;  %v1707_v1 = vmul.f32 %v5866_v5, %v6873_v8 }
 0xac6   :  { %5423 = vmatpush3.bf16.msra.mxu1 %v1709_v22  ;;  %5424 = vmatprep.mubr.msk.bf16.mxu1 %vm6230_vm0, %v7762_v42  ;;  %v2049_v22 = vsel %vm6483_vm7, %v6702_v48, 0 }
 0xac7   :  { %5434 = vmatprep.subr.bf16.mxu1 %v7762_v42  ;;  %5869 = vrcp.f32 %v1922_v27  ;;  %v1708_v38 = vpack.c.bf16 %v1707_v1, %v1707_v1 }
 0xac8   :  { %v1921_v60 = vpop.xlane.xlu0 %1920 }
 0xac9   :  { %v1923_v36 = vmax.f32 %v1921_v60, 1e-20 }
 0xacb   :  { %5871 = vrcp.f32 %v1923_v36 }
 0xacc   :  { %v5868_v33 = vpop.eup %5867  ;;  %v2038_v45 = vpop.xlane.xlu0 %2037 }
 0xacd   :  { %5425 = vmatmul.mubr.msk.bf16.vlgmr.msra.gmra.mxu1 %vm765_vm11, %v1708_v38  ;;  %v1807_v8 = vmul.f32 %v5868_v33, %v6880_v19  ;;  %v2054_v33 = vsel %vm1351_vm5, %v2049_v22, 0  ;;  %v5773_v22 = vld [vmem:[%s7722_s5 + $0x8] sm:$0xff]  }
 0xace   :  { %5435 = vmatpush3.bf16.msra.mxu1 %v1809_v20  ;;  %5436 = vmatprep.mubr.msk.bf16.mxu1 %vm6230_vm0, %v7762_v42  ;;  %v2042_v20 = vmax.f32 %v2038_v45, 1e-20 }
 0xacf   :  { %5446 = vmatprep.subr.bf16.mxu1 %v7762_v42  ;;  %v1808_v54 = vpack.c.bf16 %v1807_v8, %v1807_v8  ;;  %5489 = vmatpush3.bf16.msra.mxu0 %v5773_v22 }
 0xad0   :  { %v2150_v35 = vpop.xlane.xlu0 %2149  ;;  %5490 = vmatprep.subr.bf16.mxu0 %v7762_v42 }
 0xad1   :  { %v2154_v15 = vsub.f32 %v6918_v52, %v2150_v35 }
 0xad3   :  { %v2156_v2 = vmul.f32 1.442695, %v2154_v15 }
 0xad4   :  { %v2153_v57 = vpop.xlane.xlu0 %2152  ;;  %v5870_v7 = vpop.eup %5869 }
 0xad5   :  { %5873 = vpow2.f32 %v2156_v2  ;;  %v2155_v18 = vsub.f32 %v6926_v53, %v2153_v57  ;;  %5437 = vmatmul.mubr.msk.bf16.vlgmr.msra.gmra.mxu1 %vm765_vm11, %v1808_v54  ;;  %v1926_v27 = vmul.f32 %v5870_v7, %v6889_v0 }
 0xad6   :  { %5447 = vmatpush3.bf16.msra.mxu1 %v1934_v50  ;;  %5448 = vmatprep.mubr.msk.bf16.mxu1 %vm6230_vm0, %v7762_v42 }
 0xad7   :  { %v2158_v19 = vmul.f32 1.442695, %v2155_v18  ;;  %5458 = vmatprep.subr.bf16.mxu1 %v7762_v42 }
 0xad8   :  { %v5872_v52 = vpop.eup %5871  ;;  %v2273_v5 = vpop.xlane.xlu0 %2272 }
 0xad9   :  { %5875 = vpow2.f32 %v2158_v19  ;;  %v2277_v56 = vsub.f32 %v6933_v37, %v2273_v5  ;;  %v1927_v53 = vmul.f32 %v5872_v52, %v6895_v23 }
 0xadb   :  { %v2279_v1 = vmul.f32 1.442695, %v2277_v56  ;;  %v1928_v60 = vpack.c.bf16 %v1927_v53, %v1926_v27  ;;  %v2175_v53 = vsel %vm795_vm2, %v6702_v48, 0 }
 0xadc   :  { %v2276_v36 = vpop.xlane.xlu0 %2275 }
 0xadd   :  { %5877 = vpow2.f32 %v2279_v1  ;;  %v2278_v38 = vsub.f32 %v6940_v61, %v2276_v36  ;;  %5449 = vmatmul.mubr.msk.bf16.vlgmr.msra.gmra.mxu1 %vm1270_vm4, %v1928_v60 }
 0xade   :  { %5459 = vmatpush3.bf16.msra.mxu1 %v2054_v33  ;;  %5460 = vmatprep.mubr.msk.bf16.mxu1 %vm6230_vm0, %v7762_v42 }
 0xadf   :  { %v2281_v0 = vmul.f32 1.442695, %v2278_v38  ;;  %5470 = vmatprep.subr.bf16.mxu1 %v7762_v42 }
 0xae1   :  { %5879 = vpow2.f32 %v2281_v0  ;;  %v2041_v23 = vpop.xlane.xlu1 %2040 }
 0xae2   :  { %v5874_v37 = vpop.eup %5873  ;;  %5881 = vrcp.f32 %v2042_v20  ;;  %v2043_v8 = vmax.f32 %v2041_v23, 1e-20 }
 0xae3   :  { %v2160_v35 = vmul.f32 %v5874_v37, %v6900_v17 }
 0xae4   :  { %5883 = vrcp.f32 %v2043_v8 }
 0xae5   :  { %v2162_v61 = vsel %vm1270_vm4, %v2160_v35, 0.0 }
 0xae6   :  { %v5876_v15 = vpop.eup %5875  ;;  %2163 = vadd.xlane.f32.xlu0 %v2162_v61 }
 0xae7   :  { %v2161_v45 = vmul.f32 %v5876_v15, %v6911_v25 }
 0xae9   :  { %v2165_v62 = vsel %vm1270_vm4, %v2161_v45, 0.0 }
 0xaea   :  { %v5878_v2 = vpop.eup %5877  ;;  %2166 = vadd.xlane.f32.xlu0 %v2165_v62 }
 0xaeb   :  { %v7016_v54 = vmul.f32 %v5878_v2, %v6900_v17 }
 0xaed   :  { %v2285_v57 = vsel %vm1270_vm4, %v7016_v54, 0.0 }
 0xaee   :  { %v5880_v18 = vpop.eup %5879  ;;  %2286 = vadd.xlane.f32.xlu0 %v2285_v57 }
 0xaef   :  { %v5882_v50 = vpop.eup %5881  ;;  %v2284_v7 = vmul.f32 %v5880_v18, %v6911_v25 }
 0xaf0   :  { %v2046_v5 = vmul.f32 %v5882_v50, %v6906_v26  ;;  %v5774_v26 = vld [vmem:[%s7722_s5] sm:$0xff]  }
 0xaf1   :  { %v5884_v19 = vpop.eup %5883  ;;  %v2288_v52 = vsel %vm1270_vm4, %v2284_v7, 0.0  ;;  %5491 = vmatpush3.bf16.msra.mxu0 %v5774_v26 }
 0xaf2   :  { %2289 = vadd.xlane.f32.xlu0 %v2288_v52  ;;  %v2047_v56 = vmul.f32 %v5884_v19, %v6945_v11  ;;  %5504 = vmatprep.subr.bf16.mxu0 %v7762_v42 }
 0xaf4   :  { %v2048_v27 = vpack.c.bf16 %v2047_v56, %v2046_v5  ;;  %v2301_v56 = vpop.permute.xlu1 %2300 }
 0xaf5   :  { %v2306_v26 = vsel %vm1351_vm5, %v2301_v56, 0  ;;  %v964_v56 = vadd.f32 %v6660_v59, %v6586_v10 }
 0xaf6   :  { %5461 = vmatmul.mubr.msk.bf16.vlgmr.msra.gmra.mxu1 %vm1270_vm4, %v2048_v27 }
 0xaf7   :  { %5472 = vmatprep.mubr.msk.bf16.mxu1 %vm6230_vm0, %v7762_v42 }
 0xb08   :  { %2177 = vrot.lane.b32.xlu0 %v2175_v53, %s6233_s20 }
 0xb6f   :  { %v2164_v11 = vpop.xlane.xlu0 %2163 }
 0xb70   :  { %v2168_v1 = vmax.f32 %v2164_v11, 1e-20 }
 0xb72   :  { %5885 = vrcp.f32 %v2168_v1 }
 0xb73   :  { %v2167_v60 = vpop.xlane.xlu0 %2166 }
 0xb74   :  { %v2169_v48 = vmax.f32 %v2167_v60, 1e-20 }
 0xb75   :  { %v1438_v36 = vpop.f32.mrf.mxu1 }
 0xb76   :  { %5887 = vrcp.f32 %v2169_v48 }
 0xb77   :  { %v5390_v38 = vpop.f32.mrf.mxu1  ;;  %v2287_v33 = vpop.xlane.xlu0 %2286 }
 0xb78   :  { %v2291_v20 = vmax.f32 %v2287_v33, 1e-20 }
 0xb79   :  { %v1441_v0 = vpop.f32.mrf.mxu1 }
 0xb7a   :  { %5889 = vrcp.f32 %v2291_v20 }
 0xb7b   :  { %v5391_v23 = vpop.f32.mrf.mxu1  ;;  %v2290_v37 = vpop.xlane.xlu0 %2289 }
 0xb7c   :  { %v2292_v8 = vmax.f32 %v2290_v37, 1e-20 }
 0xb7d   :  { %v1542_v61 = vpop.f32.mrf.mxu1 }
 0xb7e   :  { %5891 = vrcp.f32 %v2292_v8 }
 0xb7f   :  { %v5402_v15 = vpop.f32.mrf.mxu1  ;;  %v2178_v62 = vpop.permute.xlu0 %2177 }
 0xb80   :  { %v2183_v2 = vsel %vm1351_vm5, %v2178_v62, 0  ;;  %v5886_v57 = vpop.eup %5885 }
 0xb81   :  { %v1545_v18 = vpop.f32.mrf.mxu1  ;;  %5471 = vmatpush3.bf16.msra.mxu1 %v2183_v2  ;;  %v2172_v52 = vmul.f32 %v5886_v57, %v2160_v35 }
 0xb82   :  { %5482 = vmatprep.subr.bf16.mxu1 %v7762_v42 }
 0xb83   :  { %v5888_v50 = vpop.eup %5887  ;;  %v5403_v19 = vpop.f32.mrf.mxu1 }
 0xb84   :  { %v2173_v5 = vmul.f32 %v5888_v50, %v2161_v45 }
 0xb85   :  { %v1642_v27 = vpop.f32.mrf.mxu1 }
 0xb86   :  { %v2174_v53 = vpack.c.bf16 %v2173_v5, %v2172_v52 }
 0xb87   :  { %v5414_v22 = vpop.f32.mrf.mxu1  ;;  %v5890_v11 = vpop.eup %5889 }
 0xb88   :  { %5473 = vmatmul.mubr.msk.bf16.vlgmr.msra.gmra.mxu1 %vm1270_vm4, %v2174_v53  ;;  %v2295_v35 = vmul.f32 %v5890_v11, %v7016_v54  ;;  %v1439_v54 = vadd.f32 %v1438_v36, %v6775_v9  ;;  %v967_v11 = vadd.f32 %v6662_v6, %v6590_v13 }
 0xb89   :  { %5483 = vmatpush3.bf16.msra.mxu1 %v2306_v26  ;;  %v1645_v1 = vpop.f32.mrf.mxu1  ;;  %5484 = vmatprep.mubr.msk.bf16.mxu1 %vm6230_vm0, %v7762_v42 }
 0xb8a   :  { %5496 = vmatprep.subr.bf16.mxu1 %v7762_v42 }
 0xb8b   :  { %v5892_v60 = vpop.eup %5891  ;;  %v5415_v48 = vpop.f32.mrf.mxu1 }
 0xb8c   :  { %v2296_v45 = vmul.f32 %v5892_v60, %v2284_v7  ;;  %v1548_v7 = vadd.f32 %v1542_v61, %v1439_v54 }
 0xb8d   :  { %v1747_v38 = vpop.f32.mrf.mxu1 }
 0xb8e   :  { %v2297_v33 = vpack.c.bf16 %v2296_v45, %v2295_v35  ;;  %v1648_v19 = vadd.f32 %v1642_v27, %v1548_v7 }
 0xb8f   :  { %v5426_v20 = vpop.f32.mrf.mxu1 }
 0xb90   :  { %5485 = vmatmul.mubr.msk.bf16.vlgmr.msra.gmra.mxu1 %vm1270_vm4, %v2297_v33  ;;  %v1753_v52 = vadd.f32 %v1747_v38, %v1648_v19 }
 0xb91   :  { %v1750_v0 = vpop.f32.mrf.mxu1  ;;  %5500 = vmatprep.mubr.msk.bf16.mxu1 %vm6230_vm0, %v7762_v42 }
 0xb93   :  { %v5427_v23 = vpop.f32.mrf.mxu1 }
 0xb95   :  { %v1847_v37 = vpop.f32.mrf.mxu1 }
 0xb96   :  { %v1853_v5 = vadd.f32 %v1847_v37, %v1753_v52  ;;  %v5775_v52 = vld [vmem:[%s7722_s5 + $0x28] sm:$0xff]  }
 0xb97   :  { %v5438_v8 = vpop.f32.mrf.mxu1 }
 0xb98   :  { %v2550_v53 = vmul.f32 %v1853_v5, %v1853_v5 }
 0xb99   :  { %v1850_v15 = vpop.f32.mrf.mxu1 }
 0xb9a   :  { %v2551_v48 = vmul.f32 %v2550_v53, %v1853_v5 }
 0xb9b   :  { %v5439_v62 = vpop.f32.mrf.mxu1 }
 0xb9c   :  { %v2552_v27 = vmul.f32 0.044715, %v2551_v48  ;;  %v5778_v48 = vld [vmem:[%s7722_s5 + $0x10] sm:$0xff]  }
 0xb9d   :  { %v1970_v2 = vpop.f32.mrf.mxu1 }
 0xb9e   :  { %v1977_v22 = vadd.f32 %v1970_v2, %v964_v56  ;;  %v2553_v59 = vadd.f32 %v2552_v27, %v1853_v5 }
 0xb9f   :  { %v5450_v57 = vpop.f32.mrf.mxu1 }
 0xba0   :  { %v2554_v13 = vmul.f32 0.7978846, %v2553_v59 }
 0xba1   :  { %v1973_v18 = vpop.f32.mrf.mxu1 }
 0xba2   :  { %v1978_v35 = vadd.f32 %v1973_v18, %v967_v11 }
 0xba3   :  { %v5451_v50 = vpop.f32.mrf.mxu1 }
 0xbb6   :  { %v2090_v26 = vpop.f32.mrf.mxu1 }
 0xbb7   :  { %v2097_v1 = vadd.f32 %v2090_v26, %v1977_v22  ;;  %v2549_v22 = vmul.f32 0.5, %v1853_v5  ;;  %v5776_v26 = vld [vmem:[%s7722_s5 + $0x20] sm:$0xff]   ;;  %v5777_v5 = vld [vmem:[%s7722_s5 + $0x18] sm:$0xff]  }
 0xbb8   :  { %v5462_v60 = vpop.f32.mrf.mxu1  ;;  %5497 = vmatpush3.bf16.msra.mxu1 %v5777_v5  ;;  %v5787_v5 = vld [vmem:[#allocation5 + $0xb4] ss:$8 sps:$4 sm:$0xff]  }
 0xbb9   :  { %v2353_v45 = vmul.f32 %v2097_v1, %v2097_v1  ;;  %v2351_v57 = vmul.f32 0.5, %v2097_v1  ;;  %v7763_v60 = vmov 0   ;;  %5498 = vmatprep.subr.bf16.mxu1 %v7762_v42 }
 0xbba   :  { %v2093_v33 = vpop.f32.mrf.mxu1 }
 0xbbb   :  { %v2355_v9 = vmul.f32 %v2353_v45, %v2097_v1  ;;  %v2098_v36 = vadd.f32 %v2093_v33, %v1978_v35  ;;  %v5781_v35 = vld [vmem:[#allocation5 + $0x74] ss:$8 sps:$4 sm:$0xff]  }
 0xbbc   :  { %v5463_v61 = vpop.f32.mrf.mxu1  ;;  %5499 = vmatpush3.bf16.msra.mxu1 %v5778_v48  ;;  %v5050_v48 = vld [vmem:[#allocation8] ss:$0 sm:$0xff] }
 0xbbd   :  { %v2357_v38 = vmul.f32 0.044715, %v2355_v9  ;;  %v2354_v20 = vmul.f32 %v2098_v36, %v2098_v36  ;;  %v2352_v18 = vmul.f32 0.5, %v2098_v36  ;;  %2689 = vmatprep.subr.bf16.mxu1 %v5781_v35 }
 0xbbf   :  { %v2359_v0 = vadd.f32 %v2357_v38, %v2097_v1  ;;  %v2356_v10 = vmul.f32 %v2354_v20, %v2098_v36  ;;  %v1217_v20 = vadd.f32 %v6674_v49, %v6767_v4 }
 0xbc1   :  { %v2361_v23 = vmul.f32 0.7978846, %v2359_v0  ;;  %v2358_v37 = vmul.f32 0.044715, %v2356_v10 }
 0xbc3   :  { %5893 = vtanh.f32 %v2361_v23  ;;  %v2360_v8 = vadd.f32 %v2358_v37, %v2098_v36  ;;  %v1214_v36 = vadd.f32 %v6670_v34, %v6765_v44 }
 0xbc5   :  { %v2362_v6 = vmul.f32 0.7978846, %v2360_v8 }
 0xbc7   :  { %5895 = vtanh.f32 %v2362_v6 }
 0xbc8   :  { %5897 = vtanh.f32 %v2554_v13 }
 0xbd0   :  { %v5894_v15 = vpop.eup %5893 }
 0xbd1   :  { %v2365_v62 = vadd.f32 1.0, %v5894_v15 }
 0xbd3   :  { %v2367_v7 = vmul.f32 %v2365_v62, %v2351_v57 }
 0xbd4   :  { %v5896_v2 = vpop.eup %5895 }
 0xbd5   :  { %v2366_v50 = vadd.f32 1.0, %v5896_v2  ;;  %v5898_v54 = vpop.eup %5897 }
 0xbd6   :  { %v2556_v56 = vadd.f32 1.0, %v5898_v54 }
 0xbd7   :  { %v2368_v19 = vmul.f32 %v2366_v50, %v2352_v18 }
 0xbd8   :  { %v2557_v11 = vmul.f32 %v2556_v56, %v2549_v22  ;;  %v5779_v22 = vld [vmem:[#allocation5 + $0x70] ss:$8 sps:$4 sm:$0xff]  }
 0xbd9   :  { %v2369_v53 = vpack.c.bf16 %v2368_v19, %v2367_v7 }
 0xbda   :  { %v2558_v1 = vpack.c.bf16 %v2557_v11, %v2557_v11  ;;  %v5784_v11 = vld [vmem:[#allocation5 + $0x64] ss:$8 sps:$4 sm:$0xff]  }
 0xbdb   :  { %5493 = vmatmul.mubr.msk.bf16.vlgmr.msra.gmra.mxu0 %vm240_vm1, %v2369_v53 }
 0xbdc   :  { %5505 = vmatpush3.bf16.msra.mxu0 %v5775_v52  ;;  %5508 = vmatprep.mubr.msk.bf16.mxu0 %vm6230_vm0, %v7762_v42 }
 0xbdd   :  { %5506 = vmatprep.subr.bf16.mxu0 %v7762_v42 }
 0xbe0   :  { %5507 = vmatpush3.bf16.msra.mxu0 %v5776_v26 }
 0xbe3   :  { %5509 = vmatmul.mubr.msk.bf16.vlgmr.msra.gmra.mxu0 %vm240_vm1, %v2558_v1  ;;  %v5782_v1 = vld [vmem:[#allocation5 + $0x60] ss:$8 sps:$4 sm:$0xff]  }
 0xbe4   :  { %2796 = vmatprep.mubr.bf16.mxu0 %v7763_v60 }
 0xc48   :  { %v2219_v45 = vpop.f32.mrf.mxu1 }
 0xc49   :  { %v2226_v27 = vadd.f32 %v2219_v45, %v1214_v36  ;;  %v2438_v45 = vstv %s2437_s16 }
 0xc4a   :  { %v5474_v33 = vpop.f32.mrf.mxu1 }
 0xc4c   :  { %v2222_v9 = vpop.f32.mrf.mxu1 }
 0xc4d   :  { %v2227_v59 = vadd.f32 %v2222_v9, %v1217_v20  ;;  %v2442_v9 = vstv %s2441_s2 }
 0xc4e   :  { %v5475_v61 = vpop.f32.mrf.mxu1 }
 0xc50   :  { %v2342_v38 = vpop.f32.mrf.mxu1 }
 0xc51   :  { %v2349_v0 = vadd.f32 %v2342_v38, %v2226_v27  ;;  %v7764_v38 = vmax.f32 %v6419_v28, 0.0 }
 0xc52   :  { %v5486_v10 = vpop.f32.mrf.mxu1 }
 0xc53   :  { %v2451_v23 = vmul.f32 %v2349_v0, %v2349_v0  ;;  %v2449_v7 = vmul.f32 0.5, %v2349_v0  ;;  %v2443_v20 = vmul.f32 %v2442_v9, %v7764_v38 }
 0xc54   :  { %v2345_v37 = vpop.f32.mrf.mxu1 }
 0xc55   :  { %v2453_v8 = vmul.f32 %v2451_v23, %v2349_v0  ;;  %v2350_v13 = vadd.f32 %v2345_v37, %v2227_v59  ;;  %v5067_v59 = vld [vmem:[#allocation8 + $0x2] ss:$0 sm:$0xff]  ;;  %v7765_v23 = vmax.f32 %v6423_v32, 0.0  ;;  %v5785_v32 = vld [vmem:[#allocation5 + $0xb0] ss:$8 sps:$4 sm:$0xff]  }
 0xc56   :  { %v5487_v6 = vpop.f32.mrf.mxu1 }
 0xc57   :  { %v2455_v15 = vmul.f32 0.044715, %v2453_v8  ;;  %v2452_v62 = vmul.f32 %v2350_v13, %v2350_v13  ;;  %v2450_v19 = vmul.f32 0.5, %v2350_v13  ;;  %v2444_v37 = vmul.f32 %v2442_v9, %v7765_v23 }
 0xc58   :  { %v2631_v6 = vstv %s2630_s21 }
 0xc59   :  { %v2457_v2 = vadd.f32 %v2455_v15, %v2349_v0  ;;  %v2454_v57 = vmul.f32 %v2452_v62, %v2350_v13  ;;  %v2628_v62 = vstv %s5071_s30 }
 0xc5b   :  { %v2459_v18 = vmul.f32 0.7978846, %v2457_v2  ;;  %v2456_v34 = vmul.f32 0.044715, %v2454_v57 }
 0xc5d   :  { %5899 = vtanh.f32 %v2459_v18  ;;  %v2458_v44 = vadd.f32 %v2456_v34, %v2350_v13  ;;  %v2632_v34 = vmul.f32 %v2631_v6, %v6444_v51 }
 0xc5f   :  { %v2460_v50 = vmul.f32 0.7978846, %v2458_v44 }
 0xc61   :  { %5901 = vtanh.f32 %v2460_v50 }
 0xc6a   :  { %v5900_v54 = vpop.eup %5899 }
 0xc6b   :  { %v2463_v49 = vadd.f32 1.0, %v5900_v54 }
 0xc6d   :  { %v2465_v56 = vmul.f32 %v2463_v49, %v2449_v7  ;;  %v5790_v7 = vld [vmem:[#allocation5 + $0xa4] ss:$8 sps:$4 sm:$0xff]  }
 0xc6e   :  { %v5902_v4 = vpop.eup %5901 }
 0xc6f   :  { %v2464_v52 = vadd.f32 1.0, %v5902_v4 }
 0xc71   :  { %v2466_v53 = vmul.f32 %v2464_v52, %v2450_v19  ;;  %v5788_v52 = vld [vmem:[#allocation5 + $0xa0] ss:$8 sps:$4 sm:$0xff]  }
 0xc73   :  { %v2467_v26 = vpack.c.bf16 %v2466_v53, %v2465_v56  ;;  %v5793_v53 = vld [vmem:[#allocation5 + $0x94] ss:$8 sps:$4 sm:$0xff]  }
 0xc74   :  { %2776 = vmatprep.subr.bf16.mxu0 %v5793_v53 }
 0xc75   :  { %5501 = vmatmul.mubr.msk.bf16.vlgmr.msra.gmra.mxu1 %vm240_vm1, %v2467_v26  ;;  %v5796_v26 = vld [vmem:[#allocation5 + $0x84] ss:$8 sps:$4 sm:$0xff]  }
 0xc76   :  { %2690 = vmatpush1.bf16.msra.mxu1 %v5779_v22  ;;  %2709 = vmatprep.mubr.bf16.mxu1 %v7763_v60  ;;  %v5791_v22 = vld [vmem:[#allocation5 + $0x90] ss:$8 sps:$4 sm:$0xff]  }
 0xc77   :  { %2691 = vmatprep.subr.bf16.mxu1 %v5784_v11  ;;  %2777 = vmatpush1.bf16.msra.mxu0 %v5791_v22  ;;  %v5058_v11 = vld [vmem:[#allocation8 + $0x1] ss:$0 sm:$0xff] }
 0xc78   :  { %2778 = vmatprep.subr.bf16.mxu0 %v5796_v26 }
 0xc7a   :  { %2692 = vmatpush1.bf16.msra.mxu1 %v5782_v1 }
 0xc7b   :  { %2863 = vmatprep.subr.bf16.mxu1 %v5787_v5  ;;  %v2538_v5 = vstv %s5062_s22 }
 0xc9b   :  { %v2430_v35 = vpop.f32.mrf.mxu0 }
 0xc9c   :  { %v2431_v33 = vadd.f32 %v5050_v48, %v2430_v35  ;;  %v2542_v35 = vstv %s2541_s19  ;;  %s5123_s19 = sld [smem:[#allocation17 + $0x3]] }
 0xc9d   :  { %v5494_v36 = vpop.f32.mrf.mxu0 }
 0xc9e   :  { %v2439_v61 = vmul.f32 %v2438_v45, %v2431_v33  ;;  %v7766_v36 = vmax.f32 %v6421_v31, 0.0 }
 0xc9f   :  { %v2433_v27 = vpop.f32.mrf.mxu0 }
 0xca0   :  { %v2434_v0 = vadd.f32 %v5050_v48, %v2433_v27  ;;  %v7084_v8 = vadd.f32 %v2443_v20, %v2439_v61  ;;  %v2543_v61 = vmul.f32 %v2542_v35, %v7766_v36  ;;  %v7767_v20 = vmax.f32 %v6428_v39, 0.0  ;;  %v2642_v39 = vld [vmem:[#allocation7 + $0x6] sm:$0x3] }
 0xca1   :  { %v5495_v10 = vpop.f32.mrf.mxu0  ;;  %v2651_v6 = vrot.slane %v2642_v39, %v6457_v63 }
 0xca2   :  { %v2440_v13 = vmul.f32 %v2438_v45, %v2434_v0  ;;  %v2447_v28 = vmax.f32 %v7084_v8, 0.0  ;;  %v2544_v0 = vmul.f32 %v2542_v35, %v7767_v20  ;;  %v2729_v35 = vld [vmem:[#allocation7 + $0x8] sm:$0x3]  ;;  %s4621_s18 = ssub.f32 1.0, %s5123_s19 }
 0xca3   :  { %v2621_v15 = vpop.f32.mrf.mxu0 }
 0xca4   :  { %v7086_v2 = vadd.f32 %v2444_v37, %v2440_v13  ;;  %v2622_v57 = vadd.f32 %v5067_v59, %v2621_v15 }
 0xca5   :  { %v5510_v18 = vpop.f32.mrf.mxu0 }
 0xca6   :  { %v2448_v44 = vmax.f32 %v7086_v2, 0.0  ;;  %v2629_v50 = vmul.f32 %v2628_v62, %v2622_v57  ;;  %v2647_v62 = vrot.slane %v2642_v39, %v6452_v58 }
 0xca7   :  { %v2624_v54 = vpop.f32.mrf.mxu0 }
 0xca8   :  { %v2635_v49 = vpack.c.bf16 %v2448_v44, %v2447_v28  ;;  %v2633_v4 = vadd.f32 %v2632_v34, %v2629_v50 }
 0xca9   :  { %v5511_v19 = vpop.f32.mrf.mxu0 }
 0xcaa   :  { %5076 = vmatmul.mubr.msk.bf16.vlgmr.msra.gmra.mxu1 %vm240_vm1, %v2635_v49  ;;  %v7097_v51 = vmax.f32 %v2633_v4, 0.0  ;;  %v7125_v49 = vld [vmem:[#allocation7 + $0xa] sm:$0x3] }
 0xcab   :  { %2864 = vmatpush1.bf16.msra.mxu1 %v5785_v32  ;;  %2883 = vmatprep.mubr.bf16.mxu1 %v7763_v60  ;;  %v5794_v60 = vld [vmem:[#allocation5 + $0x80] ss:$8 sps:$4 sm:$0xff]   ;;  %v2825_v19 = vrot.slane %v7125_v49, %v6457_v63 }
 0xcac   :  { %2865 = vmatprep.subr.bf16.mxu1 %v5790_v7  ;;  %v2809_v56 = vpack.c.bf16 %v7097_v51, %v7097_v51  ;;  %2779 = vmatpush1.bf16.msra.mxu0 %v5794_v60 }
 0xcad   :  { %5512 = vmatprep.subr.bf16.mxu0 %v7762_v42 }
 0xcaf   :  { %2866 = vmatpush1.bf16.msra.mxu1 %v5788_v52 }
 0xcb0   :  { %5518 = vmatprep.subr.bf16.mxu1 %v7762_v42 }
 0xcb2   :  { %5086 = vmatmul.mubr.msk.bf16.vlgmr.msra.gmra.mxu1 %vm240_vm1, %v2809_v56 }
 0xcb3   :  { %5520 = vmatprep.mubr.msk.bf16.mxu1 %vm6230_vm0, %v7762_v42 }
 0xd35   :  { %v2530_v1 = vpop.f32.mrf.mxu1 }
 0xd36   :  { %v2531_v48 = vadd.f32 %v5058_v11, %v2530_v1 }
 0xd37   :  { %v5502_v45 = vpop.f32.mrf.mxu1 }
 0xd38   :  { %v2539_v33 = vmul.f32 %v2538_v5, %v2531_v48  ;;  %v2738_v45 = vrot.slane %v2729_v35, %v6457_v63 }
 0xd39   :  { %v2533_v9 = vpop.f32.mrf.mxu1 }
 0xd3a   :  { %v2534_v27 = vadd.f32 %v5058_v11, %v2533_v9  ;;  %v7110_v10 = vadd.f32 %v2543_v61, %v2539_v33  ;;  %v2734_v9 = vrot.slane %v2729_v35, %v6452_v58 }
 0xd3b   :  { %v5503_v38 = vpop.f32.mrf.mxu1 }
 0xd3c   :  { %v2540_v59 = vmul.f32 %v2538_v5, %v2534_v27  ;;  %v2547_v37 = vmax.f32 %v7110_v10, 0.0 }
 0xd3e   :  { %v7112_v23 = vadd.f32 %v2544_v0, %v2540_v59 }
 0xd40   :  { %v2548_v13 = vmax.f32 %v7112_v23, 0.0 }
 0xd42   :  { %v2722_v31 = vpack.c.bf16 %v2548_v13, %v2547_v37 }
 0xd44   :  { %5081 = vmatmul.mubr.msk.bf16.vlgmr.msra.gmra.mxu0 %vm240_vm1, %v2722_v31 }
 0xd45   :  { %5514 = vmatprep.mubr.msk.bf16.mxu0 %vm6230_vm0, %v7762_v42 }
 0xd6a   :  { %v2711_v15 = vpop.f32.mrf.mxu1 }
 0xd6b   :  { %v2712_v50 = vadd.f32 %v2711_v15, %v2647_v62 }
 0xd6c   :  { %v2713_v57 = vpop.f32.mrf.mxu1 }
 0xd6d   :  { %v2714_v18 = vadd.f32 %v2713_v57, %v2651_v6 }
 0xd6e   :  { %v2715_v34 = vpop.f32.mrf.mxu1 }
 0xd6f   :  { %v2716_v54 = vadd.f32 %v2715_v34, %v2647_v62 }
 0xd70   :  { %v2717_v32 = vpop.f32.mrf.mxu1 }
 0xd71   :  { %v7127_v4 = vpack.c.bf16 %v2716_v54, %v2712_v50  ;;  %v2718_v7 = vadd.f32 %v2717_v32, %v2651_v6 }
 0xd72   :  { %v7131_v52 = vpop.f32.mrf.mxu1 }
 0xd73   :  { %v7133_v56 = vpack.c.bf16 %v2718_v7, %v2714_v18  ;;  %2901 = vrot.lane.b32.xlu1 %v7127_v4, %s6232_s10  ;;  %v7145_v5 = vsel %vm697_vm8, %v7127_v4, 0  ;;  %v7150_v48 = vsel %vm707_vm9, %v7127_v4, 0 }
 0xd74   :  { %v2887_v53 = vpop.f32.mrf.mxu1 }
 0xd75   :  { %v7137_v22 = vadd.f32 %v2887_v53, %v2825_v19  ;;  %v3053_v53 = vsel %vm872_vm13, %v7127_v4, 0 }
 0xd76   :  { %v2889_v26 = vpop.f32.mrf.mxu1 }
 0xd78   :  { %v2890_v60 = vpop.f32.mrf.mxu1 }
 0xde5   :  { %v2902_v11 = vpop.permute.xlu1 %2901 }
 0xde6   :  { %v2907_v1 = vsel %vm240_vm1, %v2902_v11, 0 }
 0xde7   :  { %5513 = vmatpush3.bf16.xpose.msra.mxu0 %v2907_v1  ;;  %5519 = vmatpush3.bf16.xpose.msra.mxu1 %v2907_v1 }
 0xde8   :  { %5524 = vmatprep.subr.bf16.mxu0 %v7762_v42  ;;  %5530 = vmatprep.subr.bf16.mxu1 %v7762_v42 }
 0xdee   :  { %5515 = vmatmul.mubr.msk.bf16.vlgmr.msra.gmra.mxu0 %vm240_vm1, %v7145_v5  ;;  %5521 = vmatmul.mubr.msk.bf16.vlgmr.msra.gmra.mxu1 %vm240_vm1, %v7150_v48 }
 0xdef   :  { %5526 = vmatprep.mubr.msk.bf16.mxu0 %vm6230_vm0, %v7762_v42  ;;  %5532 = vmatprep.mubr.msk.bf16.mxu1 %vm6230_vm0, %v7762_v42 }
 0xe04   :  { %v2798_v33 = vpop.f32.mrf.mxu0 }
 0xe05   :  { %v2799_v38 = vadd.f32 %v2798_v33, %v2734_v9 }
 0xe06   :  { %v2800_v36 = vpop.f32.mrf.mxu0 }
 0xe07   :  { %v2801_v61 = vadd.f32 %v2800_v36, %v2738_v45 }
 0xe08   :  { %v2802_v27 = vpop.f32.mrf.mxu0 }
 0xe09   :  { %v2803_v20 = vadd.f32 %v2802_v27, %v2734_v9 }
 0xe0a   :  { %v2804_v0 = vpop.f32.mrf.mxu0 }
 0xe0b   :  { %v7162_v59 = vpack.c.bf16 %v2803_v20, %v2799_v38  ;;  %v2805_v31 = vadd.f32 %v2804_v0, %v2738_v45  ;;  %v6003_v0 = vld [vmem:[%s7724_s7 + $0x8] sm:$0xff] }
 0xe0d   :  { %v7164_v39 = vpack.c.bf16 %v2805_v31, %v2801_v61  ;;  %v7204_v47 = vsel %vm697_vm8, %v7162_v59, 0 }
 0xe0f   :  { %v3987_v41 = vsel %vm707_vm9, %v7164_v39, 0 }
 0xeae   :  { %v2943_v6 = vpop.f32.mrf.mxu0  ;;  %v3017_v15 = vpop.f32.mrf.mxu1 }
 0xeaf   :  { %v3024_v62 = vsel %vm203_vm10, %v3017_v15, -1e+30  ;;  %v2950_v26 = vsel %vm203_vm10, %v2943_v6, -1e+30  ;;  %vm7768_vm10 = vcmp.gt.f32.partialorder %v6593_v21, 0.0 }
 0xeb0   :  { %v5516_v63 = vpop.f32.mrf.mxu0  ;;  %v5522_v57 = vpop.f32.mrf.mxu1  ;;  %v3026_v18 = vsel %vm765_vm11, %v3024_v62, -inf  ;;  %v2952_v60 = vsel %vm765_vm11, %v2950_v26, -inf }
 0xeb1   :  { %3027 = vmax.xlane.f32.xlu0 %v3026_v18 }
 0xeb2   :  { %v2946_v34 = vpop.f32.mrf.mxu0  ;;  %v3020_v50 = vpop.f32.mrf.mxu1 }
 0xeb3   :  { %v3025_v54 = vsel %vm204_vm12, %v3020_v50, -1e+30  ;;  %v2951_v15 = vsel %vm204_vm12, %v2946_v34, -1e+30  ;;  %vm7769_vm12 = vmmov %vm7768_vm10 }
 0xeb4   :  { %v5517_v32 = vpop.f32.mrf.mxu0  ;;  %v5523_v7 = vpop.f32.mrf.mxu1  ;;  %v3029_v19 = vsel %vm765_vm11, %v3025_v54, -inf }
 0xeb5   :  { %3030 = vmax.xlane.f32.xlu1 %v3029_v19 }
 0xec6   :  { %3055 = vrot.lane.b32.xlu1 %v3053_v53, %s6233_s20 }
 0xeea   :  { %2953 = vmax.xlane.f32.xlu1 %v2952_v60 }
 0xf3a   :  { %v3028_v11 = vpop.xlane.xlu0 %3027 }
 0xf3b   :  { %v3032_v1 = vsub.f32 %v3024_v62, %v3028_v11  ;;  %v2955_v62 = vsel %vm765_vm11, %v2951_v15, -inf }
 0xf3d   :  { %v3034_v35 = vmul.f32 1.442695, %v3032_v1 }
 0xf3e   :  { %v3031_v45 = vpop.xlane.xlu1 %3030 }
 0xf3f   :  { %5903 = vpow2.f32 %v3034_v35  ;;  %v3033_v33 = vsub.f32 %v3025_v54, %v3031_v45 }
 0xf41   :  { %v3036_v9 = vmul.f32 1.442695, %v3033_v33 }
 0xf42   :  { %v3056_v36 = vpop.permute.xlu1 %3055 }
 0xf43   :  { %5905 = vpow2.f32 %v3036_v9  ;;  %5525 = vmatpush3.bf16.msra.mxu0 %v3056_v36 }
 0xf44   :  { %5536 = vmatprep.subr.bf16.mxu0 %v7762_v42 }
 0xf4c   :  { %v5904_v61 = vpop.eup %5903 }
 0xf4d   :  { %v3038_v27 = vmul.f32 %v6002_v46, %v5904_v61 }
 0xf4f   :  { %v3040_v38 = vsel %vm765_vm11, %v3038_v27, 0.0 }
 0xf50   :  { %v5906_v20 = vpop.eup %5905  ;;  %3041 = vadd.xlane.f32.xlu0 %v3040_v38 }
 0xf51   :  { %v3039_v31 = vmul.f32 %v6003_v0, %v5906_v20 }
 0xf53   :  { %v3043_v6 = vsel %vm765_vm11, %v3039_v31, 0.0 }
 0xf54   :  { %3044 = vadd.xlane.f32.xlu0 %v3043_v6 }
 0xf6a   :  { %3151 = vrot.lane.b32.xlu0 %v7162_v59, %s6232_s10 }
 0xf73   :  { %v2954_v34 = vpop.xlane.xlu1 %2953 }
 0xf74   :  { %v2958_v1 = vsub.f32 %v2950_v26, %v2954_v34 }
 0xf76   :  { %v2960_v45 = vmul.f32 1.442695, %v2958_v1 }
 0xf89   :  { %2956 = vmax.xlane.f32.xlu0 %v2955_v62 }
 0xfd9   :  { %v3042_v63 = vpop.xlane.xlu0 %3041 }
 0xfda   :  { %v3046_v57 = vmax.f32 %v3042_v63, 1e-20 }
 0xfdc   :  { %5907 = vrcp.f32 %v3046_v57 }
 0xfdd   :  { %v3045_v18 = vpop.xlane.xlu0 %3044 }
 0xfde   :  { %v3047_v50 = vmax.f32 %v3045_v18, 1e-20 }
 0xfe0   :  { %5909 = vrcp.f32 %v3047_v50 }
 0xfe1   :  { %v3152_v53 = vpop.permute.xlu0 %3151  ;;  %5911 = vpow2.f32 %v2960_v45 }
 0xfe2   :  { %v7194_v11 = vsel %vm240_vm1, %v3152_v53, 0 }
 0xfe9   :  { %v5908_v54 = vpop.eup %5907 }
 0xfea   :  { %v3050_v7 = vmul.f32 %v5908_v54, %v3038_v27 }
 0xfed   :  { %v5910_v32 = vpop.eup %5909 }
 0xfee   :  { %v3051_v19 = vmul.f32 %v5910_v32, %v3039_v31  ;;  %v5912_v20 = vpop.eup %5911 }
 0xfef   :  { %v2964_v63 = vmul.f32 %v6002_v46, %v5912_v20  ;;  %v2979_v46 = vsel %vm795_vm2, %v7127_v4, 0 }
 0xff0   :  { %v3052_v60 = vpack.c.bf16 %v3051_v19, %v3050_v7 }
 0xff1   :  { %v2966_v54 = vsel %vm765_vm11, %v2964_v63, 0.0 }
 0xff2   :  { %5527 = vmatmul.mubr.msk.bf16.vlgmr.msra.gmra.mxu0 %vm765_vm11, %v3052_v60 }
 0xff3   :  { %5537 = vmatpush3.bf16.xpose.msra.mxu0 %v7194_v11  ;;  %5538 = vmatprep.mubr.msk.bf16.mxu0 %vm6230_vm0, %v7762_v42 }
 0xff4   :  { %5548 = vmatprep.subr.bf16.mxu0 %v7762_v42 }
 0xffa   :  { %5539 = vmatmul.mubr.msk.bf16.vlgmr.msra.gmra.mxu0 %vm240_vm1, %v7204_v47 }
 0xffb   :  { %5550 = vmatprep.mubr.msk.bf16.mxu0 %vm6230_vm0, %v7762_v42 }
0x1012   :  { %v2957_v35 = vpop.xlane.xlu0 %2956 }
0x1013   :  { %v2959_v33 = vsub.f32 %v2951_v15, %v2957_v35 }
0x1015   :  { %v2962_v9 = vmul.f32 1.442695, %v2959_v33 }
0x1017   :  { %5913 = vpow2.f32 %v2962_v9 }
0x1024   :  { %v5914_v57 = vpop.eup %5913 }
0x1025   :  { %v2965_v7 = vmul.f32 %v6003_v0, %v5914_v57 }
0x1027   :  { %v2969_v19 = vsel %vm765_vm11, %v2965_v7, 0.0 }
0x10b2   :  { %v7210_v36 = vpop.f32.mrf.mxu0 }
0x10b4   :  { %v5528_v61 = vpop.f32.mrf.mxu0 }
0x10b6   :  { %v7212_v27 = vpop.f32.mrf.mxu0 }
0x10b8   :  { %v5529_v38 = vpop.f32.mrf.mxu0 }
0x10ba   :  { %v3193_v31 = vpop.f32.mrf.mxu0 }
0x10bb   :  { %v3200_v6 = vsel %vm205_vm14, %v3193_v31, -1e+30  ;;  %v7227_v31 = vld [vmem:[#allocation10] sm:$0xff] }
0x10bc   :  { %v5540_v62 = vpop.f32.mrf.mxu0  ;;  %v3202_v26 = vsel %vm765_vm11, %v3200_v6, -inf }
0x10bd   :  { %3203 = vmax.xlane.f32.xlu1 %v3202_v26 }
0x10be   :  { %v3196_v15 = vpop.f32.mrf.mxu0 }
0x10bf   :  { %v3201_v18 = vsel %vm7768_vm10, %v3196_v15, -1e+30  ;;  %v7231_v15 = vld [vmem:[#allocation10 + $0x8] sm:$0xff] }
0x10c0   :  { %v5541_v50 = vpop.f32.mrf.mxu0  ;;  %v3205_v32 = vsel %vm765_vm11, %v3201_v18, -inf }
0x10c1   :  { %2967 = vadd.xlane.f32.xlu1 %v2966_v54  ;;  %3206 = vmax.xlane.f32.xlu0 %v3205_v32 }
0x10c5   :  { %2970 = vadd.xlane.f32.xlu0 %v2969_v19 }
0x10d2   :  { %3103 = vrot.lane.b32.xlu1 %v2979_v46, %s6233_s20 }
0x1146   :  { %v3204_v53 = vpop.xlane.xlu1 %3203 }
0x1147   :  { %v3208_v60 = vsub.f32 %v3200_v6, %v3204_v53  ;;  %v2821_v53 = vrot.slane %v7125_v49, %v6452_v58  ;;  %v3229_v58 = vsel %vm795_vm2, %v7162_v59, 0 }
0x1149   :  { %v3210_v34 = vmul.f32 1.442695, %v3208_v60  ;;  %v2886_v60 = vadd.f32 %v7131_v52, %v2821_v53 }
0x114a   :  { %v2968_v1 = vpop.xlane.xlu1 %2967  ;;  %v3207_v35 = vpop.xlane.xlu0 %3206 }
0x114b   :  { %5915 = vpow2.f32 %v3210_v34  ;;  %v2972_v45 = vmax.f32 %v2968_v1, 1e-20  ;;  %v3209_v33 = vsub.f32 %v3201_v18, %v3207_v35 }
0x114d   :  { %v3212_v0 = vmul.f32 1.442695, %v3209_v33  ;;  %5917 = vrcp.f32 %v2972_v45 }
0x114e   :  { %v3104_v9 = vpop.permute.xlu1 %3103  ;;  %v2971_v61 = vpop.xlane.xlu0 %2970 }
0x114f   :  { %5919 = vpow2.f32 %v3212_v0  ;;  %v2973_v38 = vmax.f32 %v2971_v61, 1e-20  ;;  %5531 = vmatpush3.bf16.msra.mxu1 %v3104_v9 }
0x1150   :  { %5542 = vmatprep.subr.bf16.mxu1 %v7762_v42 }
0x1151   :  { %5921 = vrcp.f32 %v2973_v38 }
0x1158   :  { %v5916_v20 = vpop.eup %5915 }
0x1159   :  { %v3214_v6 = vmul.f32 %v7227_v31, %v5916_v20 }
0x115a   :  { %v5918_v62 = vpop.eup %5917 }
0x115b   :  { %v3216_v26 = vsel %vm765_vm11, %v3214_v6, 0.0  ;;  %v2976_v32 = vmul.f32 %v5918_v62, %v2964_v63  ;;  %v7246_v63 = vsel %vm707_vm9, %v7162_v59, 0 }
0x115c   :  { %v5920_v57 = vpop.eup %5919  ;;  %3217 = vadd.xlane.f32.xlu1 %v3216_v26 }
0x115d   :  { %v3215_v18 = vmul.f32 %v7231_v15, %v5920_v57 }
0x115e   :  { %v5922_v50 = vpop.eup %5921 }
0x115f   :  { %v3219_v54 = vsel %vm765_vm11, %v3215_v18, 0.0  ;;  %v2977_v19 = vmul.f32 %v5922_v50, %v2965_v7  ;;  %v7248_v7 = vpack.c.bf16 %v2886_v60, %v2886_v60 }
0x1160   :  { %3220 = vadd.xlane.f32.xlu0 %v3219_v54 }
0x1161   :  { %v2978_v46 = vpack.c.bf16 %v2977_v19, %v2976_v32  ;;  %v7272_v20 = vsel %vm6483_vm7, %v7248_v7, 0 }
0x1163   :  { %5533 = vmatmul.mubr.msk.bf16.vlgmr.msra.gmra.mxu1 %vm765_vm11, %v2978_v46 }
0x1164   :  { %5543 = vmatpush3.bf16.xpose.msra.mxu1 %v7194_v11  ;;  %5544 = vmatprep.mubr.msk.bf16.mxu1 %vm6230_vm0, %v7762_v42 }
0x1165   :  { %5554 = vmatprep.subr.bf16.mxu1 %v7762_v42 }
0x116b   :  { %5545 = vmatmul.mubr.msk.bf16.vlgmr.msra.gmra.mxu1 %vm240_vm1, %v7246_v63 }
0x116c   :  { %5556 = vmatprep.mubr.msk.bf16.mxu1 %vm6230_vm0, %v7762_v42 }
0x116d   :  { %3401 = vrot.lane.b32.xlu1 %v7248_v7, %s6232_s10 }
0x1176   :  { %3353 = vrot.lane.b32.xlu0 %v3229_v58, %s6233_s20 }
0x11e5   :  { %v3218_v49 = vpop.xlane.xlu1 %3217 }
0x11e6   :  { %v3222_v52 = vmax.f32 %v3218_v49, 1e-20 }
0x11e8   :  { %5923 = vrcp.f32 %v3222_v52 }
0x11e9   :  { %v3221_v11 = vpop.xlane.xlu0 %3220  ;;  %v3402_v9 = vpop.permute.xlu1 %3401 }
0x11ea   :  { %v3223_v34 = vmax.f32 %v3221_v11, 1e-20  ;;  %v7262_v38 = vsel %vm240_vm1, %v3402_v9, 0 }
0x11ec   :  { %5925 = vrcp.f32 %v3223_v34 }
0x11ed   :  { %v3354_v1 = vpop.permute.xlu0 %3353 }
0x11ee   :  { %5555 = vmatpush3.bf16.msra.mxu1 %v3354_v1 }
0x11ef   :  { %5566 = vmatprep.subr.bf16.mxu1 %v7762_v42 }
0x11f5   :  { %v5924_v35 = vpop.eup %5923 }
0x11f6   :  { %v3226_v33 = vmul.f32 %v5924_v35, %v3214_v6 }
0x11f9   :  { %v5926_v45 = vpop.eup %5925 }
0x11fa   :  { %v3227_v0 = vmul.f32 %v5926_v45, %v3215_v18 }
0x11fc   :  { %v3228_v61 = vpack.c.bf16 %v3227_v0, %v3226_v33 }
0x11fe   :  { %5557 = vmatmul.mubr.msk.bf16.vlgmr.msra.gmra.mxu1 %vm765_vm11, %v3228_v61 }
0x11ff   :  { %5567 = vmatpush3.bf16.xpose.msra.mxu1 %v7262_v38  ;;  %5568 = vmatprep.mubr.msk.bf16.mxu1 %vm6230_vm0, %v7762_v42 }
0x1200   :  { %5578 = vmatprep.subr.bf16.mxu1 %v7762_v42 }
0x1206   :  { %5569 = vmatmul.mubr.msk.bf16.vlgmr.msra.gmra.mxu1 %vm240_vm1, %v7272_v20 }
0x1207   :  { %5580 = vmatprep.mubr.msk.bf16.mxu1 %vm6230_vm0, %v7762_v42 }
0x1223   :  { %v7278_v6 = vpop.f32.mrf.mxu1 }
0x1225   :  { %v5534_v62 = vpop.f32.mrf.mxu1 }
0x1227   :  { %v7280_v26 = vpop.f32.mrf.mxu1 }
0x1229   :  { %v5535_v57 = vpop.f32.mrf.mxu1 }
0x122b   :  { %v3267_v18 = vpop.f32.mrf.mxu1 }
0x122c   :  { %v3274_v50 = vsel %vm205_vm14, %v3267_v18, -1e+30  ;;  %vm7770_vm14 = vcmp.gt.f32.partialorder %v6672_v40, 0.0 }
0x122d   :  { %v5546_v54 = vpop.f32.mrf.mxu1  ;;  %v3276_v32 = vsel %vm765_vm11, %v3274_v50, -inf  ;;  %vm7771_vm10 = vmmov %vm7770_vm14 }
0x122e   :  { %3277 = vmax.xlane.f32.xlu1 %v3276_v32 }
0x122f   :  { %v3270_v19 = vpop.f32.mrf.mxu1 }
0x1230   :  { %v3275_v46 = vsel %vm7769_vm12, %v3270_v19, -1e+30  ;;  %vm7772_vm12 = vcmp.gt.f32.partialorder %v6777_v16, 0.0 }
0x1231   :  { %v5547_v53 = vpop.f32.mrf.mxu1  ;;  %v3279_v60 = vsel %vm765_vm11, %v3275_v46, -inf }
0x1232   :  { %3280 = vmax.xlane.f32.xlu0 %v3279_v60  ;;  %v3523_v53 = vsel %vm872_vm13, %v7248_v7, 0 }
0x12b7   :  { %v3278_v58 = vpop.xlane.xlu1 %3277 }
0x12b8   :  { %v3282_v49 = vsub.f32 %v3274_v50, %v3278_v58 }
0x12ba   :  { %v3284_v52 = vmul.f32 1.442695, %v3282_v49 }
0x12bb   :  { %v3281_v11 = vpop.xlane.xlu0 %3280 }
0x12bc   :  { %5927 = vpow2.f32 %v3284_v52  ;;  %v3283_v34 = vsub.f32 %v3275_v46, %v3281_v11 }
0x12be   :  { %v3286_v12 = vmul.f32 1.442695, %v3283_v34  ;;  %v7288_v1 = vpop.f32.mrf.mxu1 }
0x12c0   :  { %5929 = vpow2.f32 %v3286_v12  ;;  %v5558_v35 = vpop.f32.mrf.mxu1 }
0x12c2   :  { %v7290_v45 = vpop.f32.mrf.mxu1 }
0x12c4   :  { %v5559_v33 = vpop.f32.mrf.mxu1 }
0x12c6   :  { %v3502_v21 = vpop.f32.mrf.mxu1 }
0x12c7   :  { %v3508_v0 = vsel %vm7770_vm14, %v3502_v21, -1e+30  ;;  %vm7773_vm14 = vmmov %vm7772_vm12 }
0x12c8   :  { %v5570_v9 = vpop.f32.mrf.mxu1  ;;  %v3509_v61 = vsel %vm1270_vm4, %v3508_v0, -inf }
0x12c9   :  { %v5928_v62 = vpop.eup %5927  ;;  %3510 = vmax.xlane.f32.xlu0 %v3509_v61 }
0x12ca   :  { %v3505_v57 = vpop.f32.mrf.mxu1  ;;  %v3288_v18 = vmul.f32 %v7227_v31, %v5928_v62  ;;  %v3303_v31 = vsel %vm872_vm13, %v7162_v59, 0 }
0x12cc   :  { %v5571_v50 = vpop.f32.mrf.mxu1  ;;  %v3290_v54 = vsel %vm765_vm11, %v3288_v18, 0.0 }
0x12cd   :  { %v5930_v32 = vpop.eup %5929  ;;  %3291 = vadd.xlane.f32.xlu1 %v3290_v54  ;;  %v2898_v54 = vsel %vm6479_vm6, %v7248_v7, 0 }
0x12ce   :  { %v3289_v19 = vmul.f32 %v7231_v15, %v5930_v32  ;;  %v7311_v15 = vpack.c.bf16 %v7137_v22, %v7137_v22  ;;  %v7316_v22 = vld [vmem:[#allocation11] sm:$0xff] }
0x12d0   :  { %v3293_v46 = vsel %vm765_vm11, %v3289_v19, 0.0 }
0x12d1   :  { %3294 = vadd.xlane.f32.xlu0 %v3293_v46 }
0x12de   :  { %3525 = vrot.lane.b32.xlu1 %v3523_v53, %s6233_s20 }
0x12e7   :  { %3305 = vrot.lane.b32.xlu0 %v3303_v31, %s6233_s20 }
0x12eb   :  { %3827 = vrot.lane.b32.xlu0 %v7162_v59, %s6223_s26 }
0x12ef   :  { %4278 = vrot.lane.b32.xlu0 %v7311_v15, %s6232_s10 }
0x1352   :  { %v3511_v60 = vpop.xlane.xlu0 %3510 }
0x1353   :  { %v3512_v58 = vsub.f32 %v3508_v0, %v3511_v60 }
0x1355   :  { %v3513_v49 = vmul.f32 1.442695, %v3512_v58 }
0x1356   :  { %v3292_v52 = vpop.xlane.xlu1 %3291 }
0x1357   :  { %5931 = vpow2.f32 %v3513_v49  ;;  %v3296_v11 = vmax.f32 %v3292_v52, 1e-20 }
0x1359   :  { %5933 = vrcp.f32 %v3296_v11 }
0x135a   :  { %v3295_v34 = vpop.xlane.xlu0 %3294  ;;  %v3526_v50 = vpop.permute.xlu1 %3525 }
0x135b   :  { %v3297_v12 = vmax.f32 %v3295_v34, 1e-20  ;;  %v3531_v32 = vsel %vm1351_vm5, %v3526_v50, 0 }
0x135d   :  { %5935 = vrcp.f32 %v3297_v12 }
0x135e   :  { %v3306_v35 = vpop.permute.xlu0 %3305 }
0x135f   :  { %5549 = vmatpush3.bf16.msra.mxu0 %v3306_v35 }
0x1360   :  { %5560 = vmatprep.subr.bf16.mxu0 %v7762_v42 }
0x1364   :  { %v5932_v59 = vpop.eup %5931 }
0x1365   :  { %v3515_v33 = vmul.f32 %v7316_v22, %v5932_v59 }
0x1366   :  { %v5934_v0 = vpop.eup %5933 }
0x1367   :  { %v3516_v21 = vsel %vm1270_vm4, %v3515_v33, 0.0  ;;  %v3300_v61 = vmul.f32 %v5934_v0, %v3288_v18 }
0x1368   :  { %3517 = vadd.xlane.f32.xlu1 %v3516_v21 }
0x136a   :  { %v5936_v9 = vpop.eup %5935 }
0x136b   :  { %v3301_v62 = vmul.f32 %v5936_v9, %v3289_v19 }
0x136d   :  { %v3302_v57 = vpack.c.bf16 %v3301_v62, %v3300_v61 }
0x136f   :  { %5551 = vmatmul.mubr.msk.bf16.vlgmr.msra.gmra.mxu0 %vm765_vm11, %v3302_v57 }
0x1370   :  { %5561 = vmatpush3.bf16.xpose.msra.mxu0 %v7262_v38  ;;  %5562 = vmatprep.mubr.msk.bf16.mxu0 %vm6230_vm0, %v7762_v42 }
0x1371   :  { %5572 = vmatprep.subr.bf16.mxu0 %v7762_v42 }
0x1377   :  { %5563 = vmatmul.mubr.msk.bf16.vlgmr.msra.gmra.mxu0 %vm240_vm1, %v2898_v54 }
0x1378   :  { %5573 = vmatpush3.bf16.msra.mxu0 %v3531_v32  ;;  %5574 = vmatprep.mubr.msk.bf16.mxu0 %vm6230_vm0, %v7762_v42 }
0x1379   :  { %3622 = vrot.lane.b32.xlu1 %v7127_v4, %s6223_s26  ;;  %5584 = vmatprep.subr.bf16.mxu0 %v7762_v42  ;;  %v3828_v4 = vpop.permute.xlu0 %3827 }
0x137a   :  { %v3830_v58 = vsel %vm240_vm1, %v3828_v4, 0 }
0x137d   :  { %4032 = vrot.lane.b32.xlu1 %v7248_v7, %s6223_s26  ;;  %v4279_v12 = vpop.permute.xlu0 %4278 }
0x137e   :  { %v4281_v59 = vsel %vm240_vm1, %v4279_v12, 0 }
0x13f1   :  { %v3518_v38 = vpop.xlane.xlu1 %3517 }
0x13f2   :  { %v3519_v18 = vmax.f32 %v3518_v38, 1e-20 }
0x13f4   :  { %5937 = vrcp.f32 %v3519_v18 }
0x13f5   :  { %v3623_v53 = vpop.permute.xlu1 %3622 }
0x13f6   :  { %v3625_v60 = vsel %vm240_vm1, %v3623_v53, 0 }
0x13f9   :  { %v4033_v49 = vpop.permute.xlu1 %4032 }
0x13fa   :  { %v4035_v52 = vsel %vm240_vm1, %v4033_v49, 0 }
0x1401   :  { %v5938_v19 = vpop.eup %5937 }
0x1402   :  { %v3521_v46 = vmul.f32 %v5938_v19, %v3515_v33 }
0x1404   :  { %v3522_v31 = vpack.c.bf16 %v3521_v46, %v3521_v46 }
0x1406   :  { %5575 = vmatmul.mubr.msk.bf16.vlgmr.msra.gmra.mxu0 %vm1270_vm4, %v3522_v31 }
0x1407   :  { %5585 = vmatpush3.bf16.xpose.msra.mxu0 %v3625_v60  ;;  %5586 = vmatprep.mubr.msk.bf16.mxu0 %vm6230_vm0, %v7762_v42 }
0x1408   :  { %5596 = vmatprep.subr.bf16.mxu0 %v7762_v42 }
0x140e   :  { %5587 = vmatmul.mubr.msk.bf16.vlgmr.msra.gmra.mxu0 %vm240_vm1, %v2898_v54 }
0x140f   :  { %5597 = vmatpush3.bf16.xpose.msra.mxu0 %v3625_v60  ;;  %5598 = vmatprep.mubr.msk.bf16.mxu0 %vm6230_vm0, %v7762_v42 }
0x1410   :  { %5608 = vmatprep.subr.bf16.mxu0 %v7762_v42 }
0x1416   :  { %5599 = vmatmul.mubr.msk.bf16.vlgmr.msra.gmra.mxu0 %vm240_vm1, %v7272_v20 }
0x1417   :  { %5609 = vmatpush3.bf16.xpose.msra.mxu0 %v3830_v58  ;;  %5610 = vmatprep.mubr.msk.bf16.mxu0 %vm6230_vm0, %v7762_v42 }
0x1418   :  { %5620 = vmatprep.subr.bf16.mxu0 %v7762_v42 }
0x141e   :  { %5611 = vmatmul.mubr.msk.bf16.vlgmr.msra.gmra.mxu0 %vm240_vm1, %v2898_v54 }
0x141f   :  { %5621 = vmatpush3.bf16.xpose.msra.mxu0 %v3830_v58  ;;  %5622 = vmatprep.mubr.msk.bf16.mxu0 %vm6230_vm0, %v7762_v42 }
0x1420   :  { %5632 = vmatprep.subr.bf16.mxu0 %v7762_v42 }
0x1426   :  { %5623 = vmatmul.mubr.msk.bf16.vlgmr.msra.gmra.mxu0 %vm240_vm1, %v7272_v20 }
0x1427   :  { %5633 = vmatpush3.bf16.xpose.msra.mxu0 %v4035_v52  ;;  %5634 = vmatprep.mubr.msk.bf16.mxu0 %vm6230_vm0, %v7762_v42 }
0x1428   :  { %5644 = vmatprep.subr.bf16.mxu0 %v7762_v42 }
0x142e   :  { %5635 = vmatmul.mubr.msk.bf16.vlgmr.msra.gmra.mxu0 %vm240_vm1, %v7145_v5 }
0x142f   :  { %5645 = vmatpush3.bf16.xpose.msra.mxu0 %v4035_v52  ;;  %v7364_v11 = vpop.f32.mrf.mxu0  ;;  %5646 = vmatprep.mubr.msk.bf16.mxu0 %vm6230_vm0, %v7762_v42 }
0x1430   :  { %5656 = vmatprep.subr.bf16.mxu0 %v7762_v42 }
0x1431   :  { %v5552_v34 = vpop.f32.mrf.mxu0 }
0x1433   :  { %v7369_v20 = vpop.f32.mrf.mxu0 }
0x1435   :  { %v5553_v35 = vpop.f32.mrf.mxu0 }
0x1436   :  { %5647 = vmatmul.mubr.msk.bf16.vlgmr.msra.gmra.mxu0 %vm240_vm1, %v7150_v48 }
0x1437   :  { %5657 = vmatpush3.bf16.xpose.msra.mxu0 %v4281_v59  ;;  %v3443_v5 = vpop.f32.mrf.mxu0  ;;  %5658 = vmatprep.mubr.msk.bf16.mxu0 %vm6230_vm0, %v7762_v42 }
0x1438   :  { %v3449_v33 = vsel %vm7771_vm10, %v3443_v5, -1e+30  ;;  %5668 = vmatprep.subr.bf16.mxu0 %v7762_v42  ;;  %vm7774_vm10 = vcmp.gt.f32.partialorder %v6792_v55, 0.0 }
0x1439   :  { %v5564_v21 = vpop.f32.mrf.mxu0  ;;  %v3450_v0 = vsel %vm1270_vm4, %v3449_v33, -inf }
0x143a   :  { %3451 = vmax.xlane.f32.xlu1 %v3450_v0 }
0x143b   :  { %v3446_v9 = vpop.f32.mrf.mxu0 }
0x143d   :  { %v5565_v61 = vpop.f32.mrf.mxu0 }
0x143e   :  { %5659 = vmatmul.mubr.msk.bf16.vlgmr.msra.gmra.mxu0 %vm240_vm1, %v7204_v47 }
0x143f   :  { %5669 = vmatpush3.bf16.xpose.msra.mxu0 %v4281_v59  ;;  %5670 = vmatprep.mubr.msk.bf16.mxu0 %vm6230_vm0, %v7762_v42 }
0x1440   :  { %5680 = vmatprep.subr.bf16.mxu0 %v7762_v42 }
0x1446   :  { %5671 = vmatmul.mubr.msk.bf16.vlgmr.msra.gmra.mxu0 %vm240_vm1, %v7246_v63 }
0x1447   :  { %5684 = vmatprep.mubr.msk.bf16.mxu0 %vm6230_vm0, %v7762_v42 }
0x14c3   :  { %v3452_v9 = vpop.xlane.xlu1 %3451 }
0x14c6   :  { %v7389_v40 = vpop.f32.mrf.mxu0 }
0x14c8   :  { %v5576_v48 = vpop.f32.mrf.mxu0 }
0x14ca   :  { %v3570_v62 = vpop.f32.mrf.mxu0 }
0x14cb   :  { %v3453_v62 = vsub.f32 %v3449_v33, %v3452_v9 }
0x14cc   :  { %v5577_v57 = vpop.f32.mrf.mxu0 }
0x14ce   :  { %v3661_v50 = vpop.f32.mrf.mxu0 }
0x14cf   :  { %v7393_v47 = vsel %vm7772_vm12, %v3661_v50, -1e+30  ;;  %vm7775_vm12 = vmmov %vm7774_vm10 }
0x14d0   :  { %v3668_v54 = vsel %vm765_vm11, %v7393_v47, -inf  ;;  %v5588_v32 = vpop.f32.mrf.mxu0 }
0x14d1   :  { %3669 = vmax.xlane.f32.xlu0 %v3668_v54  ;;  %v7777_v54 = vld [vmem:[#allocation24_spill] sm:$0xff] }
0x14d2   :  { %v3664_v38 = vpop.f32.mrf.mxu0 }
0x14d3   :  { %v3454_v38 = vmul.f32 1.442695, %v3453_v62 }
0x14d4   :  { %v5589_v63 = vpop.f32.mrf.mxu0 }
0x14d5   :  { %5939 = vpow2.f32 %v3454_v38 }
0x14d6   :  { %v3761_v18 = vpop.f32.mrf.mxu0 }
0x14d7   :  { %v7399_v19 = vsel %vm7773_vm14, %v3761_v18, -1e+30  ;;  %vm7776_vm14 = vcmp.gt.f32.partialorder %v6810_v24, 0.0 }
0x14d8   :  { %v3768_v46 = vsel %vm765_vm11, %v7399_v19, -inf  ;;  %v5600_v53 = vpop.f32.mrf.mxu0 }
0x14d9   :  { %3769 = vmax.xlane.f32.xlu0 %v3768_v46 }
0x14da   :  { %v3764_v31 = vpop.f32.mrf.mxu0 }
0x14dc   :  { %v5601_v60 = vpop.f32.mrf.mxu0 }
0x14de   :  { %v3866_v4 = vpop.f32.mrf.mxu0 }
0x14df   :  { %v7405_v58 = vsel %vm7774_vm10, %v3866_v4, -1e+30  ;;  %vm7778_vm10 = vcmp.gt.f32.partialorder %v7777_v54, 0.0 }
0x14e0   :  { %v5612_v49 = vpop.f32.mrf.mxu0  ;;  %v3873_v52 = vsel %vm765_vm11, %v7405_v58, -inf }
0x14e1   :  { %3874 = vmax.xlane.f32.xlu1 %v3873_v52 }
0x14e2   :  { %v3869_v16 = vpop.f32.mrf.mxu0  ;;  %v5940_v9 = vpop.eup %5939 }
0x14e4   :  { %v5613_v34 = vpop.f32.mrf.mxu0 }
0x14e6   :  { %v3966_v12 = vpop.f32.mrf.mxu0 }
0x14e7   :  { %v7411_v35 = vsel %vm7775_vm12, %v3966_v12, -1e+30  ;;  %vm7779_vm12 = vmmov %vm7776_vm14 }
0x14e8   :  { %v3973_v59 = vsel %vm765_vm11, %v7411_v35, -inf  ;;  %v5624_v5 = vpop.f32.mrf.mxu0 }
0x14e9   :  { %3974 = vmax.xlane.f32.xlu0 %v3973_v59 }
0x14ea   :  { %v3969_v21 = vpop.f32.mrf.mxu0 }
0x14ec   :  { %v5625_v0 = vpop.f32.mrf.mxu0 }
0x14ee   :  { %v4071_v61 = vpop.f32.mrf.mxu0 }
0x14ef   :  { %v7417_v48 = vsel %vm7776_vm14, %v4071_v61, -1e+30  ;;  %vm7780_vm14 = vmmov %vm7778_vm10 }
0x14f0   :  { %v5636_v57 = vpop.f32.mrf.mxu0  ;;  %v4080_v55 = vsel %vm1270_vm4, %v7417_v48, -inf }
0x14f1   :  { %4081 = vmax.xlane.f32.xlu1 %v4080_v55 }
0x14f2   :  { %v4074_v50 = vpop.f32.mrf.mxu0 }
0x14f3   :  { %v7423_v32 = vsel %vm7778_vm10, %v4074_v50, -1e+30  ;;  %v7458_v50 = vmul.f32 %v7316_v22, %v5940_v9 }
0x14f4   :  { %v4083_v63 = vsel %vm1270_vm4, %v7423_v32, -inf  ;;  %v5637_v18 = vpop.f32.mrf.mxu0 }
0x14f5   :  { %4084 = vmax.xlane.f32.xlu0 %v4083_v63  ;;  %v3457_v17 = vsel %vm1270_vm4, %v7458_v50, 0.0 }
0x14f6   :  { %v4191_v46 = vpop.f32.mrf.mxu0 }
0x14f7   :  { %v7429_v33 = vsel %vm7779_vm12, %v4191_v46, -1e+30 }
0x14f8   :  { %v5648_v53 = vpop.f32.mrf.mxu0  ;;  %v4200_v31 = vsel %vm1270_vm4, %v7429_v33, -inf }
0x14f9   :  { %4201 = vmax.xlane.f32.xlu1 %v4200_v31 }
0x14fa   :  { %v4194_v60 = vpop.f32.mrf.mxu0 }
0x14fb   :  { %v7435_v4 = vsel %vm7780_vm14, %v4194_v60, -1e+30 }
0x14fc   :  { %v4203_v49 = vsel %vm1270_vm4, %v7435_v4, -inf  ;;  %v5649_v52 = vpop.f32.mrf.mxu0 }
0x14fd   :  { %4204 = vmax.xlane.f32.xlu0 %v4203_v49 }
0x14fe   :  { %v4317_v16 = vpop.f32.mrf.mxu0 }
0x14ff   :  { %v7441_v24 = vsel %vm212_vm3, %v4317_v16, -1e+30 }
0x1500   :  { %v5660_v34 = vpop.f32.mrf.mxu0  ;;  %v4326_v12 = vsel %vm1270_vm4, %v7441_v24, -inf }
0x1501   :  { %4327 = vmax.xlane.f32.xlu1 %v4326_v12  ;;  %v6007_v12 = vld [vmem:[#allocation13] sm:$0xff] }
0x1502   :  { %v4320_v59 = vpop.f32.mrf.mxu0 }
0x1503   :  { %v7447_v5 = vsel %vm213_vm15, %v4320_v59, -1e+30 }
0x1504   :  { %v4329_v21 = vsel %vm1270_vm4, %v7447_v5, -inf  ;;  %v5661_v0 = vpop.f32.mrf.mxu0 }
0x1505   :  { %4330 = vmax.xlane.f32.xlu0 %v4329_v21 }
0x1506   :  { %v4440_v61 = vpop.f32.mrf.mxu0 }
0x1507   :  { %v7453_v62 = vsel %vm212_vm3, %v4440_v61, -1e+30 }
0x1508   :  { %v5672_v57 = vpop.f32.mrf.mxu0  ;;  %v4449_v55 = vsel %vm1270_vm4, %v7453_v62, -inf }
0x1509   :  { %4450 = vmax.xlane.f32.xlu1 %v4449_v55 }
0x150a   :  { %v4443_v54 = vpop.f32.mrf.mxu0 }
0x150b   :  { %v7462_v38 = vsel %vm213_vm15, %v4443_v54, -1e+30 }
0x150c   :  { %v4452_v63 = vsel %vm1270_vm4, %v7462_v38, -inf  ;;  %v5673_v18 = vpop.f32.mrf.mxu0 }
0x150d   :  { %3458 = vadd.xlane.f32.xlu1 %v3457_v17  ;;  %4453 = vmax.xlane.f32.xlu0 %v4452_v63  ;;  %v6008_v18 = vld [vmem:[#allocation14] sm:$0xff] }
0x155a   :  { %v3670_v46 = vpop.xlane.xlu0 %3669 }
0x155b   :  { %v3671_v53 = vsub.f32 %v7393_v47, %v3670_v46 }
0x155d   :  { %v3672_v22 = vmul.f32 1.442695, %v3671_v53 }
0x155f   :  { %5941 = vpow2.f32 %v3672_v22 }
0x1562   :  { %v3770_v31 = vpop.xlane.xlu0 %3769 }
0x1563   :  { %v3771_v60 = vsub.f32 %v7399_v19, %v3770_v31 }
0x1565   :  { %v3772_v25 = vmul.f32 1.442695, %v3771_v60 }
0x1567   :  { %5943 = vpow2.f32 %v3772_v25 }
0x156a   :  { %v3875_v49 = vpop.xlane.xlu1 %3874 }
0x156b   :  { %v3876_v52 = vsub.f32 %v7405_v58, %v3875_v49 }
0x156c   :  { %v5942_v16 = vpop.eup %5941 }
0x156d   :  { %v3877_v34 = vmul.f32 1.442695, %v3876_v52  ;;  %v7471_v59 = vmul.f32 %v6007_v12, %v5942_v16 }
0x156f   :  { %5945 = vpow2.f32 %v3877_v34  ;;  %v3675_v21 = vsel %vm765_vm11, %v7471_v59, 0.0  ;;  %v3464_v34 = vsel %vm795_vm2, %v7248_v7, 0 }
0x1570   :  { %3676 = vadd.xlane.f32.xlu0 %v3675_v21 }
0x1572   :  { %v3975_v47 = vpop.xlane.xlu0 %3974 }
0x1573   :  { %v3976_v0 = vsub.f32 %v7411_v35, %v3975_v47  ;;  %v6009_v47 = vld [vmem:[%s7729_s12] sm:$0xff] }
0x1574   :  { %v5944_v9 = vpop.eup %5943 }
0x1575   :  { %v3977_v19 = vmul.f32 1.442695, %v3976_v0  ;;  %v7476_v61 = vmul.f32 %v6007_v12, %v5944_v9 }
0x1577   :  { %5947 = vpow2.f32 %v3977_v19  ;;  %v3775_v58 = vsel %vm765_vm11, %v7476_v61, 0.0 }
0x1578   :  { %3776 = vadd.xlane.f32.xlu1 %v3775_v58 }
0x157a   :  { %v4082_v57 = vpop.xlane.xlu1 %4081 }
0x157b   :  { %v4086_v55 = vsub.f32 %v7417_v48, %v4082_v57 }
0x157c   :  { %v5946_v54 = vpop.eup %5945 }
0x157d   :  { %v4088_v63 = vmul.f32 1.442695, %v4086_v55  ;;  %v7481_v17 = vmul.f32 %v6008_v18, %v5946_v54  ;;  %v6010_v55 = vld [vmem:[%s7729_s12 + $0x8] sm:$0xff] }
0x157e   :  { %v4085_v46 = vpop.xlane.xlu0 %4084 }
0x157f   :  { %5949 = vpow2.f32 %v4088_v63  ;;  %v4087_v35 = vsub.f32 %v7423_v32, %v4085_v46  ;;  %v3880_v53 = vsel %vm765_vm11, %v7481_v17, 0.0 }
0x1580   :  { %3881 = vadd.xlane.f32.xlu0 %v3880_v53 }
0x1581   :  { %v4090_v22 = vmul.f32 1.442695, %v4087_v35 }
0x1582   :  { %v4202_v31 = vpop.xlane.xlu1 %4201 }
0x1583   :  { %5951 = vpow2.f32 %v4090_v22  ;;  %v4206_v60 = vsub.f32 %v7429_v33, %v4202_v31 }
0x1584   :  { %v5948_v25 = vpop.eup %5947 }
0x1585   :  { %v4208_v48 = vmul.f32 1.442695, %v4206_v60  ;;  %v7487_v49 = vmul.f32 %v6008_v18, %v5948_v25 }
0x1586   :  { %v4205_v52 = vpop.xlane.xlu0 %4204 }
0x1587   :  { %5953 = vpow2.f32 %v4208_v48  ;;  %v4207_v16 = vsub.f32 %v7435_v4, %v4205_v52  ;;  %v3980_v32 = vsel %vm765_vm11, %v7487_v49, 0.0 }
0x1588   :  { %3981 = vadd.xlane.f32.xlu0 %v3980_v32  ;;  %v6011_v32 = vld [vmem:[%s7730_s13 + $0x8] sm:$0xff] }
0x1589   :  { %v4210_v12 = vmul.f32 1.442695, %v4207_v16  ;;  %3574 = vrot.lane.b32.xlu1 %v3464_v34, %s6233_s20 }
0x158a   :  { %v4328_v21 = vpop.xlane.xlu1 %4327 }
0x158b   :  { %5955 = vpow2.f32 %v4210_v12  ;;  %v4332_v7 = vsub.f32 %v7441_v24, %v4328_v21  ;;  %v6012_v21 = vld [vmem:[%s7730_s13] sm:$0xff] }
0x158c   :  { %v5950_v33 = vpop.eup %5949 }
0x158d   :  { %v7499_v0 = vmul.f32 %v6009_v47, %v5950_v33  ;;  %v4334_v35 = vmul.f32 1.442695, %v4332_v7 }
0x158e   :  { %v4331_v4 = vpop.xlane.xlu0 %4330 }
0x158f   :  { %v4333_v9 = vsub.f32 %v7447_v5, %v4331_v4  ;;  %v4094_v19 = vsel %vm1270_vm4, %v7499_v0, 0.0 }
0x1590   :  { %v5952_v58 = vpop.eup %5951  ;;  %4095 = vadd.xlane.f32.xlu0 %v4094_v19 }
0x1591   :  { %v4336_v57 = vmul.f32 1.442695, %v4333_v9  ;;  %v7508_v54 = vmul.f32 %v6010_v55, %v5952_v58 }
0x1592   :  { %v4451_v63 = vpop.xlane.xlu1 %4450 }
0x1593   :  { %5957 = vpow2.f32 %v4336_v57  ;;  %v4455_v18 = vsub.f32 %v7453_v62, %v4451_v63  ;;  %v4097_v5 = vsel %vm1270_vm4, %v7508_v54, 0.0  ;;  %v4353_v63 = vsel %vm795_vm2, %v7311_v15, 0 }
0x1594   :  { %v5954_v46 = vpop.eup %5953  ;;  %4098 = vadd.xlane.f32.xlu0 %v4097_v5 }
0x1595   :  { %v4457_v53 = vmul.f32 1.442695, %v4455_v18  ;;  %v7513_v24 = vmul.f32 %v6009_v47, %v5954_v46 }
0x1596   :  { %v4454_v22 = vpop.xlane.xlu0 %4453  ;;  %v3459_v18 = vpop.xlane.xlu1 %3458 }
0x1597   :  { %5959 = vpow2.f32 %v4457_v53  ;;  %v4456_v31 = vsub.f32 %v7462_v38, %v4454_v22  ;;  %v4214_v60 = vsel %vm1270_vm4, %v7513_v24, 0.0  ;;  %v3460_v5 = vmax.f32 %v3459_v18, 1e-20 }
0x1598   :  { %v5956_v25 = vpop.eup %5955  ;;  %5961 = vpow2.f32 %v4334_v35  ;;  %4215 = vadd.xlane.f32.xlu0 %v4214_v60 }
0x1599   :  { %v4459_v62 = vmul.f32 1.442695, %v4456_v31  ;;  %v7518_v48 = vmul.f32 %v6010_v55, %v5956_v25  ;;  %v4476_v55 = vsel %vm872_vm13, %v7311_v15, 0 }
0x159b   :  { %5963 = vpow2.f32 %v4459_v62  ;;  %v4217_v52 = vsel %vm1270_vm4, %v7518_v48, 0.0 }
0x159c   :  { %4218 = vadd.xlane.f32.xlu0 %v4217_v52  ;;  %5965 = vrcp.f32 %v3460_v5 }
0x15a0   :  { %v5958_v16 = vpop.eup %5957 }
0x15a1   :  { %v7525_v38 = vmul.f32 %v6011_v32, %v5958_v16 }
0x15a3   :  { %v4343_v34 = vsel %vm1270_vm4, %v7525_v38, 0.0 }
0x15a4   :  { %v5960_v12 = vpop.eup %5959  ;;  %4344 = vadd.xlane.f32.xlu0 %v4343_v34 }
0x15a5   :  { %v5962_v33 = vpop.eup %5961  ;;  %v7532_v47 = vmul.f32 %v6012_v21, %v5960_v12 }
0x15a6   :  { %v7536_v19 = vmul.f32 %v6012_v21, %v5962_v33 }
0x15a7   :  { %v4463_v4 = vsel %vm1270_vm4, %v7532_v47, 0.0 }
0x15a8   :  { %v5964_v9 = vpop.eup %5963  ;;  %4464 = vadd.xlane.f32.xlu0 %v4463_v4  ;;  %v4340_v57 = vsel %vm1270_vm4, %v7536_v19, 0.0  ;;  %v3782_v4 = vsel %vm707_vm9, %v7133_v56, 0 }
0x15a9   :  { %v7538_v58 = vmul.f32 %v6011_v32, %v5964_v9  ;;  %v5966_v53 = vpop.eup %5965  ;;  %v3682_v32 = vsel %vm697_vm8, %v7133_v56, 0 }
0x15aa   :  { %v3462_v14 = vmul.f32 %v5966_v53, %v7458_v50 }
0x15ab   :  { %v4466_v7 = vsel %vm1270_vm4, %v7538_v58, 0.0 }
0x15ac   :  { %4467 = vadd.xlane.f32.xlu0 %v4466_v7  ;;  %v3463_v3 = vpack.c.bf16 %v3462_v14, %v3462_v14  ;;  %v4107_v14 = vsel %vm6479_vm6, %v7311_v15, 0 }
0x15ad   :  { %4341 = vadd.xlane.f32.xlu1 %v4340_v57  ;;  %v4112_v43 = vsel %vm1351_vm5, %v4107_v14, 0 }
0x15be   :  { %4478 = vrot.lane.b32.xlu1 %v4476_v55, %s6233_s20 }
0x15c2   :  { %4355 = vrot.lane.b32.xlu0 %v4353_v63, %s6233_s20  ;;  %v3887_v63 = vsel %vm697_vm8, %v7164_v39, 0 }
0x15f9   :  { %v3677_v46 = vpop.xlane.xlu0 %3676 }
0x15fa   :  { %v3678_v35 = vmax.f32 %v3677_v46, 1e-20 }
0x15fc   :  { %5967 = vrcp.f32 %v3678_v35 }
0x1601   :  { %v3777_v22 = vpop.xlane.xlu1 %3776 }
0x1602   :  { %v3778_v31 = vmax.f32 %v3777_v22, 1e-20 }
0x1604   :  { %5969 = vrcp.f32 %v3778_v31 }
0x1605   :  { %v3575_v60 = vpop.permute.xlu1 %3574 }
0x1606   :  { %v3580_v25 = vsel %vm1351_vm5, %v3575_v60, 0 }
0x1607   :  { %5579 = vmatpush3.bf16.msra.mxu1 %v3580_v25 }
0x1608   :  { %5590 = vmatprep.subr.bf16.mxu1 %v7762_v42 }
0x1609   :  { %v5968_v62 = vpop.eup %5967  ;;  %v3882_v52 = vpop.xlane.xlu0 %3881 }
0x160a   :  { %v3883_v16 = vmax.f32 %v3882_v52, 1e-20  ;;  %5581 = vmatmul.mubr.msk.bf16.vlgmr.msra.gmra.mxu1 %vm1270_vm4, %v3463_v3  ;;  %v3680_v50 = vmul.f32 %v5968_v62, %v7471_v59  ;;  %v4227_v62 = vsel %vm6483_vm7, %v7311_v15, 0 }
0x160b   :  { %5591 = vmatpush3.bf16.msra.mxu1 %v3682_v32  ;;  %5592 = vmatprep.mubr.msk.bf16.mxu1 %vm6230_vm0, %v7762_v42  ;;  %v4232_v32 = vsel %vm1351_vm5, %v4227_v62, 0 }
0x160c   :  { %5971 = vrcp.f32 %v3883_v16  ;;  %5602 = vmatprep.subr.bf16.mxu1 %v7762_v42  ;;  %v3681_v34 = vpack.c.bf16 %v3680_v50, %v3680_v50 }
0x1611   :  { %v5970_v12 = vpop.eup %5969  ;;  %v3982_v33 = vpop.xlane.xlu0 %3981 }
0x1612   :  { %v3983_v21 = vmax.f32 %v3982_v33, 1e-20  ;;  %5593 = vmatmul.mubr.msk.bf16.vlgmr.msra.gmra.mxu1 %vm765_vm11, %v3681_v34  ;;  %v3780_v9 = vmul.f32 %v5970_v12, %v7476_v61 }
0x1613   :  { %5603 = vmatpush3.bf16.msra.mxu1 %v3782_v4  ;;  %5604 = vmatprep.mubr.msk.bf16.mxu1 %vm6230_vm0, %v7762_v42 }
0x1614   :  { %5973 = vrcp.f32 %v3983_v21  ;;  %5614 = vmatprep.subr.bf16.mxu1 %v7762_v42  ;;  %v3781_v59 = vpack.c.bf16 %v3780_v9, %v3780_v9 }
0x1619   :  { %v5972_v7 = vpop.eup %5971  ;;  %v4096_v57 = vpop.xlane.xlu0 %4095 }
0x161a   :  { %v4100_v55 = vmax.f32 %v4096_v57, 1e-20  ;;  %5605 = vmatmul.mubr.msk.bf16.vlgmr.msra.gmra.mxu1 %vm765_vm11, %v3781_v59  ;;  %v3885_v56 = vmul.f32 %v5972_v7, %v7481_v17 }
0x161b   :  { %5615 = vmatpush3.bf16.msra.mxu1 %v3887_v63  ;;  %5616 = vmatprep.mubr.msk.bf16.mxu1 %vm6230_vm0, %v7762_v42 }
0x161c   :  { %5626 = vmatprep.subr.bf16.mxu1 %v7762_v42  ;;  %5975 = vrcp.f32 %v4100_v55  ;;  %v3886_v5 = vpack.c.bf16 %v3885_v56, %v3885_v56 }
0x161d   :  { %v4099_v18 = vpop.xlane.xlu0 %4098 }
0x161e   :  { %v4101_v61 = vmax.f32 %v4099_v18, 1e-20 }
0x1620   :  { %5977 = vrcp.f32 %v4101_v61 }
0x1621   :  { %v5974_v46 = vpop.eup %5973  ;;  %v4216_v35 = vpop.xlane.xlu0 %4215 }
0x1622   :  { %v4220_v53 = vmax.f32 %v4216_v35, 1e-20  ;;  %5617 = vmatmul.mubr.msk.bf16.vlgmr.msra.gmra.mxu1 %vm765_vm11, %v3886_v5  ;;  %v3985_v17 = vmul.f32 %v5974_v46, %v7487_v49 }
0x1623   :  { %5627 = vmatpush3.bf16.msra.mxu1 %v3987_v41  ;;  %5628 = vmatprep.mubr.msk.bf16.mxu1 %vm6230_vm0, %v7762_v42 }
0x1624   :  { %5638 = vmatprep.subr.bf16.mxu1 %v7762_v42  ;;  %5979 = vrcp.f32 %v4220_v53  ;;  %v3986_v60 = vpack.c.bf16 %v3985_v17, %v3985_v17  ;;  %v5802_v53 = vld [vmem:[%s7722_s5 + $0x40] sm:$0xff]  }
0x1625   :  { %v4219_v22 = vpop.xlane.xlu0 %4218 }
0x1626   :  { %v4221_v31 = vmax.f32 %v4219_v22, 1e-20 }
0x1628   :  { %5981 = vrcp.f32 %v4221_v31 }
0x1629   :  { %v5976_v39 = vpop.eup %5975 }
0x162a   :  { %5629 = vmatmul.mubr.msk.bf16.vlgmr.msra.gmra.mxu1 %vm765_vm11, %v3986_v60  ;;  %v4104_v3 = vmul.f32 %v5976_v39, %v7499_v0 }
0x162b   :  { %5639 = vmatpush3.bf16.msra.mxu1 %v4112_v43  ;;  %5640 = vmatprep.mubr.msk.bf16.mxu1 %vm6230_vm0, %v7762_v42 }
0x162c   :  { %5650 = vmatprep.subr.bf16.mxu1 %v7762_v42 }
0x162d   :  { %v5978_v49 = vpop.eup %5977  ;;  %v4345_v25 = vpop.xlane.xlu0 %4344 }
0x162e   :  { %v4105_v29 = vmul.f32 %v5978_v49, %v7508_v54  ;;  %v4347_v34 = vmax.f32 %v4345_v25, 1e-20 }
0x1630   :  { %v4106_v52 = vpack.c.bf16 %v4105_v29, %v4104_v3  ;;  %5983 = vrcp.f32 %v4347_v34 }
0x1631   :  { %v4465_v16 = vpop.xlane.xlu0 %4464  ;;  %v5980_v50 = vpop.eup %5979 }
0x1632   :  { %5641 = vmatmul.mubr.msk.bf16.vlgmr.msra.gmra.mxu1 %vm1270_vm4, %v4106_v52  ;;  %v4224_v12 = vmul.f32 %v5980_v50, %v7513_v24  ;;  %v4469_v7 = vmax.f32 %v4465_v16, 1e-20 }
0x1633   :  { %5651 = vmatpush3.bf16.msra.mxu1 %v4232_v32  ;;  %5652 = vmatprep.mubr.msk.bf16.mxu1 %vm6230_vm0, %v7762_v42 }
0x1634   :  { %5662 = vmatprep.subr.bf16.mxu1 %v7762_v42 }
0x1635   :  { %v5982_v0 = vpop.eup %5981  ;;  %v4468_v54 = vpop.xlane.xlu0 %4467 }
0x1636   :  { %v4225_v30 = vmul.f32 %v5982_v0, %v7518_v48  ;;  %v4342_v15 = vpop.xlane.xlu1 %4341  ;;  %v4470_v4 = vmax.f32 %v4468_v54, 1e-20 }
0x1637   :  { %v4346_v33 = vmax.f32 %v4342_v15, 1e-20 }
0x1638   :  { %v4226_v21 = vpack.c.bf16 %v4225_v30, %v4224_v12 }
0x1639   :  { %5985 = vrcp.f32 %v4346_v33  ;;  %v4356_v9 = vpop.permute.xlu0 %4355 }
0x163a   :  { %v4361_v59 = vsel %vm1351_vm5, %v4356_v9, 0  ;;  %5653 = vmatmul.mubr.msk.bf16.vlgmr.msra.gmra.mxu1 %vm1270_vm4, %v4226_v21  ;;  %5987 = vrcp.f32 %v4470_v4  ;;  %v4479_v63 = vpop.permute.xlu1 %4478 }
0x163b   :  { %5663 = vmatpush3.bf16.msra.mxu1 %v4361_v59  ;;  %5664 = vmatprep.mubr.msk.bf16.mxu1 %vm6230_vm0, %v7762_v42  ;;  %5989 = vrcp.f32 %v4469_v7  ;;  %v4484_v61 = vsel %vm1351_vm5, %v4479_v63, 0  ;;  %v3144_v7 = vadd.f32 %v7278_v6, %v7210_v36 }
0x163c   :  { %5674 = vmatprep.subr.bf16.mxu1 %v7762_v42 }
0x163d   :  { %v5984_v24 = vpop.eup %5983 }
0x163e   :  { %v4351_v57 = vmul.f32 %v5984_v24, %v7525_v38 }
0x1646   :  { %v5986_v48 = vpop.eup %5985 }
0x1647   :  { %v4350_v55 = vmul.f32 %v5986_v48, %v7536_v19  ;;  %v5988_v18 = vpop.eup %5987  ;;  %v5797_v19 = vld [vmem:[%s7722_s5 + $0x38] sm:$0xff]  }
0x1648   :  { %v5990_v5 = vpop.eup %5989  ;;  %v4474_v46 = vmul.f32 %v5988_v18, %v7538_v58  ;;  %5681 = vmatpush3.bf16.msra.mxu0 %v5797_v19  ;;  %v5798_v58 = vld [vmem:[%s7722_s5 + $0x30] sm:$0xff]  }
0x1649   :  { %v4352_v56 = vpack.c.bf16 %v4351_v57, %v4350_v55  ;;  %v4473_v38 = vmul.f32 %v5990_v5, %v7532_v47  ;;  %5682 = vmatprep.subr.bf16.mxu0 %v7762_v42  ;;  %v5801_v47 = vld [vmem:[%s7722_s5 + $0x48] sm:$0xff]  }
0x164b   :  { %5665 = vmatmul.mubr.msk.bf16.vlgmr.msra.gmra.mxu1 %vm1270_vm4, %v4352_v56  ;;  %v4475_v35 = vpack.c.bf16 %v4474_v46, %v4473_v38 }
0x164c   :  { %5675 = vmatpush3.bf16.msra.mxu1 %v4484_v61  ;;  %5676 = vmatprep.mubr.msk.bf16.mxu1 %vm6230_vm0, %v7762_v42 }
0x164d   :  { %5688 = vmatprep.subr.bf16.mxu1 %v7762_v42  ;;  %5683 = vmatpush3.bf16.msra.mxu0 %v5798_v58 }
0x164e   :  { %5696 = vmatprep.subr.bf16.mxu0 %v7762_v42 }
0x1653   :  { %5677 = vmatmul.mubr.msk.bf16.vlgmr.msra.gmra.mxu1 %vm1270_vm4, %v4475_v35 }
0x1654   :  { %5692 = vmatprep.mubr.msk.bf16.mxu1 %vm6230_vm0, %v7762_v42  ;;  %5689 = vmatpush3.bf16.msra.mxu1 %v5801_v47 }
0x1655   :  { %5690 = vmatprep.subr.bf16.mxu1 %v7762_v42 }
0x1658   :  { %5691 = vmatpush3.bf16.msra.mxu1 %v5802_v53 }
0x1659   :  { %5704 = vmatprep.subr.bf16.mxu1 %v7762_v42 }
0x16ca   :  { %v3616_v41 = vpop.f32.mrf.mxu1 }
0x16cb   :  { %v3617_v0 = vadd.f32 %v3616_v41, %v7389_v40  ;;  %v3147_v40 = vadd.f32 %v7280_v26, %v7212_v27 }
0x16cc   :  { %v5582_v17 = vpop.f32.mrf.mxu1 }
0x16ce   :  { %v3619_v22 = vpop.f32.mrf.mxu1 }
0x16d0   :  { %v5583_v31 = vpop.f32.mrf.mxu1 }
0x16d2   :  { %v3720_v14 = vpop.f32.mrf.mxu1 }
0x16d3   :  { %v3726_v12 = vadd.f32 %v3720_v14, %v3617_v0 }
0x16d4   :  { %v5594_v60 = vpop.f32.mrf.mxu1 }
0x16d6   :  { %v3723_v43 = vpop.f32.mrf.mxu1 }
0x16d8   :  { %v5595_v39 = vpop.f32.mrf.mxu1 }
0x16d9   :  { %v3394_v39 = vadd.f32 %v7288_v1, %v7364_v11 }
0x16da   :  { %v3820_v49 = vpop.f32.mrf.mxu1 }
0x16db   :  { %v3826_v15 = vadd.f32 %v3820_v49, %v3726_v12 }
0x16dc   :  { %v5606_v25 = vpop.f32.mrf.mxu1 }
0x16de   :  { %v3823_v3 = vpop.f32.mrf.mxu1 }
0x16e0   :  { %v5607_v29 = vpop.f32.mrf.mxu1 }
0x16e2   :  { %v3925_v62 = vpop.f32.mrf.mxu1 }
0x16e3   :  { %v3931_v21 = vadd.f32 %v3925_v62, %v3826_v15  ;;  %v3397_v62 = vadd.f32 %v7290_v45, %v7369_v20  ;;  %v5799_v20 = vld [vmem:[%s7722_s5 + $0x58] sm:$0xff]  }
0x16e4   :  { %v5618_v52 = vpop.f32.mrf.mxu1 }
0x16e6   :  { %v3928_v16 = vpop.f32.mrf.mxu1 }
0x16e8   :  { %v5619_v32 = vpop.f32.mrf.mxu1 }
0x16ea   :  { %v4025_v50 = vpop.f32.mrf.mxu1 }
0x16eb   :  { %v7641_v9 = vadd.f32 %v4025_v50, %v3931_v21 }
0x16ec   :  { %v5630_v34 = vpop.f32.mrf.mxu1 }
0x16ed   :  { %v4730_v48 = vmul.f32 %v7641_v9, %v7641_v9 }
0x16ee   :  { %v4028_v54 = vpop.f32.mrf.mxu1 }
0x16ef   :  { %v4731_v18 = vmul.f32 %v4730_v48, %v7641_v9 }
0x16f0   :  { %v5631_v30 = vpop.f32.mrf.mxu1 }
0x16f1   :  { %v4732_v36 = vmul.f32 0.044715, %v4731_v18 }
0x16f2   :  { %v4148_v33 = vpop.f32.mrf.mxu1 }
0x16f3   :  { %v4155_v57 = vadd.f32 %v4148_v33, %v3144_v7  ;;  %v4733_v41 = vadd.f32 %v4732_v36, %v7641_v9 }
0x16f4   :  { %v5642_v4 = vpop.f32.mrf.mxu1 }
0x16f5   :  { %v4734_v26 = vmul.f32 0.7978846, %v4733_v41 }
0x16f6   :  { %v4151_v59 = vpop.f32.mrf.mxu1 }
0x16f7   :  { %v4156_v61 = vadd.f32 %v4151_v59, %v3147_v40 }
0x16f8   :  { %v5643_v24 = vpop.f32.mrf.mxu1 }
0x16fa   :  { %v4268_v55 = vpop.f32.mrf.mxu1 }
0x16fb   :  { %v4275_v63 = vadd.f32 %v4268_v55, %v4155_v57 }
0x16fc   :  { %v5654_v56 = vpop.f32.mrf.mxu1 }
0x16fd   :  { %v4531_v5 = vmul.f32 %v4275_v63, %v4275_v63  ;;  %v4529_v15 = vmul.f32 0.5, %v4275_v63 }
0x16fe   :  { %v4271_v46 = vpop.f32.mrf.mxu1 }
0x16ff   :  { %v4533_v38 = vmul.f32 %v4531_v5, %v4275_v63  ;;  %v4276_v35 = vadd.f32 %v4271_v46, %v4156_v61  ;;  %v5800_v61 = vld [vmem:[%s7722_s5 + $0x50] sm:$0xff]  }
0x1700   :  { %v5655_v19 = vpop.f32.mrf.mxu1 }
0x1701   :  { %v4535_v6 = vmul.f32 0.044715, %v4533_v38  ;;  %v4532_v58 = vmul.f32 %v4276_v35, %v4276_v35  ;;  %v4530_v33 = vmul.f32 0.5, %v4276_v35 }
0x1703   :  { %v4537_v47 = vadd.f32 %v4535_v6, %v4275_v63  ;;  %v4534_v53 = vmul.f32 %v4532_v58, %v4276_v35  ;;  %v4729_v63 = vmul.f32 0.5, %v7641_v9 }
0x1705   :  { %v4539_v17 = vmul.f32 0.7978846, %v4537_v47  ;;  %v4536_v22 = vmul.f32 0.044715, %v4534_v53 }
0x1707   :  { %5991 = vtanh.f32 %v4539_v17  ;;  %v4538_v27 = vadd.f32 %v4536_v22, %v4276_v35  ;;  %v5803_v17 = vld [vmem:[%s7731_s14 + $0x8] sm:$0xff]   ;;  %v5804_v22 = vld [vmem:[%s7731_s14] sm:$0xff]   ;;  %s5132_s14 = sld [smem:[#allocation17 + $0x4]] }
0x1709   :  { %v4540_v31 = vmul.f32 0.7978846, %v4538_v27  ;;  %v5119_v27 = vld [vmem:[#allocation8 + $0x3] ss:$0 sm:$0xff] }
0x170b   :  { %5993 = vtanh.f32 %v4540_v31  ;;  %v4397_v14 = vpop.f32.mrf.mxu1  ;;  %v4618_v31 = vstv %s5123_s19 }
0x170c   :  { %5995 = vtanh.f32 %v4734_v26  ;;  %v4404_v25 = vadd.f32 %v4397_v14, %v3394_v39 }
0x170d   :  { %v5666_v60 = vpop.f32.mrf.mxu1  ;;  %s4721_s23 = ssub.f32 1.0, %s5132_s14 }
0x170e   :  { %v4622_v60 = vstv %s4621_s18 }
0x170f   :  { %v4400_v43 = vpop.f32.mrf.mxu1 }
0x1710   :  { %v4405_v32 = vadd.f32 %v4400_v43, %v3397_v62  ;;  %v5137_v62 = vld [vmem:[#allocation8 + $0x5] ss:$0 sm:$0xff] }
0x1711   :  { %v5667_v49 = vpop.f32.mrf.mxu1 }
0x1713   :  { %v4520_v3 = vpop.f32.mrf.mxu1 }
0x1714   :  { %v5992_v29 = vpop.eup %5991  ;;  %v4527_v52 = vadd.f32 %v4520_v3, %v4404_v25  ;;  %v4623_v25 = vmul.f32 %v4622_v60, %v2447_v28 }
0x1715   :  { %v5678_v16 = vpop.f32.mrf.mxu1  ;;  %v4543_v34 = vadd.f32 1.0, %v5992_v29 }
0x1716   :  { %v4631_v50 = vmul.f32 %v4527_v52, %v4527_v52  ;;  %v4629_v36 = vmul.f32 0.5, %v4527_v52 }
0x1717   :  { %v4523_v0 = vpop.f32.mrf.mxu1  ;;  %v4545_v7 = vmul.f32 %v4543_v34, %v4529_v15  ;;  %v4808_v34 = vstv %s5141_s6 }
0x1718   :  { %v5994_v54 = vpop.eup %5993  ;;  %v4633_v12 = vmul.f32 %v4631_v50, %v4527_v52  ;;  %v4528_v30 = vadd.f32 %v4523_v0, %v4405_v32  ;;  %v4624_v32 = vmul.f32 %v4622_v60, %v2448_v44  ;;  %v4811_v0 = vstv %s4810_s4 }
0x1719   :  { %v4544_v21 = vadd.f32 1.0, %v5994_v54  ;;  %v5679_v1 = vpop.f32.mrf.mxu1  ;;  %v5996_v11 = vpop.eup %5995  ;;  %v4812_v8 = vmul.f32 %v4811_v0, %v7097_v51 }
0x171a   :  { %v4635_v4 = vmul.f32 0.044715, %v4633_v12  ;;  %v4632_v59 = vmul.f32 %v4528_v30, %v4528_v30  ;;  %v4736_v57 = vadd.f32 1.0, %v5996_v11  ;;  %v4630_v6 = vmul.f32 0.5, %v4528_v30 }
0x171b   :  { %v4546_v24 = vmul.f32 %v4544_v21, %v4530_v33 }
0x171c   :  { %v4637_v48 = vadd.f32 %v4635_v4, %v4527_v52  ;;  %v4634_v45 = vmul.f32 %v4632_v59, %v4528_v30  ;;  %v4737_v5 = vmul.f32 %v4736_v57, %v4729_v63  ;;  %v5128_v59 = vld [vmem:[#allocation8 + $0x4] ss:$0 sm:$0xff] }
0x171d   :  { %v4547_v55 = vpack.c.bf16 %v4546_v24, %v4545_v7  ;;  %v4718_v7 = vstv %s5132_s14 }
0x171e   :  { %v4639_v40 = vmul.f32 0.7978846, %v4637_v48  ;;  %v4636_v56 = vmul.f32 0.044715, %v4634_v45  ;;  %v4738_v38 = vpack.c.bf16 %v4737_v5, %v4737_v5  ;;  %v4722_v48 = vstv %s4721_s23 }
0x171f   :  { %5685 = vmatmul.mubr.msk.bf16.vlgmr.msra.gmra.mxu0 %vm240_vm1, %v4547_v55  ;;  %v4723_v55 = vmul.f32 %v4722_v48, %v2547_v37 }
0x1720   :  { %5997 = vtanh.f32 %v4639_v40  ;;  %v4638_v18 = vadd.f32 %v4636_v56, %v4528_v30  ;;  %5697 = vmatpush3.bf16.msra.mxu0 %v5799_v20  ;;  %5700 = vmatprep.mubr.msk.bf16.mxu0 %vm6230_vm0, %v7762_v42 }
0x1721   :  { %5698 = vmatprep.subr.bf16.mxu0 %v7762_v42 }
0x1722   :  { %v4640_v46 = vmul.f32 0.7978846, %v4638_v18  ;;  %v4724_v18 = vmul.f32 %v4722_v48, %v2548_v13 }
0x1724   :  { %5999 = vtanh.f32 %v4640_v46  ;;  %5699 = vmatpush3.bf16.msra.mxu0 %v5800_v61 }
0x1725   :  { %5712 = vmatprep.subr.bf16.mxu0 %v7762_v42 }
0x1727   :  { %5701 = vmatmul.mubr.msk.bf16.vlgmr.msra.gmra.mxu0 %vm240_vm1, %v4738_v38 }
0x1728   :  { %5716 = vmatprep.mubr.msk.bf16.mxu0 %vm6230_vm0, %v7762_v42  ;;  %5713 = vmatpush3.bf16.msra.mxu0 %v5803_v17 }
0x1729   :  { %5714 = vmatprep.subr.bf16.mxu0 %v7762_v42 }
0x172c   :  { %5715 = vmatpush3.bf16.msra.mxu0 %v5804_v22 }
0x172d   :  { %v5998_v9 = vpop.eup %5997 }
0x172e   :  { %v4643_v35 = vadd.f32 1.0, %v5998_v9  ;;  %v5142_v9 = vld [vmem:[#allocation16] ss:$0 sm:$0xff] }
0x1730   :  { %v4645_v47 = vmul.f32 %v4643_v35, %v4629_v36 }
0x1731   :  { %v6000_v19 = vpop.eup %5999 }
0x1732   :  { %v4644_v58 = vadd.f32 1.0, %v6000_v19 }
0x1734   :  { %v4646_v53 = vmul.f32 %v4644_v58, %v4630_v6 }
0x1736   :  { %v4647_v41 = vpack.c.bf16 %v4646_v53, %v4645_v47 }
0x1738   :  { %5693 = vmatmul.mubr.msk.bf16.vlgmr.msra.gmra.mxu1 %vm240_vm1, %v4647_v41 }
0x1739   :  { %5708 = vmatprep.mubr.msk.bf16.mxu1 %vm6230_vm0, %v7762_v42  ;;  %5705 = vmatpush3.bf16.msra.mxu1 %v5803_v17 }
0x173a   :  { %5706 = vmatprep.subr.bf16.mxu1 %v7762_v42 }
0x173d   :  { %5707 = vmatpush3.bf16.msra.mxu1 %v5804_v22 }
0x173e   :  { %5720 = vmatprep.subr.bf16.mxu1 %v7762_v42 }
0x17df   :  { %v4610_v26 = vpop.f32.mrf.mxu0 }
0x17e0   :  { %v4611_v14 = vadd.f32 %v5119_v27, %v4610_v26 }
0x17e1   :  { %v5686_v43 = vpop.f32.mrf.mxu0 }
0x17e2   :  { %v4619_v39 = vmul.f32 %v4618_v31, %v4611_v14 }
0x17e3   :  { %v4613_v49 = vpop.f32.mrf.mxu0 }
0x17e4   :  { %v4614_v3 = vadd.f32 %v5119_v27, %v4613_v49  ;;  %v4625_v52 = vadd.f32 %v4623_v25, %v4619_v39 }
0x17e5   :  { %v5687_v29 = vpop.f32.mrf.mxu0 }
0x17e6   :  { %v4620_v16 = vmul.f32 %v4618_v31, %v4614_v3  ;;  %v4627_v15 = vmax.f32 %v4625_v52, 0.0 }
0x17e7   :  { %v4801_v50 = vpop.f32.mrf.mxu0 }
0x17e8   :  { %v4626_v54 = vadd.f32 %v4624_v32, %v4620_v16  ;;  %v4802_v12 = vadd.f32 %v5137_v62, %v4801_v50 }
0x17e9   :  { %v5702_v30 = vpop.f32.mrf.mxu0 }
0x17ea   :  { %v4628_v33 = vmax.f32 %v4626_v54, 0.0  ;;  %v4809_v21 = vmul.f32 %v4808_v34, %v4802_v12 }
0x17eb   :  { %v4804_v28 = vpop.f32.mrf.mxu0 }
0x17ec   :  { %v4820_v1 = vpack.c.bf16 %v4628_v33, %v4627_v15  ;;  %v4813_v11 = vadd.f32 %v4812_v8, %v4809_v21 }
0x17ed   :  { %v5703_v4 = vpop.f32.mrf.mxu0 }
0x17ee   :  { %5709 = vmatmul.mubr.msk.bf16.vlgmr.msra.gmra.mxu1 %vm240_vm1, %v4820_v1  ;;  %v4814_v2 = vmax.f32 %v4813_v11, 0.0 }
0x17ef   :  { %5721 = vmatpush3.bf16.msra.mxu1 %v5803_v17  ;;  %5724 = vmatprep.mubr.msk.bf16.mxu1 %vm6230_vm0, %v7762_v42 }
0x17f0   :  { %5722 = vmatprep.subr.bf16.mxu1 %v7762_v42  ;;  %v4932_v44 = vpack.c.bf16 %v4814_v2, %v4814_v2 }
0x17f3   :  { %5723 = vmatpush3.bf16.msra.mxu1 %v5804_v22 }
0x17f6   :  { %5725 = vmatmul.mubr.msk.bf16.vlgmr.msra.gmra.mxu1 %vm240_vm1, %v4932_v44 }
0x17f8   :  { %v4710_v51 = vpop.f32.mrf.mxu1 }
0x17f9   :  { %v4711_v24 = vadd.f32 %v5128_v59, %v4710_v51 }
0x17fa   :  { %v5694_v45 = vpop.f32.mrf.mxu1 }
0x17fb   :  { %v4719_v20 = vmul.f32 %v4718_v7, %v4711_v24 }
0x17fc   :  { %v4713_v57 = vpop.f32.mrf.mxu1 }
0x17fd   :  { %v4714_v40 = vadd.f32 %v5128_v59, %v4713_v57  ;;  %v4725_v63 = vadd.f32 %v4723_v55, %v4719_v20 }
0x17fe   :  { %v5695_v56 = vpop.f32.mrf.mxu1 }
0x17ff   :  { %v4720_v42 = vmul.f32 %v4718_v7, %v4714_v40  ;;  %v4727_v5 = vmax.f32 %v4725_v63, 0.0 }
0x1801   :  { %v4726_v61 = vadd.f32 %v4724_v18, %v4720_v42 }
0x1803   :  { %v4728_v46 = vmax.f32 %v4726_v61, 0.0 }
0x1805   :  { %v4885_v38 = vpack.c.bf16 %v4728_v46, %v4727_v5 }
0x1807   :  { %5717 = vmatmul.mubr.msk.bf16.vlgmr.msra.gmra.mxu0 %vm240_vm1, %v4885_v38 }
0x18ae   :  { %v4876_v35 = vpop.f32.mrf.mxu1 }
0x18af   :  { %v4877_v19 = vadd.f32 %v5142_v9, %v4876_v35 }
0x18b0   :  { %v5710_v36 = vpop.f32.mrf.mxu1 }
0x18b1   :  { %4883 = vst.msk [vmem:[%s7734_s17] sm:$0xff] %vm765_vm11, %v4877_v19 }
0x18b2   :  { %v4879_v10 = vpop.f32.mrf.mxu1 }
0x18b3   :  { %v4880_v37 = vadd.f32 %v5142_v9, %v4879_v10 }
0x18b4   :  { %v5711_v6 = vpop.f32.mrf.mxu1 }
0x18b5   :  { %4884 = vst.msk [vmem:[%s7734_s17 + $0x8] sm:$0xff] %vm765_vm11, %v4880_v37 }
0x18b6   :  { %v4970_v23 = vpop.f32.mrf.mxu1 }
0x18b7   :  { %v4971_v13 = vadd.f32 %v5142_v9, %v4970_v23 }
0x18b8   :  { %v5726_v58 = vpop.f32.mrf.mxu1 }
0x18b9   :  { %4976 = vst.msk [vmem:[%s7734_s17 + $0x20] sm:$0xff] %vm765_vm11, %v4971_v13 }
0x18ba   :  { %v4973_v47 = vpop.f32.mrf.mxu1 }
0x18bc   :  { %v5727_v53 = vpop.f32.mrf.mxu1 }
0x18c7   :  { %v4923_v41 = vpop.f32.mrf.mxu0 }
0x18c8   :  { %v4924_v17 = vadd.f32 %v5142_v9, %v4923_v41 }
0x18c9   :  { %v5718_v22 = vpop.f32.mrf.mxu0 }
0x18ca   :  { %4930 = vst.msk [vmem:[%s7734_s17 + $0x10] sm:$0xff] %vm765_vm11, %v4924_v17 }
0x18cb   :  { %v4926_v27 = vpop.f32.mrf.mxu0 }
0x18cc   :  { %v4927_v26 = vadd.f32 %v5142_v9, %v4926_v27 }
0x18cd   :  { %v5719_v31 = vpop.f32.mrf.mxu0 }
0x18ce   :  { %4931 = vst.msk [vmem:[%s7734_s17 + $0x18] sm:$0xff] %vm765_vm11, %v4927_v26 }
0x18cf   :  { %4981 = vsyncpa [#allocation3], 1 }
0x18d0   :  { %4982 = vsyncpa [#allocation6], 1 }
0x18d1   :  { %4983 = vsyncpa [#allocation9], 1 }
0x18d2   :  { %4984 = vsyncpa [#allocation12], 1 }
0x18d3   :  { %4985 = vsyncpa [#allocation15], 1 }
0x18d4   :  { %4986 = vsyncpa [#allocation4], 1 }

</bundles_post_ra>
